<compile_context>
chip_gen: v5e
topology: v5e:2x2
jax: 0.10.0
libtpu: 0.0.40
codegen_flags: <defaults>
</compile_context>

<pallas_src>
import functools
import math

import jax
import jax.numpy as jnp
from jax import lax
from jax.experimental import pallas as pl
from jax.experimental.pallas import tpu as pltpu


# Order of the per-layer weight operands (must match the kernel unpacking).
_W_ORDER = (
    "ln0_a", "ln0_b", "wqkv_s", "bqkv_s", "wo_s", "bo_s",
    "ln1_a", "ln1_b", "wq_c", "bq_c", "wkv_c", "bkv_c", "wo_c", "bo_c",
    "ln2_a", "ln2_b", "w1", "b1", "w2", "b2",
)
_NW = len(_W_ORDER)  # 20 weight refs per layer


# ----------------------------------------------------------------------------
# Fully fused decoder kernel: N layers + final LayerNorm, one grid step / batch
# ----------------------------------------------------------------------------
def _decoder_kernel(*refs, n_layers, h, eps):
  f32 = jnp.float32
  bf16 = jnp.bfloat16

  x_ref, mem_ref, tmask_ref, smask_ref = refs[:4]
  w_refs = refs[4:4 + n_layers * _NW]
  norm_a_ref = refs[4 + n_layers * _NW]
  norm_b_ref = refs[4 + n_layers * _NW + 1]
  o_ref = refs[-1]

  x = x_ref[0]                       # (Sq, d) f32 residual stream
  mem = mem_ref[0]                   # (Sk, d) f32
  d = x.shape[-1]
  dk = d // h
  scale = 1.0 / math.sqrt(dk)

  # Additive attention biases, hoisted ONCE (shared by all layers & heads).
  tbias = jnp.where(tmask_ref[0] == 0.0, -1e9, 0.0)   # (Sq, Sq)
  sbias = jnp.where(smask_ref[0] == 0.0, -1e9, 0.0)   # (1, Sk)
  mem_b = mem.astype(bf16)           # bf16 memory reused by every cross-attn

  def layer_norm(v, a, b):
    # torch-reference semantics: unbiased std, a*(x-mean)/(std+eps)+b
    mean = jnp.mean(v, axis=-1, keepdims=True)
    vc = v - mean
    var = jnp.sum(vc * vc, axis=-1, keepdims=True) * (1.0 / (d - 1))
    inv = 1.0 / (jnp.sqrt(var) + eps)          # exact; LN is parity-sensitive
    return a * (vc * inv) + b

  def attend(q_all, k_all, v_all, bias, wo_ref, bo_ref):
    # q_all (Sq, d) bf16; k_all/v_all (Sk, d) bf16; bias broadcastable to
    # (Sq, Sk).  Per-head scores/softmax, contexts concatenated along lanes
    # (head slices are already adjacent), then ONE full-K output projection.
    ctx = []
    for i in range(h):
      sl = slice(i * dk, (i + 1) * dk)
      s = lax.dot_general(q_all[:, sl], k_all[:, sl],
                          (((1,), (1,)), ((), ())),
                          preferred_element_type=f32) * scale      # (Sq, Sk)
      s = s + bias
      s = s - jnp.max(s, axis=-1, keepdims=True)
      p = jnp.exp(s)
      p = p * pl.reciprocal(jnp.sum(p, axis=-1, keepdims=True), approx=True)
      ctx.append(jnp.dot(p.astype(bf16), v_all[:, sl],
                         preferred_element_type=f32))              # (Sq, dk)
    ctx = jnp.concatenate(ctx, axis=-1)                            # (Sq, d)
    return (jnp.dot(ctx.astype(bf16), wo_ref[...],
                    preferred_element_type=f32) + bo_ref[...])

  for l in range(n_layers):
    (ln0_a, ln0_b, wqkv_s, bqkv_s, wo_s, bo_s,
     ln1_a, ln1_b, wq_c, bq_c, wkv_c, bkv_c, wo_c, bo_c,
     ln2_a, ln2_b, w1, b1, w2, b2) = w_refs[l * _NW:(l + 1) * _NW]

    # ---- sublayer 0: masked self-attention (pre-norm, fused QKV matmul) ----
    y = layer_norm(x, ln0_a[...], ln0_b[...]).astype(bf16)
    qkv = (jnp.dot(y, wqkv_s[...], preferred_element_type=f32)
           + bqkv_s[...]).astype(bf16)                             # (Sq, 3d)
    x = x + attend(qkv[:, 0:d], qkv[:, d:2 * d], qkv[:, 2 * d:3 * d],
                   tbias, wo_s, bo_s)

    # ---- sublayer 1: source (cross) attention (fused KV matmul on memory) --
    y = layer_norm(x, ln1_a[...], ln1_b[...]).astype(bf16)
    q = (jnp.dot(y, wq_c[...], preferred_element_type=f32)
         + bq_c[...]).astype(bf16)                                 # (Sq, d)
    kv = (jnp.dot(mem_b, wkv_c[...], preferred_element_type=f32)
          + bkv_c[...]).astype(bf16)                               # (Sk, 2d)
    x = x + attend(q, kv[:, 0:d], kv[:, d:2 * d], sbias, wo_c, bo_c)

    # ---- sublayer 2: position-wise feed-forward ----
    y = layer_norm(x, ln2_a[...], ln2_b[...]).astype(bf16)
    h1 = jnp.maximum(
        jnp.dot(y, w1[...], preferred_element_type=f32) + b1[...], 0.0)
    x = x + (jnp.dot(h1.astype(bf16), w2[...], preferred_element_type=f32)
             + b2[...])

  # ---- final Decoder LayerNorm, fused (no separate pallas_call) ----
  o_ref[0] = layer_norm(x, norm_a_ref[...], norm_b_ref[...])


# ----------------------------------------------------------------------------
# Wrapper: one pallas_call for the whole Decoder
# ----------------------------------------------------------------------------
def decoder_forward(params, x, memory, src_mask, tgt_mask, *, h, eps=1e-6):
  B, Sq, d = x.shape
  Sk = memory.shape[1]
  n_layers = len(params["layers"])

  weights = []
  for lp in params["layers"]:
    weights += [lp[name] for name in _W_ORDER]
  weights += [params["norm_a"], params["norm_b"]]

  def full_2d(arr):
    # Constant index_map -> block stays resident across grid steps.
    return pl.BlockSpec(arr.shape, lambda b: (0, 0))

  in_specs = [
      pl.BlockSpec((1, Sq, d), lambda b: (b, 0, 0)),    # x
      pl.BlockSpec((1, Sk, d), lambda b: (b, 0, 0)),    # memory
      pl.BlockSpec((1, Sq, Sq), lambda b: (b, 0, 0)),   # tgt mask (un-broadcast)
      pl.BlockSpec((1, 1, Sk), lambda b: (b, 0, 0)),    # src mask (un-broadcast)
  ] + [full_2d(w) for w in weights]

  return pl.pallas_call(
      functools.partial(_decoder_kernel, n_layers=n_layers, h=h, eps=eps),
      grid=(B,),
      in_specs=in_specs,
      out_specs=pl.BlockSpec((1, Sq, d), lambda b: (b, 0, 0)),
      out_shape=jax.ShapeDtypeStruct((B, Sq, d), jnp.float32),
      compiler_params=pltpu.CompilerParams(
          dimension_semantics=("parallel",),      # B grid steps across TCs
          vmem_limit_bytes=32 * 1024 * 1024),
  )(x, memory, tgt_mask.astype(jnp.float32), src_mask.astype(jnp.float32),
    *weights)


# ----------------------------------------------------------------------------
# Deterministic parameter construction (fused QKV / KV layouts, bf16 weights)
# ----------------------------------------------------------------------------
def init_params(key, N, d_model, d_ff):
  def dense(k, d_in, d_out):
    scale = 1.0 / math.sqrt(d_in)
    return jax.random.uniform(k, (d_in, d_out), jnp.float32, -scale, scale)

  bf16 = jnp.bfloat16
  layers = []
  for _ in range(N):
    key, *ks = jax.random.split(key, 11)
    wq_s, wk_s, wv_s, wo_s = (dense(ks[i], d_model, d_model) for i in range(4))
    wq_c, wk_c, wv_c, wo_c = (dense(ks[i], d_model, d_model) for i in range(4, 8))
    w1 = dense(ks[8], d_model, d_ff)
    w2 = dense(ks[9], d_ff, d_model)
    zeros_d = jnp.zeros((1, d_model), jnp.float32)
    ones_d = jnp.ones((1, d_model), jnp.float32)
    layers.append({
        # self-attention: fused [wq | wk | wv], bf16 for the MXU
        "wqkv_s": jnp.concatenate([wq_s, wk_s, wv_s], axis=1).astype(bf16),
        "bqkv_s": jnp.zeros((1, 3 * d_model), jnp.float32),
        "wo_s": wo_s.astype(bf16), "bo_s": zeros_d,
        # cross-attention: q separate, fused [wk | wv] for memory
        "wq_c": wq_c.astype(bf16), "bq_c": zeros_d,
        "wkv_c": jnp.concatenate([wk_c, wv_c], axis=1).astype(bf16),
        "bkv_c": jnp.zeros((1, 2 * d_model), jnp.float32),
        "wo_c": wo_c.astype(bf16), "bo_c": zeros_d,
        # feed-forward
        "w1": w1.astype(bf16), "b1": jnp.zeros((1, d_ff), jnp.float32),
        "w2": w2.astype(bf16), "b2": zeros_d,
        # layer norms (f32)
        "ln0_a": ones_d, "ln0_b": zeros_d,
        "ln1_a": ones_d, "ln1_b": zeros_d,
        "ln2_a": ones_d, "ln2_b": zeros_d,
    })
  return {"layers": layers,
          "norm_a": jnp.ones((1, d_model), jnp.float32),
          "norm_b": jnp.zeros((1, d_model), jnp.float32)}


# ----------------------------------------------------------------------------
if __name__ == "__main__":
  B, S_tgt, S_src = 2, 8, 10
  d_model, d_ff, heads, N = 32, 64, 4, 2

  key = jax.random.PRNGKey(0)
  k_x, k_m, k_p = jax.random.split(key, 3)

  x = jax.random.normal(k_x, (B, S_tgt, d_model), jnp.float32)
  memory = jax.random.normal(k_m, (B, S_src, d_model), jnp.float32)
  src_mask = jnp.ones((B, 1, S_src), jnp.float32)                 # all visible
  tgt_mask = jnp.broadcast_to(                                    # causal mask
      jnp.tril(jnp.ones((S_tgt, S_tgt), jnp.float32)), (B, S_tgt, S_tgt))

  params = init_params(k_p, N, d_model, d_ff)

  fwd = jax.jit(functools.partial(decoder_forward, h=heads))
  out = fwd(params, x, memory, src_mask, tgt_mask)
  out = jax.block_until_ready(out)

  assert out.shape == (B, S_tgt, d_model)
  assert bool(jnp.all(jnp.isfinite(out)))
  print("KERNEL_OK")
</pallas_src>

<mosaic_0001>
module attributes {stable_mosaic.version = 11 : i64} {
  func.func @_decoder_kernel(%arg0: i32, %arg1: memref<1x8x32xf32, #tpu.memory_space<vmem>>, %arg2: memref<1x10x32xf32, #tpu.memory_space<vmem>>, %arg3: memref<1x8x8xf32, #tpu.memory_space<vmem>>, %arg4: memref<1x1x10xf32, #tpu.memory_space<vmem>>, %arg5: memref<1x32xf32, #tpu.memory_space<vmem>>, %arg6: memref<1x32xf32, #tpu.memory_space<vmem>>, %arg7: memref<32x96xbf16, #tpu.memory_space<vmem>>, %arg8: memref<1x96xf32, #tpu.memory_space<vmem>>, %arg9: memref<32x32xbf16, #tpu.memory_space<vmem>>, %arg10: memref<1x32xf32, #tpu.memory_space<vmem>>, %arg11: memref<1x32xf32, #tpu.memory_space<vmem>>, %arg12: memref<1x32xf32, #tpu.memory_space<vmem>>, %arg13: memref<32x32xbf16, #tpu.memory_space<vmem>>, %arg14: memref<1x32xf32, #tpu.memory_space<vmem>>, %arg15: memref<32x64xbf16, #tpu.memory_space<vmem>>, %arg16: memref<1x64xf32, #tpu.memory_space<vmem>>, %arg17: memref<32x32xbf16, #tpu.memory_space<vmem>>, %arg18: memref<1x32xf32, #tpu.memory_space<vmem>>, %arg19: memref<1x32xf32, #tpu.memory_space<vmem>>, %arg20: memref<1x32xf32, #tpu.memory_space<vmem>>, %arg21: memref<32x64xbf16, #tpu.memory_space<vmem>>, %arg22: memref<1x64xf32, #tpu.memory_space<vmem>>, %arg23: memref<64x32xbf16, #tpu.memory_space<vmem>>, %arg24: memref<1x32xf32, #tpu.memory_space<vmem>>, %arg25: memref<1x32xf32, #tpu.memory_space<vmem>>, %arg26: memref<1x32xf32, #tpu.memory_space<vmem>>, %arg27: memref<32x96xbf16, #tpu.memory_space<vmem>>, %arg28: memref<1x96xf32, #tpu.memory_space<vmem>>, %arg29: memref<32x32xbf16, #tpu.memory_space<vmem>>, %arg30: memref<1x32xf32, #tpu.memory_space<vmem>>, %arg31: memref<1x32xf32, #tpu.memory_space<vmem>>, %arg32: memref<1x32xf32, #tpu.memory_space<vmem>>, %arg33: memref<32x32xbf16, #tpu.memory_space<vmem>>, %arg34: memref<1x32xf32, #tpu.memory_space<vmem>>, %arg35: memref<32x64xbf16, #tpu.memory_space<vmem>>, %arg36: memref<1x64xf32, #tpu.memory_space<vmem>>, %arg37: memref<32x32xbf16, #tpu.memory_space<vmem>>, %arg38: memref<1x32xf32, #tpu.memory_space<vmem>>, %arg39: memref<1x32xf32, #tpu.memory_space<vmem>>, %arg40: memref<1x32xf32, #tpu.memory_space<vmem>>, %arg41: memref<32x64xbf16, #tpu.memory_space<vmem>>, %arg42: memref<1x64xf32, #tpu.memory_space<vmem>>, %arg43: memref<64x32xbf16, #tpu.memory_space<vmem>>, %arg44: memref<1x32xf32, #tpu.memory_space<vmem>>, %arg45: memref<1x32xf32, #tpu.memory_space<vmem>>, %arg46: memref<1x32xf32, #tpu.memory_space<vmem>>, %arg47: memref<1x8x32xf32, #tpu.memory_space<vmem>>) attributes {dimension_semantics = [#tpu.dimension_semantics<parallel>], iteration_bounds = array<i64: 2>, scalar_prefetch = 0 : i64, scratch_operands = 0 : i64, tpu.core_type = #tpu.core_type<tc>, window_params = [{transform_indices = @transform_0, window_bounds = array<i64: 1, 8, 32>}, {transform_indices = @transform_1, window_bounds = array<i64: 1, 10, 32>}, {transform_indices = @transform_2, window_bounds = array<i64: 1, 8, 8>}, {transform_indices = @transform_3, window_bounds = array<i64: 1, 1, 10>}, {pipeline_mode = #tpu.pipeline_mode<synchronous>, transform_indices = @transform_4, window_bounds = array<i64: 1, 32>}, {pipeline_mode = #tpu.pipeline_mode<synchronous>, transform_indices = @transform_5, window_bounds = array<i64: 1, 32>}, {pipeline_mode = #tpu.pipeline_mode<synchronous>, transform_indices = @transform_6, window_bounds = array<i64: 32, 96>}, {pipeline_mode = #tpu.pipeline_mode<synchronous>, transform_indices = @transform_7, window_bounds = array<i64: 1, 96>}, {pipeline_mode = #tpu.pipeline_mode<synchronous>, transform_indices = @transform_8, window_bounds = array<i64: 32, 32>}, {pipeline_mode = #tpu.pipeline_mode<synchronous>, transform_indices = @transform_9, window_bounds = array<i64: 1, 32>}, {pipeline_mode = #tpu.pipeline_mode<synchronous>, transform_indices = @transform_10, window_bounds = array<i64: 1, 32>}, {pipeline_mode = #tpu.pipeline_mode<synchronous>, transform_indices = @transform_11, window_bounds = array<i64: 1, 32>}, {pipeline_mode = #tpu.pipeline_mode<synchronous>, transform_indices = @transform_12, window_bounds = array<i64: 32, 32>}, {pipeline_mode = #tpu.pipeline_mode<synchronous>, transform_indices = @transform_13, window_bounds = array<i64: 1, 32>}, {pipeline_mode = #tpu.pipeline_mode<synchronous>, transform_indices = @transform_14, window_bounds = array<i64: 32, 64>}, {pipeline_mode = #tpu.pipeline_mode<synchronous>, transform_indices = @transform_15, window_bounds = array<i64: 1, 64>}, {pipeline_mode = #tpu.pipeline_mode<synchronous>, transform_indices = @transform_16, window_bounds = array<i64: 32, 32>}, {pipeline_mode = #tpu.pipeline_mode<synchronous>, transform_indices = @transform_17, window_bounds = array<i64: 1, 32>}, {pipeline_mode = #tpu.pipeline_mode<synchronous>, transform_indices = @transform_18, window_bounds = array<i64: 1, 32>}, {pipeline_mode = #tpu.pipeline_mode<synchronous>, transform_indices = @transform_19, window_bounds = array<i64: 1, 32>}, {pipeline_mode = #tpu.pipeline_mode<synchronous>, transform_indices = @transform_20, window_bounds = array<i64: 32, 64>}, {pipeline_mode = #tpu.pipeline_mode<synchronous>, transform_indices = @transform_21, window_bounds = array<i64: 1, 64>}, {pipeline_mode = #tpu.pipeline_mode<synchronous>, transform_indices = @transform_22, window_bounds = array<i64: 64, 32>}, {pipeline_mode = #tpu.pipeline_mode<synchronous>, transform_indices = @transform_23, window_bounds = array<i64: 1, 32>}, {pipeline_mode = #tpu.pipeline_mode<synchronous>, transform_indices = @transform_24, window_bounds = array<i64: 1, 32>}, {pipeline_mode = #tpu.pipeline_mode<synchronous>, transform_indices = @transform_25, window_bounds = array<i64: 1, 32>}, {pipeline_mode = #tpu.pipeline_mode<synchronous>, transform_indices = @transform_26, window_bounds = array<i64: 32, 96>}, {pipeline_mode = #tpu.pipeline_mode<synchronous>, transform_indices = @transform_27, window_bounds = array<i64: 1, 96>}, {pipeline_mode = #tpu.pipeline_mode<synchronous>, transform_indices = @transform_28, window_bounds = array<i64: 32, 32>}, {pipeline_mode = #tpu.pipeline_mode<synchronous>, transform_indices = @transform_29, window_bounds = array<i64: 1, 32>}, {pipeline_mode = #tpu.pipeline_mode<synchronous>, transform_indices = @transform_30, window_bounds = array<i64: 1, 32>}, {pipeline_mode = #tpu.pipeline_mode<synchronous>, transform_indices = @transform_31, window_bounds = array<i64: 1, 32>}, {pipeline_mode = #tpu.pipeline_mode<synchronous>, transform_indices = @transform_32, window_bounds = array<i64: 32, 32>}, {pipeline_mode = #tpu.pipeline_mode<synchronous>, transform_indices = @transform_33, window_bounds = array<i64: 1, 32>}, {pipeline_mode = #tpu.pipeline_mode<synchronous>, transform_indices = @transform_34, window_bounds = array<i64: 32, 64>}, {pipeline_mode = #tpu.pipeline_mode<synchronous>, transform_indices = @transform_35, window_bounds = array<i64: 1, 64>}, {pipeline_mode = #tpu.pipeline_mode<synchronous>, transform_indices = @transform_36, window_bounds = array<i64: 32, 32>}, {pipeline_mode = #tpu.pipeline_mode<synchronous>, transform_indices = @transform_37, window_bounds = array<i64: 1, 32>}, {pipeline_mode = #tpu.pipeline_mode<synchronous>, transform_indices = @transform_38, window_bounds = array<i64: 1, 32>}, {pipeline_mode = #tpu.pipeline_mode<synchronous>, transform_indices = @transform_39, window_bounds = array<i64: 1, 32>}, {pipeline_mode = #tpu.pipeline_mode<synchronous>, transform_indices = @transform_40, window_bounds = array<i64: 32, 64>}, {pipeline_mode = #tpu.pipeline_mode<synchronous>, transform_indices = @transform_41, window_bounds = array<i64: 1, 64>}, {pipeline_mode = #tpu.pipeline_mode<synchronous>, transform_indices = @transform_42, window_bounds = array<i64: 64, 32>}, {pipeline_mode = #tpu.pipeline_mode<synchronous>, transform_indices = @transform_43, window_bounds = array<i64: 1, 32>}, {pipeline_mode = #tpu.pipeline_mode<synchronous>, transform_indices = @transform_44, window_bounds = array<i64: 1, 32>}, {pipeline_mode = #tpu.pipeline_mode<synchronous>, transform_indices = @transform_45, window_bounds = array<i64: 1, 32>}, {transform_indices = @transform_46, window_bounds = array<i64: 1, 8, 32>}]} {
    %c0 = arith.constant 0 : index
    %c0_0 = arith.constant 0 : index
    %c0_1 = arith.constant 0 : index
    %0 = vector.load %arg1[%c0, %c0_0, %c0_1] : memref<1x8x32xf32, #tpu.memory_space<vmem>>, vector<1x8x32xf32>
    %1 = vector.shape_cast %0 : vector<1x8x32xf32> to vector<8x32xf32>
    %c0_2 = arith.constant 0 : index
    %c0_3 = arith.constant 0 : index
    %c0_4 = arith.constant 0 : index
    %2 = vector.load %arg2[%c0_2, %c0_3, %c0_4] : memref<1x10x32xf32, #tpu.memory_space<vmem>>, vector<1x10x32xf32>
    %3 = vector.shape_cast %2 : vector<1x10x32xf32> to vector<10x32xf32>
    %c0_5 = arith.constant 0 : index
    %c0_6 = arith.constant 0 : index
    %c0_7 = arith.constant 0 : index
    %4 = vector.load %arg3[%c0_5, %c0_6, %c0_7] : memref<1x8x8xf32, #tpu.memory_space<vmem>>, vector<1x8x8xf32>
    %5 = vector.shape_cast %4 : vector<1x8x8xf32> to vector<8x8xf32>
    %cst = arith.constant 0.000000e+00 : f32
    %6 = vector.broadcast %cst : f32 to vector<8x8xf32>
    %7 = arith.cmpf oeq, %5, %6 : vector<8x8xf32>
    %cst_8 = arith.constant -1.000000e+09 : f32
    %cst_9 = arith.constant 0.000000e+00 : f32
    %8 = vector.broadcast %cst_8 : f32 to vector<8x8xf32>
    %9 = vector.broadcast %cst_9 : f32 to vector<8x8xf32>
    %10 = arith.select %7, %8, %9 : vector<8x8xi1>, vector<8x8xf32>
    %c0_10 = arith.constant 0 : index
    %c0_11 = arith.constant 0 : index
    %c0_12 = arith.constant 0 : index
    %11 = vector.load %arg4[%c0_10, %c0_11, %c0_12] : memref<1x1x10xf32, #tpu.memory_space<vmem>>, vector<1x1x10xf32>
    %12 = vector.shape_cast %11 : vector<1x1x10xf32> to vector<1x10xf32>
    %cst_13 = arith.constant 0.000000e+00 : f32
    %13 = vector.broadcast %cst_13 : f32 to vector<1x10xf32>
    %14 = arith.cmpf oeq, %12, %13 : vector<1x10xf32>
    %cst_14 = arith.constant -1.000000e+09 : f32
    %cst_15 = arith.constant 0.000000e+00 : f32
    %15 = vector.broadcast %cst_14 : f32 to vector<1x10xf32>
    %16 = vector.broadcast %cst_15 : f32 to vector<1x10xf32>
    %17 = arith.select %14, %15, %16 : vector<1x10xi1>, vector<1x10xf32>
    %18 = arith.truncf %3 : vector<10x32xf32> to vector<10x32xbf16>
    %c0_16 = arith.constant 0 : index
    %c0_17 = arith.constant 0 : index
    %19 = vector.load %arg5[%c0_16, %c0_17] : memref<1x32xf32, #tpu.memory_space<vmem>>, vector<1x32xf32>
    %c0_18 = arith.constant 0 : index
    %c0_19 = arith.constant 0 : index
    %20 = vector.load %arg6[%c0_18, %c0_19] : memref<1x32xf32, #tpu.memory_space<vmem>>, vector<1x32xf32>
    %cst_20 = arith.constant dense<0.000000e+00> : vector<8xf32>
    %21 = vector.multi_reduction <add>, %1, %cst_20 [1] : vector<8x32xf32> to vector<8xf32>
    %22 = vector.shape_cast %21 : vector<8xf32> to vector<8x1xf32>
    %cst_21 = arith.constant 3.200000e+01 : f32
    %23 = vector.broadcast %cst_21 : f32 to vector<8x1xf32>
    %24 = arith.divf %22, %23 : vector<8x1xf32>
    %25 = vector.broadcast %24 : vector<8x1xf32> to vector<8x32xf32>
    %26 = arith.subf %1, %25 : vector<8x32xf32>
    %27 = arith.mulf %26, %26 : vector<8x32xf32>
    %cst_22 = arith.constant dense<0.000000e+00> : vector<8xf32>
    %28 = vector.multi_reduction <add>, %27, %cst_22 [1] : vector<8x32xf32> to vector<8xf32>
    %29 = vector.shape_cast %28 : vector<8xf32> to vector<8x1xf32>
    %cst_23 = arith.constant 0.0322580636 : f32
    %30 = vector.broadcast %cst_23 : f32 to vector<8x1xf32>
    %31 = arith.mulf %29, %30 : vector<8x1xf32>
    %32 = math.sqrt %31 : vector<8x1xf32>
    %cst_24 = arith.constant 9.99999997E-7 : f32
    %33 = vector.broadcast %cst_24 : f32 to vector<8x1xf32>
    %34 = arith.addf %32, %33 : vector<8x1xf32>
    %cst_25 = arith.constant 1.000000e+00 : f32
    %35 = vector.broadcast %cst_25 : f32 to vector<8x1xf32>
    %36 = arith.divf %35, %34 : vector<8x1xf32>
    %37 = vector.broadcast %36 : vector<8x1xf32> to vector<8x32xf32>
    %38 = arith.mulf %26, %37 : vector<8x32xf32>
    %39 = vector.broadcast %19 : vector<1x32xf32> to vector<8x32xf32>
    %40 = arith.mulf %39, %38 : vector<8x32xf32>
    %41 = vector.broadcast %20 : vector<1x32xf32> to vector<8x32xf32>
    %42 = arith.addf %40, %41 : vector<8x32xf32>
    %43 = arith.truncf %42 : vector<8x32xf32> to vector<8x32xbf16>
    %c0_26 = arith.constant 0 : index
    %c0_27 = arith.constant 0 : index
    %44 = vector.load %arg7[%c0_26, %c0_27] : memref<32x96xbf16, #tpu.memory_space<vmem>>, vector<32x96xbf16>
    %cst_28 = arith.constant dense<0.000000e+00> : vector<8x96xf32>
    %45 = tpu.matmul %43, %44, %cst_28 {dimension_numbers = #tpu.dot_dimension_numbers<[1], [0], [0], [1], [0, 0, 1, 1], [], []>} : vector<8x32xbf16>, vector<32x96xbf16>, vector<8x96xf32> -> vector<8x96xf32>
    %c0_29 = arith.constant 0 : index
    %c0_30 = arith.constant 0 : index
    %46 = vector.load %arg8[%c0_29, %c0_30] : memref<1x96xf32, #tpu.memory_space<vmem>>, vector<1x96xf32>
    %47 = vector.broadcast %46 : vector<1x96xf32> to vector<8x96xf32>
    %48 = arith.addf %45, %47 : vector<8x96xf32>
    %49 = arith.truncf %48 : vector<8x96xf32> to vector<8x96xbf16>
    %50 = vector.extract_strided_slice %49 {offsets = [0, 0], sizes = [8, 32], strides = [1, 1]} : vector<8x96xbf16> to vector<8x32xbf16>
    %51 = vector.extract_strided_slice %49 {offsets = [0, 32], sizes = [8, 32], strides = [1, 1]} : vector<8x96xbf16> to vector<8x32xbf16>
    %52 = vector.extract_strided_slice %49 {offsets = [0, 64], sizes = [8, 32], strides = [1, 1]} : vector<8x96xbf16> to vector<8x32xbf16>
    %53 = vector.extract_strided_slice %50 {offsets = [0, 0], sizes = [8, 8], strides = [1, 1]} : vector<8x32xbf16> to vector<8x8xbf16>
    %54 = vector.extract_strided_slice %51 {offsets = [0, 0], sizes = [8, 8], strides = [1, 1]} : vector<8x32xbf16> to vector<8x8xbf16>
    %cst_31 = arith.constant dense<0.000000e+00> : vector<8x8xf32>
    %55 = tpu.matmul %53, %54, %cst_31 {dimension_numbers = #tpu.dot_dimension_numbers<[1], [1], [0], [0], [0, 0, 1, 0], [], []>} : vector<8x8xbf16>, vector<8x8xbf16>, vector<8x8xf32> -> vector<8x8xf32>
    %cst_32 = arith.constant 0.353553385 : f32
    %56 = vector.broadcast %cst_32 : f32 to vector<8x8xf32>
    %57 = arith.mulf %55, %56 : vector<8x8xf32>
    %58 = arith.addf %57, %10 : vector<8x8xf32>
    %cst_33 = arith.constant dense<0xFF800000> : vector<8xf32>
    %59 = vector.multi_reduction <maximumf>, %58, %cst_33 [1] : vector<8x8xf32> to vector<8xf32>
    %60 = vector.shape_cast %59 : vector<8xf32> to vector<8x1xf32>
    %61 = vector.broadcast %60 : vector<8x1xf32> to vector<8x8xf32>
    %62 = arith.subf %58, %61 : vector<8x8xf32>
    %63 = math.exp %62 : vector<8x8xf32>
    %cst_34 = arith.constant dense<0.000000e+00> : vector<8xf32>
    %64 = vector.multi_reduction <add>, %63, %cst_34 [1] : vector<8x8xf32> to vector<8xf32>
    %65 = vector.shape_cast %64 : vector<8xf32> to vector<8x1xf32>
    %66 = tpu.reciprocal %65 {approx = true} : vector<8x1xf32> -> vector<8x1xf32>
    %67 = vector.broadcast %66 : vector<8x1xf32> to vector<8x8xf32>
    %68 = arith.mulf %63, %67 : vector<8x8xf32>
    %69 = arith.truncf %68 : vector<8x8xf32> to vector<8x8xbf16>
    %70 = vector.extract_strided_slice %52 {offsets = [0, 0], sizes = [8, 8], strides = [1, 1]} : vector<8x32xbf16> to vector<8x8xbf16>
    %cst_35 = arith.constant dense<0.000000e+00> : vector<8x8xf32>
    %71 = tpu.matmul %69, %70, %cst_35 {dimension_numbers = #tpu.dot_dimension_numbers<[1], [0], [0], [1], [0, 0, 1, 1], [], []>} : vector<8x8xbf16>, vector<8x8xbf16>, vector<8x8xf32> -> vector<8x8xf32>
    %72 = vector.extract_strided_slice %50 {offsets = [0, 8], sizes = [8, 8], strides = [1, 1]} : vector<8x32xbf16> to vector<8x8xbf16>
    %73 = vector.extract_strided_slice %51 {offsets = [0, 8], sizes = [8, 8], strides = [1, 1]} : vector<8x32xbf16> to vector<8x8xbf16>
    %cst_36 = arith.constant dense<0.000000e+00> : vector<8x8xf32>
    %74 = tpu.matmul %72, %73, %cst_36 {dimension_numbers = #tpu.dot_dimension_numbers<[1], [1], [0], [0], [0, 0, 1, 0], [], []>} : vector<8x8xbf16>, vector<8x8xbf16>, vector<8x8xf32> -> vector<8x8xf32>
    %cst_37 = arith.constant 0.353553385 : f32
    %75 = vector.broadcast %cst_37 : f32 to vector<8x8xf32>
    %76 = arith.mulf %74, %75 : vector<8x8xf32>
    %77 = arith.addf %76, %10 : vector<8x8xf32>
    %cst_38 = arith.constant dense<0xFF800000> : vector<8xf32>
    %78 = vector.multi_reduction <maximumf>, %77, %cst_38 [1] : vector<8x8xf32> to vector<8xf32>
    %79 = vector.shape_cast %78 : vector<8xf32> to vector<8x1xf32>
    %80 = vector.broadcast %79 : vector<8x1xf32> to vector<8x8xf32>
    %81 = arith.subf %77, %80 : vector<8x8xf32>
    %82 = math.exp %81 : vector<8x8xf32>
    %cst_39 = arith.constant dense<0.000000e+00> : vector<8xf32>
    %83 = vector.multi_reduction <add>, %82, %cst_39 [1] : vector<8x8xf32> to vector<8xf32>
    %84 = vector.shape_cast %83 : vector<8xf32> to vector<8x1xf32>
    %85 = tpu.reciprocal %84 {approx = true} : vector<8x1xf32> -> vector<8x1xf32>
    %86 = vector.broadcast %85 : vector<8x1xf32> to vector<8x8xf32>
    %87 = arith.mulf %82, %86 : vector<8x8xf32>
    %88 = arith.truncf %87 : vector<8x8xf32> to vector<8x8xbf16>
    %89 = vector.extract_strided_slice %52 {offsets = [0, 8], sizes = [8, 8], strides = [1, 1]} : vector<8x32xbf16> to vector<8x8xbf16>
    %cst_40 = arith.constant dense<0.000000e+00> : vector<8x8xf32>
    %90 = tpu.matmul %88, %89, %cst_40 {dimension_numbers = #tpu.dot_dimension_numbers<[1], [0], [0], [1], [0, 0, 1, 1], [], []>} : vector<8x8xbf16>, vector<8x8xbf16>, vector<8x8xf32> -> vector<8x8xf32>
    %91 = vector.extract_strided_slice %50 {offsets = [0, 16], sizes = [8, 8], strides = [1, 1]} : vector<8x32xbf16> to vector<8x8xbf16>
    %92 = vector.extract_strided_slice %51 {offsets = [0, 16], sizes = [8, 8], strides = [1, 1]} : vector<8x32xbf16> to vector<8x8xbf16>
    %cst_41 = arith.constant dense<0.000000e+00> : vector<8x8xf32>
    %93 = tpu.matmul %91, %92, %cst_41 {dimension_numbers = #tpu.dot_dimension_numbers<[1], [1], [0], [0], [0, 0, 1, 0], [], []>} : vector<8x8xbf16>, vector<8x8xbf16>, vector<8x8xf32> -> vector<8x8xf32>
    %cst_42 = arith.constant 0.353553385 : f32
    %94 = vector.broadcast %cst_42 : f32 to vector<8x8xf32>
    %95 = arith.mulf %93, %94 : vector<8x8xf32>
    %96 = arith.addf %95, %10 : vector<8x8xf32>
    %cst_43 = arith.constant dense<0xFF800000> : vector<8xf32>
    %97 = vector.multi_reduction <maximumf>, %96, %cst_43 [1] : vector<8x8xf32> to vector<8xf32>
    %98 = vector.shape_cast %97 : vector<8xf32> to vector<8x1xf32>
    %99 = vector.broadcast %98 : vector<8x1xf32> to vector<8x8xf32>
    %100 = arith.subf %96, %99 : vector<8x8xf32>
    %101 = math.exp %100 : vector<8x8xf32>
    %cst_44 = arith.constant dense<0.000000e+00> : vector<8xf32>
    %102 = vector.multi_reduction <add>, %101, %cst_44 [1] : vector<8x8xf32> to vector<8xf32>
    %103 = vector.shape_cast %102 : vector<8xf32> to vector<8x1xf32>
    %104 = tpu.reciprocal %103 {approx = true} : vector<8x1xf32> -> vector<8x1xf32>
    %105 = vector.broadcast %104 : vector<8x1xf32> to vector<8x8xf32>
    %106 = arith.mulf %101, %105 : vector<8x8xf32>
    %107 = arith.truncf %106 : vector<8x8xf32> to vector<8x8xbf16>
    %108 = vector.extract_strided_slice %52 {offsets = [0, 16], sizes = [8, 8], strides = [1, 1]} : vector<8x32xbf16> to vector<8x8xbf16>
    %cst_45 = arith.constant dense<0.000000e+00> : vector<8x8xf32>
    %109 = tpu.matmul %107, %108, %cst_45 {dimension_numbers = #tpu.dot_dimension_numbers<[1], [0], [0], [1], [0, 0, 1, 1], [], []>} : vector<8x8xbf16>, vector<8x8xbf16>, vector<8x8xf32> -> vector<8x8xf32>
    %110 = vector.extract_strided_slice %50 {offsets = [0, 24], sizes = [8, 8], strides = [1, 1]} : vector<8x32xbf16> to vector<8x8xbf16>
    %111 = vector.extract_strided_slice %51 {offsets = [0, 24], sizes = [8, 8], strides = [1, 1]} : vector<8x32xbf16> to vector<8x8xbf16>
    %cst_46 = arith.constant dense<0.000000e+00> : vector<8x8xf32>
    %112 = tpu.matmul %110, %111, %cst_46 {dimension_numbers = #tpu.dot_dimension_numbers<[1], [1], [0], [0], [0, 0, 1, 0], [], []>} : vector<8x8xbf16>, vector<8x8xbf16>, vector<8x8xf32> -> vector<8x8xf32>
    %cst_47 = arith.constant 0.353553385 : f32
    %113 = vector.broadcast %cst_47 : f32 to vector<8x8xf32>
    %114 = arith.mulf %112, %113 : vector<8x8xf32>
    %115 = arith.addf %114, %10 : vector<8x8xf32>
    %cst_48 = arith.constant dense<0xFF800000> : vector<8xf32>
    %116 = vector.multi_reduction <maximumf>, %115, %cst_48 [1] : vector<8x8xf32> to vector<8xf32>
    %117 = vector.shape_cast %116 : vector<8xf32> to vector<8x1xf32>
    %118 = vector.broadcast %117 : vector<8x1xf32> to vector<8x8xf32>
    %119 = arith.subf %115, %118 : vector<8x8xf32>
    %120 = math.exp %119 : vector<8x8xf32>
    %cst_49 = arith.constant dense<0.000000e+00> : vector<8xf32>
    %121 = vector.multi_reduction <add>, %120, %cst_49 [1] : vector<8x8xf32> to vector<8xf32>
    %122 = vector.shape_cast %121 : vector<8xf32> to vector<8x1xf32>
    %123 = tpu.reciprocal %122 {approx = true} : vector<8x1xf32> -> vector<8x1xf32>
    %124 = vector.broadcast %123 : vector<8x1xf32> to vector<8x8xf32>
    %125 = arith.mulf %120, %124 : vector<8x8xf32>
    %126 = arith.truncf %125 : vector<8x8xf32> to vector<8x8xbf16>
    %127 = vector.extract_strided_slice %52 {offsets = [0, 24], sizes = [8, 8], strides = [1, 1]} : vector<8x32xbf16> to vector<8x8xbf16>
    %cst_50 = arith.constant dense<0.000000e+00> : vector<8x8xf32>
    %128 = tpu.matmul %126, %127, %cst_50 {dimension_numbers = #tpu.dot_dimension_numbers<[1], [0], [0], [1], [0, 0, 1, 1], [], []>} : vector<8x8xbf16>, vector<8x8xbf16>, vector<8x8xf32> -> vector<8x8xf32>
    %129 = tpu.concatenate %71, %90, %109, %128 in 1 : vector<8x8xf32>, vector<8x8xf32>, vector<8x8xf32>, vector<8x8xf32> -> vector<8x32xf32>
    %130 = arith.truncf %129 : vector<8x32xf32> to vector<8x32xbf16>
    %c0_51 = arith.constant 0 : index
    %c0_52 = arith.constant 0 : index
    %131 = vector.load %arg9[%c0_51, %c0_52] : memref<32x32xbf16, #tpu.memory_space<vmem>>, vector<32x32xbf16>
    %cst_53 = arith.constant dense<0.000000e+00> : vector<8x32xf32>
    %132 = tpu.matmul %130, %131, %cst_53 {dimension_numbers = #tpu.dot_dimension_numbers<[1], [0], [0], [1], [0, 0, 1, 1], [], []>} : vector<8x32xbf16>, vector<32x32xbf16>, vector<8x32xf32> -> vector<8x32xf32>
    %c0_54 = arith.constant 0 : index
    %c0_55 = arith.constant 0 : index
    %133 = vector.load %arg10[%c0_54, %c0_55] : memref<1x32xf32, #tpu.memory_space<vmem>>, vector<1x32xf32>
    %134 = vector.broadcast %133 : vector<1x32xf32> to vector<8x32xf32>
    %135 = arith.addf %132, %134 : vector<8x32xf32>
    %136 = arith.addf %1, %135 : vector<8x32xf32>
    %c0_56 = arith.constant 0 : index
    %c0_57 = arith.constant 0 : index
    %137 = vector.load %arg11[%c0_56, %c0_57] : memref<1x32xf32, #tpu.memory_space<vmem>>, vector<1x32xf32>
    %c0_58 = arith.constant 0 : index
    %c0_59 = arith.constant 0 : index
    %138 = vector.load %arg12[%c0_58, %c0_59] : memref<1x32xf32, #tpu.memory_space<vmem>>, vector<1x32xf32>
    %cst_60 = arith.constant dense<0.000000e+00> : vector<8xf32>
    %139 = vector.multi_reduction <add>, %136, %cst_60 [1] : vector<8x32xf32> to vector<8xf32>
    %140 = vector.shape_cast %139 : vector<8xf32> to vector<8x1xf32>
    %cst_61 = arith.constant 3.200000e+01 : f32
    %141 = vector.broadcast %cst_61 : f32 to vector<8x1xf32>
    %142 = arith.divf %140, %141 : vector<8x1xf32>
    %143 = vector.broadcast %142 : vector<8x1xf32> to vector<8x32xf32>
    %144 = arith.subf %136, %143 : vector<8x32xf32>
    %145 = arith.mulf %144, %144 : vector<8x32xf32>
    %cst_62 = arith.constant dense<0.000000e+00> : vector<8xf32>
    %146 = vector.multi_reduction <add>, %145, %cst_62 [1] : vector<8x32xf32> to vector<8xf32>
    %147 = vector.shape_cast %146 : vector<8xf32> to vector<8x1xf32>
    %cst_63 = arith.constant 0.0322580636 : f32
    %148 = vector.broadcast %cst_63 : f32 to vector<8x1xf32>
    %149 = arith.mulf %147, %148 : vector<8x1xf32>
    %150 = math.sqrt %149 : vector<8x1xf32>
    %cst_64 = arith.constant 9.99999997E-7 : f32
    %151 = vector.broadcast %cst_64 : f32 to vector<8x1xf32>
    %152 = arith.addf %150, %151 : vector<8x1xf32>
    %cst_65 = arith.constant 1.000000e+00 : f32
    %153 = vector.broadcast %cst_65 : f32 to vector<8x1xf32>
    %154 = arith.divf %153, %152 : vector<8x1xf32>
    %155 = vector.broadcast %154 : vector<8x1xf32> to vector<8x32xf32>
    %156 = arith.mulf %144, %155 : vector<8x32xf32>
    %157 = vector.broadcast %137 : vector<1x32xf32> to vector<8x32xf32>
    %158 = arith.mulf %157, %156 : vector<8x32xf32>
    %159 = vector.broadcast %138 : vector<1x32xf32> to vector<8x32xf32>
    %160 = arith.addf %158, %159 : vector<8x32xf32>
    %161 = arith.truncf %160 : vector<8x32xf32> to vector<8x32xbf16>
    %c0_66 = arith.constant 0 : index
    %c0_67 = arith.constant 0 : index
    %162 = vector.load %arg13[%c0_66, %c0_67] : memref<32x32xbf16, #tpu.memory_space<vmem>>, vector<32x32xbf16>
    %cst_68 = arith.constant dense<0.000000e+00> : vector<8x32xf32>
    %163 = tpu.matmul %161, %162, %cst_68 {dimension_numbers = #tpu.dot_dimension_numbers<[1], [0], [0], [1], [0, 0, 1, 1], [], []>} : vector<8x32xbf16>, vector<32x32xbf16>, vector<8x32xf32> -> vector<8x32xf32>
    %c0_69 = arith.constant 0 : index
    %c0_70 = arith.constant 0 : index
    %164 = vector.load %arg14[%c0_69, %c0_70] : memref<1x32xf32, #tpu.memory_space<vmem>>, vector<1x32xf32>
    %165 = vector.broadcast %164 : vector<1x32xf32> to vector<8x32xf32>
    %166 = arith.addf %163, %165 : vector<8x32xf32>
    %167 = arith.truncf %166 : vector<8x32xf32> to vector<8x32xbf16>
    %c0_71 = arith.constant 0 : index
    %c0_72 = arith.constant 0 : index
    %168 = vector.load %arg15[%c0_71, %c0_72] : memref<32x64xbf16, #tpu.memory_space<vmem>>, vector<32x64xbf16>
    %cst_73 = arith.constant dense<0.000000e+00> : vector<10x64xf32>
    %169 = tpu.matmul %18, %168, %cst_73 {dimension_numbers = #tpu.dot_dimension_numbers<[1], [0], [0], [1], [0, 0, 1, 1], [], []>} : vector<10x32xbf16>, vector<32x64xbf16>, vector<10x64xf32> -> vector<10x64xf32>
    %c0_74 = arith.constant 0 : index
    %c0_75 = arith.constant 0 : index
    %170 = vector.load %arg16[%c0_74, %c0_75] : memref<1x64xf32, #tpu.memory_space<vmem>>, vector<1x64xf32>
    %171 = vector.broadcast %170 : vector<1x64xf32> to vector<10x64xf32>
    %172 = arith.addf %169, %171 : vector<10x64xf32>
    %173 = arith.truncf %172 : vector<10x64xf32> to vector<10x64xbf16>
    %174 = vector.extract_strided_slice %173 {offsets = [0, 0], sizes = [10, 32], strides = [1, 1]} : vector<10x64xbf16> to vector<10x32xbf16>
    %175 = vector.extract_strided_slice %173 {offsets = [0, 32], sizes = [10, 32], strides = [1, 1]} : vector<10x64xbf16> to vector<10x32xbf16>
    %176 = vector.extract_strided_slice %167 {offsets = [0, 0], sizes = [8, 8], strides = [1, 1]} : vector<8x32xbf16> to vector<8x8xbf16>
    %177 = vector.extract_strided_slice %174 {offsets = [0, 0], sizes = [10, 8], strides = [1, 1]} : vector<10x32xbf16> to vector<10x8xbf16>
    %cst_76 = arith.constant dense<0.000000e+00> : vector<8x10xf32>
    %178 = tpu.matmul %176, %177, %cst_76 {dimension_numbers = #tpu.dot_dimension_numbers<[1], [1], [0], [0], [0, 0, 1, 0], [], []>} : vector<8x8xbf16>, vector<10x8xbf16>, vector<8x10xf32> -> vector<8x10xf32>
    %cst_77 = arith.constant 0.353553385 : f32
    %179 = vector.broadcast %cst_77 : f32 to vector<8x10xf32>
    %180 = arith.mulf %178, %179 : vector<8x10xf32>
    %181 = vector.broadcast %17 : vector<1x10xf32> to vector<8x10xf32>
    %182 = arith.addf %180, %181 : vector<8x10xf32>
    %cst_78 = arith.constant dense<0xFF800000> : vector<8xf32>
    %183 = vector.multi_reduction <maximumf>, %182, %cst_78 [1] : vector<8x10xf32> to vector<8xf32>
    %184 = vector.shape_cast %183 : vector<8xf32> to vector<8x1xf32>
    %185 = vector.broadcast %184 : vector<8x1xf32> to vector<8x10xf32>
    %186 = arith.subf %182, %185 : vector<8x10xf32>
    %187 = math.exp %186 : vector<8x10xf32>
    %cst_79 = arith.constant dense<0.000000e+00> : vector<8xf32>
    %188 = vector.multi_reduction <add>, %187, %cst_79 [1] : vector<8x10xf32> to vector<8xf32>
    %189 = vector.shape_cast %188 : vector<8xf32> to vector<8x1xf32>
    %190 = tpu.reciprocal %189 {approx = true} : vector<8x1xf32> -> vector<8x1xf32>
    %191 = vector.broadcast %190 : vector<8x1xf32> to vector<8x10xf32>
    %192 = arith.mulf %187, %191 : vector<8x10xf32>
    %193 = arith.truncf %192 : vector<8x10xf32> to vector<8x10xbf16>
    %194 = vector.extract_strided_slice %175 {offsets = [0, 0], sizes = [10, 8], strides = [1, 1]} : vector<10x32xbf16> to vector<10x8xbf16>
    %cst_80 = arith.constant dense<0.000000e+00> : vector<8x8xf32>
    %195 = tpu.matmul %193, %194, %cst_80 {dimension_numbers = #tpu.dot_dimension_numbers<[1], [0], [0], [1], [0, 0, 1, 1], [], []>} : vector<8x10xbf16>, vector<10x8xbf16>, vector<8x8xf32> -> vector<8x8xf32>
    %196 = vector.extract_strided_slice %167 {offsets = [0, 8], sizes = [8, 8], strides = [1, 1]} : vector<8x32xbf16> to vector<8x8xbf16>
    %197 = vector.extract_strided_slice %174 {offsets = [0, 8], sizes = [10, 8], strides = [1, 1]} : vector<10x32xbf16> to vector<10x8xbf16>
    %cst_81 = arith.constant dense<0.000000e+00> : vector<8x10xf32>
    %198 = tpu.matmul %196, %197, %cst_81 {dimension_numbers = #tpu.dot_dimension_numbers<[1], [1], [0], [0], [0, 0, 1, 0], [], []>} : vector<8x8xbf16>, vector<10x8xbf16>, vector<8x10xf32> -> vector<8x10xf32>
    %cst_82 = arith.constant 0.353553385 : f32
    %199 = vector.broadcast %cst_82 : f32 to vector<8x10xf32>
    %200 = arith.mulf %198, %199 : vector<8x10xf32>
    %201 = vector.broadcast %17 : vector<1x10xf32> to vector<8x10xf32>
    %202 = arith.addf %200, %201 : vector<8x10xf32>
    %cst_83 = arith.constant dense<0xFF800000> : vector<8xf32>
    %203 = vector.multi_reduction <maximumf>, %202, %cst_83 [1] : vector<8x10xf32> to vector<8xf32>
    %204 = vector.shape_cast %203 : vector<8xf32> to vector<8x1xf32>
    %205 = vector.broadcast %204 : vector<8x1xf32> to vector<8x10xf32>
    %206 = arith.subf %202, %205 : vector<8x10xf32>
    %207 = math.exp %206 : vector<8x10xf32>
    %cst_84 = arith.constant dense<0.000000e+00> : vector<8xf32>
    %208 = vector.multi_reduction <add>, %207, %cst_84 [1] : vector<8x10xf32> to vector<8xf32>
    %209 = vector.shape_cast %208 : vector<8xf32> to vector<8x1xf32>
    %210 = tpu.reciprocal %209 {approx = true} : vector<8x1xf32> -> vector<8x1xf32>
    %211 = vector.broadcast %210 : vector<8x1xf32> to vector<8x10xf32>
    %212 = arith.mulf %207, %211 : vector<8x10xf32>
    %213 = arith.truncf %212 : vector<8x10xf32> to vector<8x10xbf16>
    %214 = vector.extract_strided_slice %175 {offsets = [0, 8], sizes = [10, 8], strides = [1, 1]} : vector<10x32xbf16> to vector<10x8xbf16>
    %cst_85 = arith.constant dense<0.000000e+00> : vector<8x8xf32>
    %215 = tpu.matmul %213, %214, %cst_85 {dimension_numbers = #tpu.dot_dimension_numbers<[1], [0], [0], [1], [0, 0, 1, 1], [], []>} : vector<8x10xbf16>, vector<10x8xbf16>, vector<8x8xf32> -> vector<8x8xf32>
    %216 = vector.extract_strided_slice %167 {offsets = [0, 16], sizes = [8, 8], strides = [1, 1]} : vector<8x32xbf16> to vector<8x8xbf16>
    %217 = vector.extract_strided_slice %174 {offsets = [0, 16], sizes = [10, 8], strides = [1, 1]} : vector<10x32xbf16> to vector<10x8xbf16>
    %cst_86 = arith.constant dense<0.000000e+00> : vector<8x10xf32>
    %218 = tpu.matmul %216, %217, %cst_86 {dimension_numbers = #tpu.dot_dimension_numbers<[1], [1], [0], [0], [0, 0, 1, 0], [], []>} : vector<8x8xbf16>, vector<10x8xbf16>, vector<8x10xf32> -> vector<8x10xf32>
    %cst_87 = arith.constant 0.353553385 : f32
    %219 = vector.broadcast %cst_87 : f32 to vector<8x10xf32>
    %220 = arith.mulf %218, %219 : vector<8x10xf32>
    %221 = vector.broadcast %17 : vector<1x10xf32> to vector<8x10xf32>
    %222 = arith.addf %220, %221 : vector<8x10xf32>
    %cst_88 = arith.constant dense<0xFF800000> : vector<8xf32>
    %223 = vector.multi_reduction <maximumf>, %222, %cst_88 [1] : vector<8x10xf32> to vector<8xf32>
    %224 = vector.shape_cast %223 : vector<8xf32> to vector<8x1xf32>
    %225 = vector.broadcast %224 : vector<8x1xf32> to vector<8x10xf32>
    %226 = arith.subf %222, %225 : vector<8x10xf32>
    %227 = math.exp %226 : vector<8x10xf32>
    %cst_89 = arith.constant dense<0.000000e+00> : vector<8xf32>
    %228 = vector.multi_reduction <add>, %227, %cst_89 [1] : vector<8x10xf32> to vector<8xf32>
    %229 = vector.shape_cast %228 : vector<8xf32> to vector<8x1xf32>
    %230 = tpu.reciprocal %229 {approx = true} : vector<8x1xf32> -> vector<8x1xf32>
    %231 = vector.broadcast %230 : vector<8x1xf32> to vector<8x10xf32>
    %232 = arith.mulf %227, %231 : vector<8x10xf32>
    %233 = arith.truncf %232 : vector<8x10xf32> to vector<8x10xbf16>
    %234 = vector.extract_strided_slice %175 {offsets = [0, 16], sizes = [10, 8], strides = [1, 1]} : vector<10x32xbf16> to vector<10x8xbf16>
    %cst_90 = arith.constant dense<0.000000e+00> : vector<8x8xf32>
    %235 = tpu.matmul %233, %234, %cst_90 {dimension_numbers = #tpu.dot_dimension_numbers<[1], [0], [0], [1], [0, 0, 1, 1], [], []>} : vector<8x10xbf16>, vector<10x8xbf16>, vector<8x8xf32> -> vector<8x8xf32>
    %236 = vector.extract_strided_slice %167 {offsets = [0, 24], sizes = [8, 8], strides = [1, 1]} : vector<8x32xbf16> to vector<8x8xbf16>
    %237 = vector.extract_strided_slice %174 {offsets = [0, 24], sizes = [10, 8], strides = [1, 1]} : vector<10x32xbf16> to vector<10x8xbf16>
    %cst_91 = arith.constant dense<0.000000e+00> : vector<8x10xf32>
    %238 = tpu.matmul %236, %237, %cst_91 {dimension_numbers = #tpu.dot_dimension_numbers<[1], [1], [0], [0], [0, 0, 1, 0], [], []>} : vector<8x8xbf16>, vector<10x8xbf16>, vector<8x10xf32> -> vector<8x10xf32>
    %cst_92 = arith.constant 0.353553385 : f32
    %239 = vector.broadcast %cst_92 : f32 to vector<8x10xf32>
    %240 = arith.mulf %238, %239 : vector<8x10xf32>
    %241 = vector.broadcast %17 : vector<1x10xf32> to vector<8x10xf32>
    %242 = arith.addf %240, %241 : vector<8x10xf32>
    %cst_93 = arith.constant dense<0xFF800000> : vector<8xf32>
    %243 = vector.multi_reduction <maximumf>, %242, %cst_93 [1] : vector<8x10xf32> to vector<8xf32>
    %244 = vector.shape_cast %243 : vector<8xf32> to vector<8x1xf32>
    %245 = vector.broadcast %244 : vector<8x1xf32> to vector<8x10xf32>
    %246 = arith.subf %242, %245 : vector<8x10xf32>
    %247 = math.exp %246 : vector<8x10xf32>
    %cst_94 = arith.constant dense<0.000000e+00> : vector<8xf32>
    %248 = vector.multi_reduction <add>, %247, %cst_94 [1] : vector<8x10xf32> to vector<8xf32>
    %249 = vector.shape_cast %248 : vector<8xf32> to vector<8x1xf32>
    %250 = tpu.reciprocal %249 {approx = true} : vector<8x1xf32> -> vector<8x1xf32>
    %251 = vector.broadcast %250 : vector<8x1xf32> to vector<8x10xf32>
    %252 = arith.mulf %247, %251 : vector<8x10xf32>
    %253 = arith.truncf %252 : vector<8x10xf32> to vector<8x10xbf16>
    %254 = vector.extract_strided_slice %175 {offsets = [0, 24], sizes = [10, 8], strides = [1, 1]} : vector<10x32xbf16> to vector<10x8xbf16>
    %cst_95 = arith.constant dense<0.000000e+00> : vector<8x8xf32>
    %255 = tpu.matmul %253, %254, %cst_95 {dimension_numbers = #tpu.dot_dimension_numbers<[1], [0], [0], [1], [0, 0, 1, 1], [], []>} : vector<8x10xbf16>, vector<10x8xbf16>, vector<8x8xf32> -> vector<8x8xf32>
    %256 = tpu.concatenate %195, %215, %235, %255 in 1 : vector<8x8xf32>, vector<8x8xf32>, vector<8x8xf32>, vector<8x8xf32> -> vector<8x32xf32>
    %257 = arith.truncf %256 : vector<8x32xf32> to vector<8x32xbf16>
    %c0_96 = arith.constant 0 : index
    %c0_97 = arith.constant 0 : index
    %258 = vector.load %arg17[%c0_96, %c0_97] : memref<32x32xbf16, #tpu.memory_space<vmem>>, vector<32x32xbf16>
    %cst_98 = arith.constant dense<0.000000e+00> : vector<8x32xf32>
    %259 = tpu.matmul %257, %258, %cst_98 {dimension_numbers = #tpu.dot_dimension_numbers<[1], [0], [0], [1], [0, 0, 1, 1], [], []>} : vector<8x32xbf16>, vector<32x32xbf16>, vector<8x32xf32> -> vector<8x32xf32>
    %c0_99 = arith.constant 0 : index
    %c0_100 = arith.constant 0 : index
    %260 = vector.load %arg18[%c0_99, %c0_100] : memref<1x32xf32, #tpu.memory_space<vmem>>, vector<1x32xf32>
    %261 = vector.broadcast %260 : vector<1x32xf32> to vector<8x32xf32>
    %262 = arith.addf %259, %261 : vector<8x32xf32>
    %263 = arith.addf %136, %262 : vector<8x32xf32>
    %c0_101 = arith.constant 0 : index
    %c0_102 = arith.constant 0 : index
    %264 = vector.load %arg19[%c0_101, %c0_102] : memref<1x32xf32, #tpu.memory_space<vmem>>, vector<1x32xf32>
    %c0_103 = arith.constant 0 : index
    %c0_104 = arith.constant 0 : index
    %265 = vector.load %arg20[%c0_103, %c0_104] : memref<1x32xf32, #tpu.memory_space<vmem>>, vector<1x32xf32>
    %cst_105 = arith.constant dense<0.000000e+00> : vector<8xf32>
    %266 = vector.multi_reduction <add>, %263, %cst_105 [1] : vector<8x32xf32> to vector<8xf32>
    %267 = vector.shape_cast %266 : vector<8xf32> to vector<8x1xf32>
    %cst_106 = arith.constant 3.200000e+01 : f32
    %268 = vector.broadcast %cst_106 : f32 to vector<8x1xf32>
    %269 = arith.divf %267, %268 : vector<8x1xf32>
    %270 = vector.broadcast %269 : vector<8x1xf32> to vector<8x32xf32>
    %271 = arith.subf %263, %270 : vector<8x32xf32>
    %272 = arith.mulf %271, %271 : vector<8x32xf32>
    %cst_107 = arith.constant dense<0.000000e+00> : vector<8xf32>
    %273 = vector.multi_reduction <add>, %272, %cst_107 [1] : vector<8x32xf32> to vector<8xf32>
    %274 = vector.shape_cast %273 : vector<8xf32> to vector<8x1xf32>
    %cst_108 = arith.constant 0.0322580636 : f32
    %275 = vector.broadcast %cst_108 : f32 to vector<8x1xf32>
    %276 = arith.mulf %274, %275 : vector<8x1xf32>
    %277 = math.sqrt %276 : vector<8x1xf32>
    %cst_109 = arith.constant 9.99999997E-7 : f32
    %278 = vector.broadcast %cst_109 : f32 to vector<8x1xf32>
    %279 = arith.addf %277, %278 : vector<8x1xf32>
    %cst_110 = arith.constant 1.000000e+00 : f32
    %280 = vector.broadcast %cst_110 : f32 to vector<8x1xf32>
    %281 = arith.divf %280, %279 : vector<8x1xf32>
    %282 = vector.broadcast %281 : vector<8x1xf32> to vector<8x32xf32>
    %283 = arith.mulf %271, %282 : vector<8x32xf32>
    %284 = vector.broadcast %264 : vector<1x32xf32> to vector<8x32xf32>
    %285 = arith.mulf %284, %283 : vector<8x32xf32>
    %286 = vector.broadcast %265 : vector<1x32xf32> to vector<8x32xf32>
    %287 = arith.addf %285, %286 : vector<8x32xf32>
    %288 = arith.truncf %287 : vector<8x32xf32> to vector<8x32xbf16>
    %c0_111 = arith.constant 0 : index
    %c0_112 = arith.constant 0 : index
    %289 = vector.load %arg21[%c0_111, %c0_112] : memref<32x64xbf16, #tpu.memory_space<vmem>>, vector<32x64xbf16>
    %cst_113 = arith.constant dense<0.000000e+00> : vector<8x64xf32>
    %290 = tpu.matmul %288, %289, %cst_113 {dimension_numbers = #tpu.dot_dimension_numbers<[1], [0], [0], [1], [0, 0, 1, 1], [], []>} : vector<8x32xbf16>, vector<32x64xbf16>, vector<8x64xf32> -> vector<8x64xf32>
    %c0_114 = arith.constant 0 : index
    %c0_115 = arith.constant 0 : index
    %291 = vector.load %arg22[%c0_114, %c0_115] : memref<1x64xf32, #tpu.memory_space<vmem>>, vector<1x64xf32>
    %292 = vector.broadcast %291 : vector<1x64xf32> to vector<8x64xf32>
    %293 = arith.addf %290, %292 : vector<8x64xf32>
    %cst_116 = arith.constant 0.000000e+00 : f32
    %294 = vector.broadcast %cst_116 : f32 to vector<8x64xf32>
    %295 = arith.maximumf %293, %294 : vector<8x64xf32>
    %296 = arith.truncf %295 : vector<8x64xf32> to vector<8x64xbf16>
    %c0_117 = arith.constant 0 : index
    %c0_118 = arith.constant 0 : index
    %297 = vector.load %arg23[%c0_117, %c0_118] : memref<64x32xbf16, #tpu.memory_space<vmem>>, vector<64x32xbf16>
    %cst_119 = arith.constant dense<0.000000e+00> : vector<8x32xf32>
    %298 = tpu.matmul %296, %297, %cst_119 {dimension_numbers = #tpu.dot_dimension_numbers<[1], [0], [0], [1], [0, 0, 1, 1], [], []>} : vector<8x64xbf16>, vector<64x32xbf16>, vector<8x32xf32> -> vector<8x32xf32>
    %c0_120 = arith.constant 0 : index
    %c0_121 = arith.constant 0 : index
    %299 = vector.load %arg24[%c0_120, %c0_121] : memref<1x32xf32, #tpu.memory_space<vmem>>, vector<1x32xf32>
    %300 = vector.broadcast %299 : vector<1x32xf32> to vector<8x32xf32>
    %301 = arith.addf %298, %300 : vector<8x32xf32>
    %302 = arith.addf %263, %301 : vector<8x32xf32>
    %c0_122 = arith.constant 0 : index
    %c0_123 = arith.constant 0 : index
    %303 = vector.load %arg25[%c0_122, %c0_123] : memref<1x32xf32, #tpu.memory_space<vmem>>, vector<1x32xf32>
    %c0_124 = arith.constant 0 : index
    %c0_125 = arith.constant 0 : index
    %304 = vector.load %arg26[%c0_124, %c0_125] : memref<1x32xf32, #tpu.memory_space<vmem>>, vector<1x32xf32>
    %cst_126 = arith.constant dense<0.000000e+00> : vector<8xf32>
    %305 = vector.multi_reduction <add>, %302, %cst_126 [1] : vector<8x32xf32> to vector<8xf32>
    %306 = vector.shape_cast %305 : vector<8xf32> to vector<8x1xf32>
    %cst_127 = arith.constant 3.200000e+01 : f32
    %307 = vector.broadcast %cst_127 : f32 to vector<8x1xf32>
    %308 = arith.divf %306, %307 : vector<8x1xf32>
    %309 = vector.broadcast %308 : vector<8x1xf32> to vector<8x32xf32>
    %310 = arith.subf %302, %309 : vector<8x32xf32>
    %311 = arith.mulf %310, %310 : vector<8x32xf32>
    %cst_128 = arith.constant dense<0.000000e+00> : vector<8xf32>
    %312 = vector.multi_reduction <add>, %311, %cst_128 [1] : vector<8x32xf32> to vector<8xf32>
    %313 = vector.shape_cast %312 : vector<8xf32> to vector<8x1xf32>
    %cst_129 = arith.constant 0.0322580636 : f32
    %314 = vector.broadcast %cst_129 : f32 to vector<8x1xf32>
    %315 = arith.mulf %313, %314 : vector<8x1xf32>
    %316 = math.sqrt %315 : vector<8x1xf32>
    %cst_130 = arith.constant 9.99999997E-7 : f32
    %317 = vector.broadcast %cst_130 : f32 to vector<8x1xf32>
    %318 = arith.addf %316, %317 : vector<8x1xf32>
    %cst_131 = arith.constant 1.000000e+00 : f32
    %319 = vector.broadcast %cst_131 : f32 to vector<8x1xf32>
    %320 = arith.divf %319, %318 : vector<8x1xf32>
    %321 = vector.broadcast %320 : vector<8x1xf32> to vector<8x32xf32>
    %322 = arith.mulf %310, %321 : vector<8x32xf32>
    %323 = vector.broadcast %303 : vector<1x32xf32> to vector<8x32xf32>
    %324 = arith.mulf %323, %322 : vector<8x32xf32>
    %325 = vector.broadcast %304 : vector<1x32xf32> to vector<8x32xf32>
    %326 = arith.addf %324, %325 : vector<8x32xf32>
    %327 = arith.truncf %326 : vector<8x32xf32> to vector<8x32xbf16>
    %c0_132 = arith.constant 0 : index
    %c0_133 = arith.constant 0 : index
    %328 = vector.load %arg27[%c0_132, %c0_133] : memref<32x96xbf16, #tpu.memory_space<vmem>>, vector<32x96xbf16>
    %cst_134 = arith.constant dense<0.000000e+00> : vector<8x96xf32>
    %329 = tpu.matmul %327, %328, %cst_134 {dimension_numbers = #tpu.dot_dimension_numbers<[1], [0], [0], [1], [0, 0, 1, 1], [], []>} : vector<8x32xbf16>, vector<32x96xbf16>, vector<8x96xf32> -> vector<8x96xf32>
    %c0_135 = arith.constant 0 : index
    %c0_136 = arith.constant 0 : index
    %330 = vector.load %arg28[%c0_135, %c0_136] : memref<1x96xf32, #tpu.memory_space<vmem>>, vector<1x96xf32>
    %331 = vector.broadcast %330 : vector<1x96xf32> to vector<8x96xf32>
    %332 = arith.addf %329, %331 : vector<8x96xf32>
    %333 = arith.truncf %332 : vector<8x96xf32> to vector<8x96xbf16>
    %334 = vector.extract_strided_slice %333 {offsets = [0, 0], sizes = [8, 32], strides = [1, 1]} : vector<8x96xbf16> to vector<8x32xbf16>
    %335 = vector.extract_strided_slice %333 {offsets = [0, 32], sizes = [8, 32], strides = [1, 1]} : vector<8x96xbf16> to vector<8x32xbf16>
    %336 = vector.extract_strided_slice %333 {offsets = [0, 64], sizes = [8, 32], strides = [1, 1]} : vector<8x96xbf16> to vector<8x32xbf16>
    %337 = vector.extract_strided_slice %334 {offsets = [0, 0], sizes = [8, 8], strides = [1, 1]} : vector<8x32xbf16> to vector<8x8xbf16>
    %338 = vector.extract_strided_slice %335 {offsets = [0, 0], sizes = [8, 8], strides = [1, 1]} : vector<8x32xbf16> to vector<8x8xbf16>
    %cst_137 = arith.constant dense<0.000000e+00> : vector<8x8xf32>
    %339 = tpu.matmul %337, %338, %cst_137 {dimension_numbers = #tpu.dot_dimension_numbers<[1], [1], [0], [0], [0, 0, 1, 0], [], []>} : vector<8x8xbf16>, vector<8x8xbf16>, vector<8x8xf32> -> vector<8x8xf32>
    %cst_138 = arith.constant 0.353553385 : f32
    %340 = vector.broadcast %cst_138 : f32 to vector<8x8xf32>
    %341 = arith.mulf %339, %340 : vector<8x8xf32>
    %342 = arith.addf %341, %10 : vector<8x8xf32>
    %cst_139 = arith.constant dense<0xFF800000> : vector<8xf32>
    %343 = vector.multi_reduction <maximumf>, %342, %cst_139 [1] : vector<8x8xf32> to vector<8xf32>
    %344 = vector.shape_cast %343 : vector<8xf32> to vector<8x1xf32>
    %345 = vector.broadcast %344 : vector<8x1xf32> to vector<8x8xf32>
    %346 = arith.subf %342, %345 : vector<8x8xf32>
    %347 = math.exp %346 : vector<8x8xf32>
    %cst_140 = arith.constant dense<0.000000e+00> : vector<8xf32>
    %348 = vector.multi_reduction <add>, %347, %cst_140 [1] : vector<8x8xf32> to vector<8xf32>
    %349 = vector.shape_cast %348 : vector<8xf32> to vector<8x1xf32>
    %350 = tpu.reciprocal %349 {approx = true} : vector<8x1xf32> -> vector<8x1xf32>
    %351 = vector.broadcast %350 : vector<8x1xf32> to vector<8x8xf32>
    %352 = arith.mulf %347, %351 : vector<8x8xf32>
    %353 = arith.truncf %352 : vector<8x8xf32> to vector<8x8xbf16>
    %354 = vector.extract_strided_slice %336 {offsets = [0, 0], sizes = [8, 8], strides = [1, 1]} : vector<8x32xbf16> to vector<8x8xbf16>
    %cst_141 = arith.constant dense<0.000000e+00> : vector<8x8xf32>
    %355 = tpu.matmul %353, %354, %cst_141 {dimension_numbers = #tpu.dot_dimension_numbers<[1], [0], [0], [1], [0, 0, 1, 1], [], []>} : vector<8x8xbf16>, vector<8x8xbf16>, vector<8x8xf32> -> vector<8x8xf32>
    %356 = vector.extract_strided_slice %334 {offsets = [0, 8], sizes = [8, 8], strides = [1, 1]} : vector<8x32xbf16> to vector<8x8xbf16>
    %357 = vector.extract_strided_slice %335 {offsets = [0, 8], sizes = [8, 8], strides = [1, 1]} : vector<8x32xbf16> to vector<8x8xbf16>
    %cst_142 = arith.constant dense<0.000000e+00> : vector<8x8xf32>
    %358 = tpu.matmul %356, %357, %cst_142 {dimension_numbers = #tpu.dot_dimension_numbers<[1], [1], [0], [0], [0, 0, 1, 0], [], []>} : vector<8x8xbf16>, vector<8x8xbf16>, vector<8x8xf32> -> vector<8x8xf32>
    %cst_143 = arith.constant 0.353553385 : f32
    %359 = vector.broadcast %cst_143 : f32 to vector<8x8xf32>
    %360 = arith.mulf %358, %359 : vector<8x8xf32>
    %361 = arith.addf %360, %10 : vector<8x8xf32>
    %cst_144 = arith.constant dense<0xFF800000> : vector<8xf32>
    %362 = vector.multi_reduction <maximumf>, %361, %cst_144 [1] : vector<8x8xf32> to vector<8xf32>
    %363 = vector.shape_cast %362 : vector<8xf32> to vector<8x1xf32>
    %364 = vector.broadcast %363 : vector<8x1xf32> to vector<8x8xf32>
    %365 = arith.subf %361, %364 : vector<8x8xf32>
    %366 = math.exp %365 : vector<8x8xf32>
    %cst_145 = arith.constant dense<0.000000e+00> : vector<8xf32>
    %367 = vector.multi_reduction <add>, %366, %cst_145 [1] : vector<8x8xf32> to vector<8xf32>
    %368 = vector.shape_cast %367 : vector<8xf32> to vector<8x1xf32>
    %369 = tpu.reciprocal %368 {approx = true} : vector<8x1xf32> -> vector<8x1xf32>
    %370 = vector.broadcast %369 : vector<8x1xf32> to vector<8x8xf32>
    %371 = arith.mulf %366, %370 : vector<8x8xf32>
    %372 = arith.truncf %371 : vector<8x8xf32> to vector<8x8xbf16>
    %373 = vector.extract_strided_slice %336 {offsets = [0, 8], sizes = [8, 8], strides = [1, 1]} : vector<8x32xbf16> to vector<8x8xbf16>
    %cst_146 = arith.constant dense<0.000000e+00> : vector<8x8xf32>
    %374 = tpu.matmul %372, %373, %cst_146 {dimension_numbers = #tpu.dot_dimension_numbers<[1], [0], [0], [1], [0, 0, 1, 1], [], []>} : vector<8x8xbf16>, vector<8x8xbf16>, vector<8x8xf32> -> vector<8x8xf32>
    %375 = vector.extract_strided_slice %334 {offsets = [0, 16], sizes = [8, 8], strides = [1, 1]} : vector<8x32xbf16> to vector<8x8xbf16>
    %376 = vector.extract_strided_slice %335 {offsets = [0, 16], sizes = [8, 8], strides = [1, 1]} : vector<8x32xbf16> to vector<8x8xbf16>
    %cst_147 = arith.constant dense<0.000000e+00> : vector<8x8xf32>
    %377 = tpu.matmul %375, %376, %cst_147 {dimension_numbers = #tpu.dot_dimension_numbers<[1], [1], [0], [0], [0, 0, 1, 0], [], []>} : vector<8x8xbf16>, vector<8x8xbf16>, vector<8x8xf32> -> vector<8x8xf32>
    %cst_148 = arith.constant 0.353553385 : f32
    %378 = vector.broadcast %cst_148 : f32 to vector<8x8xf32>
    %379 = arith.mulf %377, %378 : vector<8x8xf32>
    %380 = arith.addf %379, %10 : vector<8x8xf32>
    %cst_149 = arith.constant dense<0xFF800000> : vector<8xf32>
    %381 = vector.multi_reduction <maximumf>, %380, %cst_149 [1] : vector<8x8xf32> to vector<8xf32>
    %382 = vector.shape_cast %381 : vector<8xf32> to vector<8x1xf32>
    %383 = vector.broadcast %382 : vector<8x1xf32> to vector<8x8xf32>
    %384 = arith.subf %380, %383 : vector<8x8xf32>
    %385 = math.exp %384 : vector<8x8xf32>
    %cst_150 = arith.constant dense<0.000000e+00> : vector<8xf32>
    %386 = vector.multi_reduction <add>, %385, %cst_150 [1] : vector<8x8xf32> to vector<8xf32>
    %387 = vector.shape_cast %386 : vector<8xf32> to vector<8x1xf32>
    %388 = tpu.reciprocal %387 {approx = true} : vector<8x1xf32> -> vector<8x1xf32>
    %389 = vector.broadcast %388 : vector<8x1xf32> to vector<8x8xf32>
    %390 = arith.mulf %385, %389 : vector<8x8xf32>
    %391 = arith.truncf %390 : vector<8x8xf32> to vector<8x8xbf16>
    %392 = vector.extract_strided_slice %336 {offsets = [0, 16], sizes = [8, 8], strides = [1, 1]} : vector<8x32xbf16> to vector<8x8xbf16>
    %cst_151 = arith.constant dense<0.000000e+00> : vector<8x8xf32>
    %393 = tpu.matmul %391, %392, %cst_151 {dimension_numbers = #tpu.dot_dimension_numbers<[1], [0], [0], [1], [0, 0, 1, 1], [], []>} : vector<8x8xbf16>, vector<8x8xbf16>, vector<8x8xf32> -> vector<8x8xf32>
    %394 = vector.extract_strided_slice %334 {offsets = [0, 24], sizes = [8, 8], strides = [1, 1]} : vector<8x32xbf16> to vector<8x8xbf16>
    %395 = vector.extract_strided_slice %335 {offsets = [0, 24], sizes = [8, 8], strides = [1, 1]} : vector<8x32xbf16> to vector<8x8xbf16>
    %cst_152 = arith.constant dense<0.000000e+00> : vector<8x8xf32>
    %396 = tpu.matmul %394, %395, %cst_152 {dimension_numbers = #tpu.dot_dimension_numbers<[1], [1], [0], [0], [0, 0, 1, 0], [], []>} : vector<8x8xbf16>, vector<8x8xbf16>, vector<8x8xf32> -> vector<8x8xf32>
    %cst_153 = arith.constant 0.353553385 : f32
    %397 = vector.broadcast %cst_153 : f32 to vector<8x8xf32>
    %398 = arith.mulf %396, %397 : vector<8x8xf32>
    %399 = arith.addf %398, %10 : vector<8x8xf32>
    %cst_154 = arith.constant dense<0xFF800000> : vector<8xf32>
    %400 = vector.multi_reduction <maximumf>, %399, %cst_154 [1] : vector<8x8xf32> to vector<8xf32>
    %401 = vector.shape_cast %400 : vector<8xf32> to vector<8x1xf32>
    %402 = vector.broadcast %401 : vector<8x1xf32> to vector<8x8xf32>
    %403 = arith.subf %399, %402 : vector<8x8xf32>
    %404 = math.exp %403 : vector<8x8xf32>
    %cst_155 = arith.constant dense<0.000000e+00> : vector<8xf32>
    %405 = vector.multi_reduction <add>, %404, %cst_155 [1] : vector<8x8xf32> to vector<8xf32>
    %406 = vector.shape_cast %405 : vector<8xf32> to vector<8x1xf32>
    %407 = tpu.reciprocal %406 {approx = true} : vector<8x1xf32> -> vector<8x1xf32>
    %408 = vector.broadcast %407 : vector<8x1xf32> to vector<8x8xf32>
    %409 = arith.mulf %404, %408 : vector<8x8xf32>
    %410 = arith.truncf %409 : vector<8x8xf32> to vector<8x8xbf16>
    %411 = vector.extract_strided_slice %336 {offsets = [0, 24], sizes = [8, 8], strides = [1, 1]} : vector<8x32xbf16> to vector<8x8xbf16>
    %cst_156 = arith.constant dense<0.000000e+00> : vector<8x8xf32>
    %412 = tpu.matmul %410, %411, %cst_156 {dimension_numbers = #tpu.dot_dimension_numbers<[1], [0], [0], [1], [0, 0, 1, 1], [], []>} : vector<8x8xbf16>, vector<8x8xbf16>, vector<8x8xf32> -> vector<8x8xf32>
    %413 = tpu.concatenate %355, %374, %393, %412 in 1 : vector<8x8xf32>, vector<8x8xf32>, vector<8x8xf32>, vector<8x8xf32> -> vector<8x32xf32>
    %414 = arith.truncf %413 : vector<8x32xf32> to vector<8x32xbf16>
    %c0_157 = arith.constant 0 : index
    %c0_158 = arith.constant 0 : index
    %415 = vector.load %arg29[%c0_157, %c0_158] : memref<32x32xbf16, #tpu.memory_space<vmem>>, vector<32x32xbf16>
    %cst_159 = arith.constant dense<0.000000e+00> : vector<8x32xf32>
    %416 = tpu.matmul %414, %415, %cst_159 {dimension_numbers = #tpu.dot_dimension_numbers<[1], [0], [0], [1], [0, 0, 1, 1], [], []>} : vector<8x32xbf16>, vector<32x32xbf16>, vector<8x32xf32> -> vector<8x32xf32>
    %c0_160 = arith.constant 0 : index
    %c0_161 = arith.constant 0 : index
    %417 = vector.load %arg30[%c0_160, %c0_161] : memref<1x32xf32, #tpu.memory_space<vmem>>, vector<1x32xf32>
    %418 = vector.broadcast %417 : vector<1x32xf32> to vector<8x32xf32>
    %419 = arith.addf %416, %418 : vector<8x32xf32>
    %420 = arith.addf %302, %419 : vector<8x32xf32>
    %c0_162 = arith.constant 0 : index
    %c0_163 = arith.constant 0 : index
    %421 = vector.load %arg31[%c0_162, %c0_163] : memref<1x32xf32, #tpu.memory_space<vmem>>, vector<1x32xf32>
    %c0_164 = arith.constant 0 : index
    %c0_165 = arith.constant 0 : index
    %422 = vector.load %arg32[%c0_164, %c0_165] : memref<1x32xf32, #tpu.memory_space<vmem>>, vector<1x32xf32>
    %cst_166 = arith.constant dense<0.000000e+00> : vector<8xf32>
    %423 = vector.multi_reduction <add>, %420, %cst_166 [1] : vector<8x32xf32> to vector<8xf32>
    %424 = vector.shape_cast %423 : vector<8xf32> to vector<8x1xf32>
    %cst_167 = arith.constant 3.200000e+01 : f32
    %425 = vector.broadcast %cst_167 : f32 to vector<8x1xf32>
    %426 = arith.divf %424, %425 : vector<8x1xf32>
    %427 = vector.broadcast %426 : vector<8x1xf32> to vector<8x32xf32>
    %428 = arith.subf %420, %427 : vector<8x32xf32>
    %429 = arith.mulf %428, %428 : vector<8x32xf32>
    %cst_168 = arith.constant dense<0.000000e+00> : vector<8xf32>
    %430 = vector.multi_reduction <add>, %429, %cst_168 [1] : vector<8x32xf32> to vector<8xf32>
    %431 = vector.shape_cast %430 : vector<8xf32> to vector<8x1xf32>
    %cst_169 = arith.constant 0.0322580636 : f32
    %432 = vector.broadcast %cst_169 : f32 to vector<8x1xf32>
    %433 = arith.mulf %431, %432 : vector<8x1xf32>
    %434 = math.sqrt %433 : vector<8x1xf32>
    %cst_170 = arith.constant 9.99999997E-7 : f32
    %435 = vector.broadcast %cst_170 : f32 to vector<8x1xf32>
    %436 = arith.addf %434, %435 : vector<8x1xf32>
    %cst_171 = arith.constant 1.000000e+00 : f32
    %437 = vector.broadcast %cst_171 : f32 to vector<8x1xf32>
    %438 = arith.divf %437, %436 : vector<8x1xf32>
    %439 = vector.broadcast %438 : vector<8x1xf32> to vector<8x32xf32>
    %440 = arith.mulf %428, %439 : vector<8x32xf32>
    %441 = vector.broadcast %421 : vector<1x32xf32> to vector<8x32xf32>
    %442 = arith.mulf %441, %440 : vector<8x32xf32>
    %443 = vector.broadcast %422 : vector<1x32xf32> to vector<8x32xf32>
    %444 = arith.addf %442, %443 : vector<8x32xf32>
    %445 = arith.truncf %444 : vector<8x32xf32> to vector<8x32xbf16>
    %c0_172 = arith.constant 0 : index
    %c0_173 = arith.constant 0 : index
    %446 = vector.load %arg33[%c0_172, %c0_173] : memref<32x32xbf16, #tpu.memory_space<vmem>>, vector<32x32xbf16>
    %cst_174 = arith.constant dense<0.000000e+00> : vector<8x32xf32>
    %447 = tpu.matmul %445, %446, %cst_174 {dimension_numbers = #tpu.dot_dimension_numbers<[1], [0], [0], [1], [0, 0, 1, 1], [], []>} : vector<8x32xbf16>, vector<32x32xbf16>, vector<8x32xf32> -> vector<8x32xf32>
    %c0_175 = arith.constant 0 : index
    %c0_176 = arith.constant 0 : index
    %448 = vector.load %arg34[%c0_175, %c0_176] : memref<1x32xf32, #tpu.memory_space<vmem>>, vector<1x32xf32>
    %449 = vector.broadcast %448 : vector<1x32xf32> to vector<8x32xf32>
    %450 = arith.addf %447, %449 : vector<8x32xf32>
    %451 = arith.truncf %450 : vector<8x32xf32> to vector<8x32xbf16>
    %c0_177 = arith.constant 0 : index
    %c0_178 = arith.constant 0 : index
    %452 = vector.load %arg35[%c0_177, %c0_178] : memref<32x64xbf16, #tpu.memory_space<vmem>>, vector<32x64xbf16>
    %cst_179 = arith.constant dense<0.000000e+00> : vector<10x64xf32>
    %453 = tpu.matmul %18, %452, %cst_179 {dimension_numbers = #tpu.dot_dimension_numbers<[1], [0], [0], [1], [0, 0, 1, 1], [], []>} : vector<10x32xbf16>, vector<32x64xbf16>, vector<10x64xf32> -> vector<10x64xf32>
    %c0_180 = arith.constant 0 : index
    %c0_181 = arith.constant 0 : index
    %454 = vector.load %arg36[%c0_180, %c0_181] : memref<1x64xf32, #tpu.memory_space<vmem>>, vector<1x64xf32>
    %455 = vector.broadcast %454 : vector<1x64xf32> to vector<10x64xf32>
    %456 = arith.addf %453, %455 : vector<10x64xf32>
    %457 = arith.truncf %456 : vector<10x64xf32> to vector<10x64xbf16>
    %458 = vector.extract_strided_slice %457 {offsets = [0, 0], sizes = [10, 32], strides = [1, 1]} : vector<10x64xbf16> to vector<10x32xbf16>
    %459 = vector.extract_strided_slice %457 {offsets = [0, 32], sizes = [10, 32], strides = [1, 1]} : vector<10x64xbf16> to vector<10x32xbf16>
    %460 = vector.extract_strided_slice %451 {offsets = [0, 0], sizes = [8, 8], strides = [1, 1]} : vector<8x32xbf16> to vector<8x8xbf16>
    %461 = vector.extract_strided_slice %458 {offsets = [0, 0], sizes = [10, 8], strides = [1, 1]} : vector<10x32xbf16> to vector<10x8xbf16>
    %cst_182 = arith.constant dense<0.000000e+00> : vector<8x10xf32>
    %462 = tpu.matmul %460, %461, %cst_182 {dimension_numbers = #tpu.dot_dimension_numbers<[1], [1], [0], [0], [0, 0, 1, 0], [], []>} : vector<8x8xbf16>, vector<10x8xbf16>, vector<8x10xf32> -> vector<8x10xf32>
    %cst_183 = arith.constant 0.353553385 : f32
    %463 = vector.broadcast %cst_183 : f32 to vector<8x10xf32>
    %464 = arith.mulf %462, %463 : vector<8x10xf32>
    %465 = vector.broadcast %17 : vector<1x10xf32> to vector<8x10xf32>
    %466 = arith.addf %464, %465 : vector<8x10xf32>
    %cst_184 = arith.constant dense<0xFF800000> : vector<8xf32>
    %467 = vector.multi_reduction <maximumf>, %466, %cst_184 [1] : vector<8x10xf32> to vector<8xf32>
    %468 = vector.shape_cast %467 : vector<8xf32> to vector<8x1xf32>
    %469 = vector.broadcast %468 : vector<8x1xf32> to vector<8x10xf32>
    %470 = arith.subf %466, %469 : vector<8x10xf32>
    %471 = math.exp %470 : vector<8x10xf32>
    %cst_185 = arith.constant dense<0.000000e+00> : vector<8xf32>
    %472 = vector.multi_reduction <add>, %471, %cst_185 [1] : vector<8x10xf32> to vector<8xf32>
    %473 = vector.shape_cast %472 : vector<8xf32> to vector<8x1xf32>
    %474 = tpu.reciprocal %473 {approx = true} : vector<8x1xf32> -> vector<8x1xf32>
    %475 = vector.broadcast %474 : vector<8x1xf32> to vector<8x10xf32>
    %476 = arith.mulf %471, %475 : vector<8x10xf32>
    %477 = arith.truncf %476 : vector<8x10xf32> to vector<8x10xbf16>
    %478 = vector.extract_strided_slice %459 {offsets = [0, 0], sizes = [10, 8], strides = [1, 1]} : vector<10x32xbf16> to vector<10x8xbf16>
    %cst_186 = arith.constant dense<0.000000e+00> : vector<8x8xf32>
    %479 = tpu.matmul %477, %478, %cst_186 {dimension_numbers = #tpu.dot_dimension_numbers<[1], [0], [0], [1], [0, 0, 1, 1], [], []>} : vector<8x10xbf16>, vector<10x8xbf16>, vector<8x8xf32> -> vector<8x8xf32>
    %480 = vector.extract_strided_slice %451 {offsets = [0, 8], sizes = [8, 8], strides = [1, 1]} : vector<8x32xbf16> to vector<8x8xbf16>
    %481 = vector.extract_strided_slice %458 {offsets = [0, 8], sizes = [10, 8], strides = [1, 1]} : vector<10x32xbf16> to vector<10x8xbf16>
    %cst_187 = arith.constant dense<0.000000e+00> : vector<8x10xf32>
    %482 = tpu.matmul %480, %481, %cst_187 {dimension_numbers = #tpu.dot_dimension_numbers<[1], [1], [0], [0], [0, 0, 1, 0], [], []>} : vector<8x8xbf16>, vector<10x8xbf16>, vector<8x10xf32> -> vector<8x10xf32>
    %cst_188 = arith.constant 0.353553385 : f32
    %483 = vector.broadcast %cst_188 : f32 to vector<8x10xf32>
    %484 = arith.mulf %482, %483 : vector<8x10xf32>
    %485 = vector.broadcast %17 : vector<1x10xf32> to vector<8x10xf32>
    %486 = arith.addf %484, %485 : vector<8x10xf32>
    %cst_189 = arith.constant dense<0xFF800000> : vector<8xf32>
    %487 = vector.multi_reduction <maximumf>, %486, %cst_189 [1] : vector<8x10xf32> to vector<8xf32>
    %488 = vector.shape_cast %487 : vector<8xf32> to vector<8x1xf32>
    %489 = vector.broadcast %488 : vector<8x1xf32> to vector<8x10xf32>
    %490 = arith.subf %486, %489 : vector<8x10xf32>
    %491 = math.exp %490 : vector<8x10xf32>
    %cst_190 = arith.constant dense<0.000000e+00> : vector<8xf32>
    %492 = vector.multi_reduction <add>, %491, %cst_190 [1] : vector<8x10xf32> to vector<8xf32>
    %493 = vector.shape_cast %492 : vector<8xf32> to vector<8x1xf32>
    %494 = tpu.reciprocal %493 {approx = true} : vector<8x1xf32> -> vector<8x1xf32>
    %495 = vector.broadcast %494 : vector<8x1xf32> to vector<8x10xf32>
    %496 = arith.mulf %491, %495 : vector<8x10xf32>
    %497 = arith.truncf %496 : vector<8x10xf32> to vector<8x10xbf16>
    %498 = vector.extract_strided_slice %459 {offsets = [0, 8], sizes = [10, 8], strides = [1, 1]} : vector<10x32xbf16> to vector<10x8xbf16>
    %cst_191 = arith.constant dense<0.000000e+00> : vector<8x8xf32>
    %499 = tpu.matmul %497, %498, %cst_191 {dimension_numbers = #tpu.dot_dimension_numbers<[1], [0], [0], [1], [0, 0, 1, 1], [], []>} : vector<8x10xbf16>, vector<10x8xbf16>, vector<8x8xf32> -> vector<8x8xf32>
    %500 = vector.extract_strided_slice %451 {offsets = [0, 16], sizes = [8, 8], strides = [1, 1]} : vector<8x32xbf16> to vector<8x8xbf16>
    %501 = vector.extract_strided_slice %458 {offsets = [0, 16], sizes = [10, 8], strides = [1, 1]} : vector<10x32xbf16> to vector<10x8xbf16>
    %cst_192 = arith.constant dense<0.000000e+00> : vector<8x10xf32>
    %502 = tpu.matmul %500, %501, %cst_192 {dimension_numbers = #tpu.dot_dimension_numbers<[1], [1], [0], [0], [0, 0, 1, 0], [], []>} : vector<8x8xbf16>, vector<10x8xbf16>, vector<8x10xf32> -> vector<8x10xf32>
    %cst_193 = arith.constant 0.353553385 : f32
    %503 = vector.broadcast %cst_193 : f32 to vector<8x10xf32>
    %504 = arith.mulf %502, %503 : vector<8x10xf32>
    %505 = vector.broadcast %17 : vector<1x10xf32> to vector<8x10xf32>
    %506 = arith.addf %504, %505 : vector<8x10xf32>
    %cst_194 = arith.constant dense<0xFF800000> : vector<8xf32>
    %507 = vector.multi_reduction <maximumf>, %506, %cst_194 [1] : vector<8x10xf32> to vector<8xf32>
    %508 = vector.shape_cast %507 : vector<8xf32> to vector<8x1xf32>
    %509 = vector.broadcast %508 : vector<8x1xf32> to vector<8x10xf32>
    %510 = arith.subf %506, %509 : vector<8x10xf32>
    %511 = math.exp %510 : vector<8x10xf32>
    %cst_195 = arith.constant dense<0.000000e+00> : vector<8xf32>
    %512 = vector.multi_reduction <add>, %511, %cst_195 [1] : vector<8x10xf32> to vector<8xf32>
    %513 = vector.shape_cast %512 : vector<8xf32> to vector<8x1xf32>
    %514 = tpu.reciprocal %513 {approx = true} : vector<8x1xf32> -> vector<8x1xf32>
    %515 = vector.broadcast %514 : vector<8x1xf32> to vector<8x10xf32>
    %516 = arith.mulf %511, %515 : vector<8x10xf32>
    %517 = arith.truncf %516 : vector<8x10xf32> to vector<8x10xbf16>
    %518 = vector.extract_strided_slice %459 {offsets = [0, 16], sizes = [10, 8], strides = [1, 1]} : vector<10x32xbf16> to vector<10x8xbf16>
    %cst_196 = arith.constant dense<0.000000e+00> : vector<8x8xf32>
    %519 = tpu.matmul %517, %518, %cst_196 {dimension_numbers = #tpu.dot_dimension_numbers<[1], [0], [0], [1], [0, 0, 1, 1], [], []>} : vector<8x10xbf16>, vector<10x8xbf16>, vector<8x8xf32> -> vector<8x8xf32>
    %520 = vector.extract_strided_slice %451 {offsets = [0, 24], sizes = [8, 8], strides = [1, 1]} : vector<8x32xbf16> to vector<8x8xbf16>
    %521 = vector.extract_strided_slice %458 {offsets = [0, 24], sizes = [10, 8], strides = [1, 1]} : vector<10x32xbf16> to vector<10x8xbf16>
    %cst_197 = arith.constant dense<0.000000e+00> : vector<8x10xf32>
    %522 = tpu.matmul %520, %521, %cst_197 {dimension_numbers = #tpu.dot_dimension_numbers<[1], [1], [0], [0], [0, 0, 1, 0], [], []>} : vector<8x8xbf16>, vector<10x8xbf16>, vector<8x10xf32> -> vector<8x10xf32>
    %cst_198 = arith.constant 0.353553385 : f32
    %523 = vector.broadcast %cst_198 : f32 to vector<8x10xf32>
    %524 = arith.mulf %522, %523 : vector<8x10xf32>
    %525 = vector.broadcast %17 : vector<1x10xf32> to vector<8x10xf32>
    %526 = arith.addf %524, %525 : vector<8x10xf32>
    %cst_199 = arith.constant dense<0xFF800000> : vector<8xf32>
    %527 = vector.multi_reduction <maximumf>, %526, %cst_199 [1] : vector<8x10xf32> to vector<8xf32>
    %528 = vector.shape_cast %527 : vector<8xf32> to vector<8x1xf32>
    %529 = vector.broadcast %528 : vector<8x1xf32> to vector<8x10xf32>
    %530 = arith.subf %526, %529 : vector<8x10xf32>
    %531 = math.exp %530 : vector<8x10xf32>
    %cst_200 = arith.constant dense<0.000000e+00> : vector<8xf32>
    %532 = vector.multi_reduction <add>, %531, %cst_200 [1] : vector<8x10xf32> to vector<8xf32>
    %533 = vector.shape_cast %532 : vector<8xf32> to vector<8x1xf32>
    %534 = tpu.reciprocal %533 {approx = true} : vector<8x1xf32> -> vector<8x1xf32>
    %535 = vector.broadcast %534 : vector<8x1xf32> to vector<8x10xf32>
    %536 = arith.mulf %531, %535 : vector<8x10xf32>
    %537 = arith.truncf %536 : vector<8x10xf32> to vector<8x10xbf16>
    %538 = vector.extract_strided_slice %459 {offsets = [0, 24], sizes = [10, 8], strides = [1, 1]} : vector<10x32xbf16> to vector<10x8xbf16>
    %cst_201 = arith.constant dense<0.000000e+00> : vector<8x8xf32>
    %539 = tpu.matmul %537, %538, %cst_201 {dimension_numbers = #tpu.dot_dimension_numbers<[1], [0], [0], [1], [0, 0, 1, 1], [], []>} : vector<8x10xbf16>, vector<10x8xbf16>, vector<8x8xf32> -> vector<8x8xf32>
    %540 = tpu.concatenate %479, %499, %519, %539 in 1 : vector<8x8xf32>, vector<8x8xf32>, vector<8x8xf32>, vector<8x8xf32> -> vector<8x32xf32>
    %541 = arith.truncf %540 : vector<8x32xf32> to vector<8x32xbf16>
    %c0_202 = arith.constant 0 : index
    %c0_203 = arith.constant 0 : index
    %542 = vector.load %arg37[%c0_202, %c0_203] : memref<32x32xbf16, #tpu.memory_space<vmem>>, vector<32x32xbf16>
    %cst_204 = arith.constant dense<0.000000e+00> : vector<8x32xf32>
    %543 = tpu.matmul %541, %542, %cst_204 {dimension_numbers = #tpu.dot_dimension_numbers<[1], [0], [0], [1], [0, 0, 1, 1], [], []>} : vector<8x32xbf16>, vector<32x32xbf16>, vector<8x32xf32> -> vector<8x32xf32>
    %c0_205 = arith.constant 0 : index
    %c0_206 = arith.constant 0 : index
    %544 = vector.load %arg38[%c0_205, %c0_206] : memref<1x32xf32, #tpu.memory_space<vmem>>, vector<1x32xf32>
    %545 = vector.broadcast %544 : vector<1x32xf32> to vector<8x32xf32>
    %546 = arith.addf %543, %545 : vector<8x32xf32>
    %547 = arith.addf %420, %546 : vector<8x32xf32>
    %c0_207 = arith.constant 0 : index
    %c0_208 = arith.constant 0 : index
    %548 = vector.load %arg39[%c0_207, %c0_208] : memref<1x32xf32, #tpu.memory_space<vmem>>, vector<1x32xf32>
    %c0_209 = arith.constant 0 : index
    %c0_210 = arith.constant 0 : index
    %549 = vector.load %arg40[%c0_209, %c0_210] : memref<1x32xf32, #tpu.memory_space<vmem>>, vector<1x32xf32>
    %cst_211 = arith.constant dense<0.000000e+00> : vector<8xf32>
    %550 = vector.multi_reduction <add>, %547, %cst_211 [1] : vector<8x32xf32> to vector<8xf32>
    %551 = vector.shape_cast %550 : vector<8xf32> to vector<8x1xf32>
    %cst_212 = arith.constant 3.200000e+01 : f32
    %552 = vector.broadcast %cst_212 : f32 to vector<8x1xf32>
    %553 = arith.divf %551, %552 : vector<8x1xf32>
    %554 = vector.broadcast %553 : vector<8x1xf32> to vector<8x32xf32>
    %555 = arith.subf %547, %554 : vector<8x32xf32>
    %556 = arith.mulf %555, %555 : vector<8x32xf32>
    %cst_213 = arith.constant dense<0.000000e+00> : vector<8xf32>
    %557 = vector.multi_reduction <add>, %556, %cst_213 [1] : vector<8x32xf32> to vector<8xf32>
    %558 = vector.shape_cast %557 : vector<8xf32> to vector<8x1xf32>
    %cst_214 = arith.constant 0.0322580636 : f32
    %559 = vector.broadcast %cst_214 : f32 to vector<8x1xf32>
    %560 = arith.mulf %558, %559 : vector<8x1xf32>
    %561 = math.sqrt %560 : vector<8x1xf32>
    %cst_215 = arith.constant 9.99999997E-7 : f32
    %562 = vector.broadcast %cst_215 : f32 to vector<8x1xf32>
    %563 = arith.addf %561, %562 : vector<8x1xf32>
    %cst_216 = arith.constant 1.000000e+00 : f32
    %564 = vector.broadcast %cst_216 : f32 to vector<8x1xf32>
    %565 = arith.divf %564, %563 : vector<8x1xf32>
    %566 = vector.broadcast %565 : vector<8x1xf32> to vector<8x32xf32>
    %567 = arith.mulf %555, %566 : vector<8x32xf32>
    %568 = vector.broadcast %548 : vector<1x32xf32> to vector<8x32xf32>
    %569 = arith.mulf %568, %567 : vector<8x32xf32>
    %570 = vector.broadcast %549 : vector<1x32xf32> to vector<8x32xf32>
    %571 = arith.addf %569, %570 : vector<8x32xf32>
    %572 = arith.truncf %571 : vector<8x32xf32> to vector<8x32xbf16>
    %c0_217 = arith.constant 0 : index
    %c0_218 = arith.constant 0 : index
    %573 = vector.load %arg41[%c0_217, %c0_218] : memref<32x64xbf16, #tpu.memory_space<vmem>>, vector<32x64xbf16>
    %cst_219 = arith.constant dense<0.000000e+00> : vector<8x64xf32>
    %574 = tpu.matmul %572, %573, %cst_219 {dimension_numbers = #tpu.dot_dimension_numbers<[1], [0], [0], [1], [0, 0, 1, 1], [], []>} : vector<8x32xbf16>, vector<32x64xbf16>, vector<8x64xf32> -> vector<8x64xf32>
    %c0_220 = arith.constant 0 : index
    %c0_221 = arith.constant 0 : index
    %575 = vector.load %arg42[%c0_220, %c0_221] : memref<1x64xf32, #tpu.memory_space<vmem>>, vector<1x64xf32>
    %576 = vector.broadcast %575 : vector<1x64xf32> to vector<8x64xf32>
    %577 = arith.addf %574, %576 : vector<8x64xf32>
    %cst_222 = arith.constant 0.000000e+00 : f32
    %578 = vector.broadcast %cst_222 : f32 to vector<8x64xf32>
    %579 = arith.maximumf %577, %578 : vector<8x64xf32>
    %580 = arith.truncf %579 : vector<8x64xf32> to vector<8x64xbf16>
    %c0_223 = arith.constant 0 : index
    %c0_224 = arith.constant 0 : index
    %581 = vector.load %arg43[%c0_223, %c0_224] : memref<64x32xbf16, #tpu.memory_space<vmem>>, vector<64x32xbf16>
    %cst_225 = arith.constant dense<0.000000e+00> : vector<8x32xf32>
    %582 = tpu.matmul %580, %581, %cst_225 {dimension_numbers = #tpu.dot_dimension_numbers<[1], [0], [0], [1], [0, 0, 1, 1], [], []>} : vector<8x64xbf16>, vector<64x32xbf16>, vector<8x32xf32> -> vector<8x32xf32>
    %c0_226 = arith.constant 0 : index
    %c0_227 = arith.constant 0 : index
    %583 = vector.load %arg44[%c0_226, %c0_227] : memref<1x32xf32, #tpu.memory_space<vmem>>, vector<1x32xf32>
    %584 = vector.broadcast %583 : vector<1x32xf32> to vector<8x32xf32>
    %585 = arith.addf %582, %584 : vector<8x32xf32>
    %586 = arith.addf %547, %585 : vector<8x32xf32>
    %c0_228 = arith.constant 0 : index
    %c0_229 = arith.constant 0 : index
    %587 = vector.load %arg45[%c0_228, %c0_229] : memref<1x32xf32, #tpu.memory_space<vmem>>, vector<1x32xf32>
    %c0_230 = arith.constant 0 : index
    %c0_231 = arith.constant 0 : index
    %588 = vector.load %arg46[%c0_230, %c0_231] : memref<1x32xf32, #tpu.memory_space<vmem>>, vector<1x32xf32>
    %cst_232 = arith.constant dense<0.000000e+00> : vector<8xf32>
    %589 = vector.multi_reduction <add>, %586, %cst_232 [1] : vector<8x32xf32> to vector<8xf32>
    %590 = vector.shape_cast %589 : vector<8xf32> to vector<8x1xf32>
    %cst_233 = arith.constant 3.200000e+01 : f32
    %591 = vector.broadcast %cst_233 : f32 to vector<8x1xf32>
    %592 = arith.divf %590, %591 : vector<8x1xf32>
    %593 = vector.broadcast %592 : vector<8x1xf32> to vector<8x32xf32>
    %594 = arith.subf %586, %593 : vector<8x32xf32>
    %595 = arith.mulf %594, %594 : vector<8x32xf32>
    %cst_234 = arith.constant dense<0.000000e+00> : vector<8xf32>
    %596 = vector.multi_reduction <add>, %595, %cst_234 [1] : vector<8x32xf32> to vector<8xf32>
    %597 = vector.shape_cast %596 : vector<8xf32> to vector<8x1xf32>
    %cst_235 = arith.constant 0.0322580636 : f32
    %598 = vector.broadcast %cst_235 : f32 to vector<8x1xf32>
    %599 = arith.mulf %597, %598 : vector<8x1xf32>
    %600 = math.sqrt %599 : vector<8x1xf32>
    %cst_236 = arith.constant 9.99999997E-7 : f32
    %601 = vector.broadcast %cst_236 : f32 to vector<8x1xf32>
    %602 = arith.addf %600, %601 : vector<8x1xf32>
    %cst_237 = arith.constant 1.000000e+00 : f32
    %603 = vector.broadcast %cst_237 : f32 to vector<8x1xf32>
    %604 = arith.divf %603, %602 : vector<8x1xf32>
    %605 = vector.broadcast %604 : vector<8x1xf32> to vector<8x32xf32>
    %606 = arith.mulf %594, %605 : vector<8x32xf32>
    %607 = vector.broadcast %587 : vector<1x32xf32> to vector<8x32xf32>
    %608 = arith.mulf %607, %606 : vector<8x32xf32>
    %609 = vector.broadcast %588 : vector<1x32xf32> to vector<8x32xf32>
    %610 = arith.addf %608, %609 : vector<8x32xf32>
    %c0_238 = arith.constant 0 : index
    %c0_239 = arith.constant 0 : index
    %c0_240 = arith.constant 0 : index
    %611 = vector.load %arg47[%c0_238, %c0_239, %c0_240] : memref<1x8x32xf32, #tpu.memory_space<vmem>>, vector<1x8x32xf32>
    %612 = vector.shape_cast %611 : vector<1x8x32xf32> to vector<8x32xf32>
    %613 = vector.shape_cast %610 : vector<8x32xf32> to vector<1x8x32xf32>
    tpu.vector_store %arg47[%c0_238, %c0_239, %c0_240], %613 {strides = array<i32>} : memref<1x8x32xf32, #tpu.memory_space<vmem>>, vector<1x8x32xf32>,
    return
  }
  func.func @transform_0(%arg0: i32) -> (i32, i32, i32) {
    %c0_i32 = arith.constant 0 : i32
    %c0_i32_0 = arith.constant 0 : i32
    %c0_i32_1 = arith.constant 0 : i32
    return %arg0, %c0_i32, %c0_i32_0 : i32, i32, i32
  }
  func.func @transform_1(%arg0: i32) -> (i32, i32, i32) {
    %c0_i32 = arith.constant 0 : i32
    %c0_i32_0 = arith.constant 0 : i32
    %c0_i32_1 = arith.constant 0 : i32
    return %arg0, %c0_i32, %c0_i32_0 : i32, i32, i32
  }
  func.func @transform_2(%arg0: i32) -> (i32, i32, i32) {
    %c0_i32 = arith.constant 0 : i32
    %c0_i32_0 = arith.constant 0 : i32
    %c0_i32_1 = arith.constant 0 : i32
    return %arg0, %c0_i32, %c0_i32_0 : i32, i32, i32
  }
  func.func @transform_3(%arg0: i32) -> (i32, i32, i32) {
    %c0_i32 = arith.constant 0 : i32
    %c0_i32_0 = arith.constant 0 : i32
    %c0_i32_1 = arith.constant 0 : i32
    return %arg0, %c0_i32, %c0_i32_0 : i32, i32, i32
  }
  func.func @transform_4(%arg0: i32) -> (i32, i32) {
    %c0_i32 = arith.constant 0 : i32
    %c0_i32_0 = arith.constant 0 : i32
    %c0_i32_1 = arith.constant 0 : i32
    return %c0_i32, %c0_i32_0 : i32, i32
  }
  func.func @transform_5(%arg0: i32) -> (i32, i32) {
    %c0_i32 = arith.constant 0 : i32
    %c0_i32_0 = arith.constant 0 : i32
    %c0_i32_1 = arith.constant 0 : i32
    return %c0_i32, %c0_i32_0 : i32, i32
  }
  func.func @transform_6(%arg0: i32) -> (i32, i32) {
    %c0_i32 = arith.constant 0 : i32
    %c0_i32_0 = arith.constant 0 : i32
    %c0_i32_1 = arith.constant 0 : i32
    return %c0_i32, %c0_i32_0 : i32, i32
  }
  func.func @transform_7(%arg0: i32) -> (i32, i32) {
    %c0_i32 = arith.constant 0 : i32
    %c0_i32_0 = arith.constant 0 : i32
    %c0_i32_1 = arith.constant 0 : i32
    return %c0_i32, %c0_i32_0 : i32, i32
  }
  func.func @transform_8(%arg0: i32) -> (i32, i32) {
    %c0_i32 = arith.constant 0 : i32
    %c0_i32_0 = arith.constant 0 : i32
    %c0_i32_1 = arith.constant 0 : i32
    return %c0_i32, %c0_i32_0 : i32, i32
  }
  func.func @transform_9(%arg0: i32) -> (i32, i32) {
    %c0_i32 = arith.constant 0 : i32
    %c0_i32_0 = arith.constant 0 : i32
    %c0_i32_1 = arith.constant 0 : i32
    return %c0_i32, %c0_i32_0 : i32, i32
  }
  func.func @transform_10(%arg0: i32) -> (i32, i32) {
    %c0_i32 = arith.constant 0 : i32
    %c0_i32_0 = arith.constant 0 : i32
    %c0_i32_1 = arith.constant 0 : i32
    return %c0_i32, %c0_i32_0 : i32, i32
  }
  func.func @transform_11(%arg0: i32) -> (i32, i32) {
    %c0_i32 = arith.constant 0 : i32
    %c0_i32_0 = arith.constant 0 : i32
    %c0_i32_1 = arith.constant 0 : i32
    return %c0_i32, %c0_i32_0 : i32, i32
  }
  func.func @transform_12(%arg0: i32) -> (i32, i32) {
    %c0_i32 = arith.constant 0 : i32
    %c0_i32_0 = arith.constant 0 : i32
    %c0_i32_1 = arith.constant 0 : i32
    return %c0_i32, %c0_i32_0 : i32, i32
  }
  func.func @transform_13(%arg0: i32) -> (i32, i32) {
    %c0_i32 = arith.constant 0 : i32
    %c0_i32_0 = arith.constant 0 : i32
    %c0_i32_1 = arith.constant 0 : i32
    return %c0_i32, %c0_i32_0 : i32, i32
  }
  func.func @transform_14(%arg0: i32) -> (i32, i32) {
    %c0_i32 = arith.constant 0 : i32
    %c0_i32_0 = arith.constant 0 : i32
    %c0_i32_1 = arith.constant 0 : i32
    return %c0_i32, %c0_i32_0 : i32, i32
  }
  func.func @transform_15(%arg0: i32) -> (i32, i32) {
    %c0_i32 = arith.constant 0 : i32
    %c0_i32_0 = arith.constant 0 : i32
    %c0_i32_1 = arith.constant 0 : i32
    return %c0_i32, %c0_i32_0 : i32, i32
  }
  func.func @transform_16(%arg0: i32) -> (i32, i32) {
    %c0_i32 = arith.constant 0 : i32
    %c0_i32_0 = arith.constant 0 : i32
    %c0_i32_1 = arith.constant 0 : i32
    return %c0_i32, %c0_i32_0 : i32, i32
  }
  func.func @transform_17(%arg0: i32) -> (i32, i32) {
    %c0_i32 = arith.constant 0 : i32
    %c0_i32_0 = arith.constant 0 : i32
    %c0_i32_1 = arith.constant 0 : i32
    return %c0_i32, %c0_i32_0 : i32, i32
  }
  func.func @transform_18(%arg0: i32) -> (i32, i32) {
    %c0_i32 = arith.constant 0 : i32
    %c0_i32_0 = arith.constant 0 : i32
    %c0_i32_1 = arith.constant 0 : i32
    return %c0_i32, %c0_i32_0 : i32, i32
  }
  func.func @transform_19(%arg0: i32) -> (i32, i32) {
    %c0_i32 = arith.constant 0 : i32
    %c0_i32_0 = arith.constant 0 : i32
    %c0_i32_1 = arith.constant 0 : i32
    return %c0_i32, %c0_i32_0 : i32, i32
  }
  func.func @transform_20(%arg0: i32) -> (i32, i32) {
    %c0_i32 = arith.constant 0 : i32
    %c0_i32_0 = arith.constant 0 : i32
    %c0_i32_1 = arith.constant 0 : i32
    return %c0_i32, %c0_i32_0 : i32, i32
  }
  func.func @transform_21(%arg0: i32) -> (i32, i32) {
    %c0_i32 = arith.constant 0 : i32
    %c0_i32_0 = arith.constant 0 : i32
    %c0_i32_1 = arith.constant 0 : i32
    return %c0_i32, %c0_i32_0 : i32, i32
  }
  func.func @transform_22(%arg0: i32) -> (i32, i32) {
    %c0_i32 = arith.constant 0 : i32
    %c0_i32_0 = arith.constant 0 : i32
    %c0_i32_1 = arith.constant 0 : i32
    return %c0_i32, %c0_i32_0 : i32, i32
  }
  func.func @transform_23(%arg0: i32) -> (i32, i32) {
    %c0_i32 = arith.constant 0 : i32
    %c0_i32_0 = arith.constant 0 : i32
    %c0_i32_1 = arith.constant 0 : i32
    return %c0_i32, %c0_i32_0 : i32, i32
  }
  func.func @transform_24(%arg0: i32) -> (i32, i32) {
    %c0_i32 = arith.constant 0 : i32
    %c0_i32_0 = arith.constant 0 : i32
    %c0_i32_1 = arith.constant 0 : i32
    return %c0_i32, %c0_i32_0 : i32, i32
  }
  func.func @transform_25(%arg0: i32) -> (i32, i32) {
    %c0_i32 = arith.constant 0 : i32
    %c0_i32_0 = arith.constant 0 : i32
    %c0_i32_1 = arith.constant 0 : i32
    return %c0_i32, %c0_i32_0 : i32, i32
  }
  func.func @transform_26(%arg0: i32) -> (i32, i32) {
    %c0_i32 = arith.constant 0 : i32
    %c0_i32_0 = arith.constant 0 : i32
    %c0_i32_1 = arith.constant 0 : i32
    return %c0_i32, %c0_i32_0 : i32, i32
  }
  func.func @transform_27(%arg0: i32) -> (i32, i32) {
    %c0_i32 = arith.constant 0 : i32
    %c0_i32_0 = arith.constant 0 : i32
    %c0_i32_1 = arith.constant 0 : i32
    return %c0_i32, %c0_i32_0 : i32, i32
  }
  func.func @transform_28(%arg0: i32) -> (i32, i32) {
    %c0_i32 = arith.constant 0 : i32
    %c0_i32_0 = arith.constant 0 : i32
    %c0_i32_1 = arith.constant 0 : i32
    return %c0_i32, %c0_i32_0 : i32, i32
  }
  func.func @transform_29(%arg0: i32) -> (i32, i32) {
    %c0_i32 = arith.constant 0 : i32
    %c0_i32_0 = arith.constant 0 : i32
    %c0_i32_1 = arith.constant 0 : i32
    return %c0_i32, %c0_i32_0 : i32, i32
  }
  func.func @transform_30(%arg0: i32) -> (i32, i32) {
    %c0_i32 = arith.constant 0 : i32
    %c0_i32_0 = arith.constant 0 : i32
    %c0_i32_1 = arith.constant 0 : i32
    return %c0_i32, %c0_i32_0 : i32, i32
  }
  func.func @transform_31(%arg0: i32) -> (i32, i32) {
    %c0_i32 = arith.constant 0 : i32
    %c0_i32_0 = arith.constant 0 : i32
    %c0_i32_1 = arith.constant 0 : i32
    return %c0_i32, %c0_i32_0 : i32, i32
  }
  func.func @transform_32(%arg0: i32) -> (i32, i32) {
    %c0_i32 = arith.constant 0 : i32
    %c0_i32_0 = arith.constant 0 : i32
    %c0_i32_1 = arith.constant 0 : i32
    return %c0_i32, %c0_i32_0 : i32, i32
  }
  func.func @transform_33(%arg0: i32) -> (i32, i32) {
    %c0_i32 = arith.constant 0 : i32
    %c0_i32_0 = arith.constant 0 : i32
    %c0_i32_1 = arith.constant 0 : i32
    return %c0_i32, %c0_i32_0 : i32, i32
  }
  func.func @transform_34(%arg0: i32) -> (i32, i32) {
    %c0_i32 = arith.constant 0 : i32
    %c0_i32_0 = arith.constant 0 : i32
    %c0_i32_1 = arith.constant 0 : i32
    return %c0_i32, %c0_i32_0 : i32, i32
  }
  func.func @transform_35(%arg0: i32) -> (i32, i32) {
    %c0_i32 = arith.constant 0 : i32
    %c0_i32_0 = arith.constant 0 : i32
    %c0_i32_1 = arith.constant 0 : i32
    return %c0_i32, %c0_i32_0 : i32, i32
  }
  func.func @transform_36(%arg0: i32) -> (i32, i32) {
    %c0_i32 = arith.constant 0 : i32
    %c0_i32_0 = arith.constant 0 : i32
    %c0_i32_1 = arith.constant 0 : i32
    return %c0_i32, %c0_i32_0 : i32, i32
  }
  func.func @transform_37(%arg0: i32) -> (i32, i32) {
    %c0_i32 = arith.constant 0 : i32
    %c0_i32_0 = arith.constant 0 : i32
    %c0_i32_1 = arith.constant 0 : i32
    return %c0_i32, %c0_i32_0 : i32, i32
  }
  func.func @transform_38(%arg0: i32) -> (i32, i32) {
    %c0_i32 = arith.constant 0 : i32
    %c0_i32_0 = arith.constant 0 : i32
    %c0_i32_1 = arith.constant 0 : i32
    return %c0_i32, %c0_i32_0 : i32, i32
  }
  func.func @transform_39(%arg0: i32) -> (i32, i32) {
    %c0_i32 = arith.constant 0 : i32
    %c0_i32_0 = arith.constant 0 : i32
    %c0_i32_1 = arith.constant 0 : i32
    return %c0_i32, %c0_i32_0 : i32, i32
  }
  func.func @transform_40(%arg0: i32) -> (i32, i32) {
    %c0_i32 = arith.constant 0 : i32
    %c0_i32_0 = arith.constant 0 : i32
    %c0_i32_1 = arith.constant 0 : i32
    return %c0_i32, %c0_i32_0 : i32, i32
  }
  func.func @transform_41(%arg0: i32) -> (i32, i32) {
    %c0_i32 = arith.constant 0 : i32
    %c0_i32_0 = arith.constant 0 : i32
    %c0_i32_1 = arith.constant 0 : i32
    return %c0_i32, %c0_i32_0 : i32, i32
  }
  func.func @transform_42(%arg0: i32) -> (i32, i32) {
    %c0_i32 = arith.constant 0 : i32
    %c0_i32_0 = arith.constant 0 : i32
    %c0_i32_1 = arith.constant 0 : i32
    return %c0_i32, %c0_i32_0 : i32, i32
  }
  func.func @transform_43(%arg0: i32) -> (i32, i32) {
    %c0_i32 = arith.constant 0 : i32
    %c0_i32_0 = arith.constant 0 : i32
    %c0_i32_1 = arith.constant 0 : i32
    return %c0_i32, %c0_i32_0 : i32, i32
  }
  func.func @transform_44(%arg0: i32) -> (i32, i32) {
    %c0_i32 = arith.constant 0 : i32
    %c0_i32_0 = arith.constant 0 : i32
    %c0_i32_1 = arith.constant 0 : i32
    return %c0_i32, %c0_i32_0 : i32, i32
  }
  func.func @transform_45(%arg0: i32) -> (i32, i32) {
    %c0_i32 = arith.constant 0 : i32
    %c0_i32_0 = arith.constant 0 : i32
    %c0_i32_1 = arith.constant 0 : i32
    return %c0_i32, %c0_i32_0 : i32, i32
  }
  func.func @transform_46(%arg0: i32) -> (i32, i32, i32) {
    %c0_i32 = arith.constant 0 : i32
    %c0_i32_0 = arith.constant 0 : i32
    %c0_i32_1 = arith.constant 0 : i32
    return %arg0, %c0_i32, %c0_i32_0 : i32, i32, i32
  }
}

</mosaic_0001>

<bundles_post_ra>
// kernel: decoder_forward.1
= control target key start
LH: loop header
LB: loop body
LE: loop exit
PB: predicated region body
PF: predicated region fallthrough
CT: control target
= control target key end

     0   :  { %s5990_s6 = smov 1   ;;  %s5991_s10 = smov 2   ;;  %s7157_s0 = inlined_call_operand.smem [shape: u32[47], index: -1, kind: input, shape index: {}] }
   0x1   :  { %s6093_s5 = sld [smem:[%s7157_s0]]   ;;  %s5992_s14 = smov 3  }
   0x2   :  { %s6098_s9 = sld [smem:[%s7157_s0 + %s5990_s6]]   ;;  %s5993_s18 = smov 4  }
   0x3   :  { %s6103_s13 = sld [smem:[%s7157_s0 + %s5991_s10]]   ;;  %s5994_s22 = smov 5  }
   0x4   :  { %s6108_s17 = sld [smem:[%s7157_s0 + %s5992_s14]]   ;;  %s5995_s26 = smov 6  }
   0x5   :  { %s6113_s21 = sld [smem:[%s7157_s0 + %s5993_s18]]   ;;  %s5996_s30 = smov 7  }
   0x6   :  { %s6118_s25 = sld [smem:[%s7157_s0 + %s5994_s22]]   ;;  %s5997_s4 = smov 8  }
   0x7   :  { %7243 = sst [smem:[#allocation68_spill]] %s6093_s5  ;;  %s5998_s10 = smov 9  }
   0x8   :  { %7244 = sst [smem:[#allocation69_spill]] %s6098_s9  ;;  %s5999_s15 = smov 10  }
   0x9   :  { %7245 = sst [smem:[#allocation70_spill]] %s6103_s13  ;;  %s6000_s20 = smov 11  }
   0xa   :  { %7246 = sst [smem:[#allocation71_spill]] %s6108_s17  ;;  %s6002_s1 = smov 13  }
   0xb   :  { %7247 = sst [smem:[#allocation72_spill]] %s6113_s21  ;;  %s6003_s7 = smov 14  }
   0xc   :  { %s6123_s29 = sld [smem:[%s7157_s0 + %s5995_s26]]   ;;  %s6001_s26 = smov 12  }
   0xd   :  { %s6128_s3 = sld [smem:[%s7157_s0 + %s5996_s30]]   ;;  %s6005_s22 = smov 16  }
   0xe   :  { %s6133_s8 = sld [smem:[%s7157_s0 + %s5997_s4]]   ;;  %s6006_s28 = smov 17  }
   0xf   :  { %s6138_s14 = sld [smem:[%s7157_s0 + %s5998_s10]]  }
  0x10   :  { %s6143_s19 = sld [smem:[%s7157_s0 + %s5999_s15]]   ;;  %s6004_s15 = smov 15  }
  0x11   :  { %s6148_s24 = sld [smem:[%s7157_s0 + %s6000_s20]]  }
  0x12   :  { %7248 = sst [smem:[#allocation73_spill]] %s6123_s29 }
  0x13   :  { %7249 = sst [smem:[#allocation74_spill]] %s6128_s3 }
  0x14   :  { %7250 = sst [smem:[#allocation75_spill]] %s6133_s8 }
  0x15   :  { %7251 = sst [smem:[#allocation76_spill]] %s6138_s14 }
  0x16   :  { %7252 = sst [smem:[#allocation77_spill]] %s6143_s19 }
  0x17   :  { %s6153_s30 = sld [smem:[%s7157_s0 + %s6001_s26]]  }
  0x18   :  { %s6158_s6 = sld [smem:[%s7157_s0 + %s6002_s1]]  }
  0x19   :  { %s6163_s12 = sld [smem:[%s7157_s0 + %s6003_s7]]   ;;  %s6007_s7 = smov 18  }
  0x1a   :  { %s6168_s20 = sld [smem:[%s7157_s0 + %s6004_s15]]   ;;  %s6008_s15 = smov 19  }
  0x1b   :  { %s6173_s27 = sld [smem:[%s7157_s0 + %s6005_s22]]   ;;  %s6009_s22 = smov 20  }
  0x1c   :  { %s6178_s4 = sld [smem:[%s7157_s0 + %s6006_s28]]   ;;  %s6010_s28 = smov 21  }
  0x1d   :  { %7253 = sst [smem:[#allocation78_spill]] %s6153_s30 }
  0x1e   :  { %7254 = sst [smem:[#allocation79_spill]] %s6158_s6 }
  0x1f   :  { %7255 = sst [smem:[#allocation80_spill]] %s6163_s12 }
  0x20   :  { %s6183_s30 = sld [smem:[%s7157_s0 + %s6007_s7]]   ;;  %s6011_s7 = smov 22  }
  0x21   :  { %7256 = sst [smem:[#allocation81_spill]] %s6173_s27 }
  0x22   :  { %7257 = sst [smem:[#allocation82_spill]] %s6178_s4 }
  0x23   :  { %s6188_s12 = sld [smem:[%s7157_s0 + %s6008_s15]]   ;;  %s6012_s15 = smov 23  }
  0x24   :  { %s6193_s27 = sld [smem:[%s7157_s0 + %s6009_s22]]   ;;  %s6013_s22 = smov 24  }
  0x25   :  { %s6198_s9 = sld [smem:[%s7157_s0 + %s6010_s28]]   ;;  %s6014_s28 = smov 25  }
  0x26   :  { %s6203_s8 = sld [smem:[%s7157_s0 + %s6011_s7]]   ;;  %s6015_s7 = smov 26  }
  0x27   :  { %s6208_s13 = sld [smem:[%s7157_s0 + %s6012_s15]]   ;;  %s6016_s15 = smov 27  }
  0x28   :  { %s6213_s29 = sld [smem:[%s7157_s0 + %s6013_s22]]   ;;  %s6017_s22 = smov 28  }
  0x29   :  { %7258 = sst [smem:[#allocation83_spill]] %s6188_s12 }
  0x2a   :  { %s6218_s17 = sld [smem:[%s7157_s0 + %s6014_s28]]   ;;  %s6018_s28 = smov 29  }
  0x2b   :  { %7259 = sst [smem:[#allocation84_spill]] %s6198_s9 }
  0x2c   :  { %7260 = sst [smem:[#allocation85_spill]] %s6203_s8 }
  0x2d   :  { %7261 = sst [smem:[#allocation86_spill]] %s6208_s13 }
  0x2e   :  { %7262 = sst [smem:[#allocation87_spill]] %s6213_s29 }
  0x2f   :  { %s6223_s8 = sld [smem:[%s7157_s0 + %s6015_s7]]   ;;  %s6019_s7 = smov 30  }
  0x30   :  { %s6228_s5 = sld [smem:[%s7157_s0 + %s6016_s15]]   ;;  %s6020_s15 = smov 31  }
  0x31   :  { %s6233_s29 = sld [smem:[%s7157_s0 + %s6017_s22]]   ;;  %s6021_s22 = smov 32  }
  0x32   :  { %s6238_s9 = sld [smem:[%s7157_s0 + %s6018_s28]]   ;;  %s6022_s28 = smov 33  }
  0x33   :  { %s6258_s12 = sld [smem:[%s7157_s0 + %s6022_s28]]   ;;  %s6026_s28 = smov 37  }
  0x34   :  { %s6278_s6 = sld [smem:[%s7157_s0 + %s6026_s28]]   ;;  %s6030_s28 = smov 41  }
  0x35   :  { %7263 = sst [smem:[#allocation88_spill]] %s6223_s8 }
  0x36   :  { %7264 = sst [smem:[#allocation89_spill]] %s6228_s5 }
  0x37   :  { %7265 = sst [smem:[#allocation90_spill]] %s6233_s29 }
  0x38   :  { %7266 = sst [smem:[#allocation91_spill]] %s6238_s9 }
  0x39   :  { %s6243_s8 = sld [smem:[%s7157_s0 + %s6019_s7]]   ;;  %s6023_s7 = smov 34  }
  0x3a   :  { %s6248_s5 = sld [smem:[%s7157_s0 + %s6020_s15]]   ;;  %s6024_s15 = smov 35  }
  0x3b   :  { %s6253_s29 = sld [smem:[%s7157_s0 + %s6021_s22]]   ;;  %s6025_s22 = smov 36  }
  0x3c   :  { %7270 = sst [smem:[#allocation95_spill]] %s6258_s12 }
  0x3d   :  { %s6268_s4 = sld [smem:[%s7157_s0 + %s6024_s15]]   ;;  %s6028_s15 = smov 39  }
  0x3e   :  { %7274 = sst [smem:[#allocation99_spill]] %s6278_s6 }
  0x3f   :  { %7267 = sst [smem:[#allocation92_spill]] %s6243_s8 }
  0x40   :  { %7268 = sst [smem:[#allocation93_spill]] %s6248_s5 }
  0x41   :  { %7269 = sst [smem:[#allocation94_spill]] %s6253_s29 }
  0x42   :  { %s6263_s8 = sld [smem:[%s7157_s0 + %s6023_s7]]   ;;  %s6027_s7 = smov 38  }
  0x43   :  { %7272 = sst [smem:[#allocation97_spill]] %s6268_s4 }
  0x44   :  { %s6273_s29 = sld [smem:[%s7157_s0 + %s6025_s22]]   ;;  %s6029_s22 = smov 40  }
  0x45   :  { %s6288_s19 = sld [smem:[%s7157_s0 + %s6028_s15]]   ;;  %s6032_s15 = smov 43  }
  0x46   :  { %s6298_s3 = sld [smem:[%s7157_s0 + %s6030_s28]]   ;;  %s6034_s28 = smov 45  }
  0x47   :  { %s6308_s21 = sld [smem:[%s7157_s0 + %s6032_s15]]  }
  0x48   :  { %7271 = sst [smem:[#allocation96_spill]] %s6263_s8 }
  0x49   :  { %s6283_s8 = sld [smem:[%s7157_s0 + %s6027_s7]]   ;;  %s6031_s7 = smov 42  }
  0x4a   :  { %7273 = sst [smem:[#allocation98_spill]] %s6273_s29 }
  0x4b   :  { %s6293_s29 = sld [smem:[%s7157_s0 + %s6029_s22]]   ;;  %s6033_s22 = smov 44  }
  0x4c   :  { %7277 = sst [smem:[#allocation102_spill]] %s6298_s3 }
  0x4d   :  { %s6318_s3 = sld [smem:[%s7157_s0 + %s6034_s28]]  }
  0x4f   :  { %7275 = sst [smem:[#allocation100_spill]] %s6283_s8 }
  0x50   :  { %s6303_s8 = sld [smem:[%s7157_s0 + %s6031_s7]]   ;;  %s6035_s7 = smov 46  }
  0x51   :  { %7276 = sst [smem:[#allocation101_spill]] %s6293_s29 }
  0x52   :  { %s6313_s29 = sld [smem:[%s7157_s0 + %s6033_s22]]  }
  0x53   :  { %7279 = sst [smem:[#allocation104_spill]] %s6318_s3 }
  0x56   :  { %7278 = sst [smem:[#allocation103_spill]] %s6303_s8 }
  0x57   :  { %s6323_s8 = sld [smem:[%s7157_s0 + %s6035_s7]]  }
  0x58   :  { %98 = vsyncpa [#allocation3], 0 }
  0x59   :  { %99 = vsyncpa [#allocation6], 0 }
  0x5a   :  { %100 = vsyncpa [#allocation9], 0 }
  0x5b   :  { %101 = vsyncpa [#allocation12], 0 }
  0x5c   :  { %102 = vsyncpa [#allocation15], 0 }
  0x5d   :  { %103 = vsyncpa [#allocation18], 0 }
  0x5e   :  { %104 = vsyncpa [#allocation21], 0 }
  0x5f   :  { %105 = vsyncpa [#allocation24], 0 }
  0x60   :  { %106 = vsyncpa [#allocation27], 0 }
  0x61   :  { %107 = vsyncpa [#allocation30], 0 }
  0x62   :  { %108 = vsyncpa [#allocation33], 0 }
  0x63   :  { %109 = vsyncpa [#allocation36], 0 }
  0x64   :  { %110 = vsyncpa [#allocation39], 0 }
  0x65   :  { %111 = vsyncpa [#allocation42], 0 }
  0x66   :  { %112 = vsyncpa [#allocation45], 0 }
  0x67   :  { %113 = vsyncpa [#allocation48], 0 }
  0x68   :  { %114 = vsyncpa [#allocation4], 0 }
  0x69   :  { %116 = vsyncpa [#allocation4 + $0x1], 0  ;;  %s6325_s0 = smov 0   ;;  %s6327_s15 = smov 0  }
  0x6a   :  { %s6329_s16 = smov 0   ;;  %s6331_s18 = smov 0  }
  0x6b LB: > { %s7280_s13 = sld [smem:[#allocation86_spill]]  ;;  %s6346_s22 = sadd.s32 4294967295, %s5988_s18   ;;  %s5984_s16 = sphi %s6329_s16, %s7357_s16   ;;  %s5980_s15 = sphi %s6327_s15, %s7359_s15   ;;  %s5976_s0 = sphi %s6325_s0, %s7358_s0   ;;  %s5988_s18 = sphi %s6331_s18, %s7355_s18  }
  0x6c   : > { %s7281_s12 = sld [smem:[#allocation95_spill]]  ;;  %s4270_s23 = sadd.s32 4294967294, %s5988_s18  }
  0x6d   : > { %s7282_s9 = sld [smem:[#allocation91_spill]]  ;;  %s6350_s26 = sadd.s32 1, %s5988_s18  }
  0x6e   : > { %s7283_s6 = sld [smem:[#allocation99_spill]]  ;;  %s1115_s28 = sadd.s32 1, %s5984_s16 }
  0x6f   : > { %s7284_s5 = sld [smem:[#allocation93_spill]]  ;;  %s1112_s1 = ssub.s32 %s5988_s18, %s6350_s26 }
  0x70   : > { %s7285_s4 = sld [smem:[#allocation97_spill]]  ;;  %p1125_p0 = scmp.ne.s32.totalorder %s5984_s16, %s5980_s15 }
  0x71   : > { %s7286_s14 = sld [smem:[#allocation76_spill]]  ;;  %p1113_p1 = scmp.eq.s32.totalorder %s1112_s1, 0 }
  0x72   : > { %7287 = sst [smem:[#allocation105_spill]] %s5976_s0  ;;  %p1126_p2 = scmp.eq.s32.totalorder %s6346_s22, 1 }
  0x73   : > { %7288 = sst [smem:[#allocation106_spill]] %s5984_s16  ;;  %p1131_p3 = scmp.ne.s32.totalorder %s5980_s15, %s5976_s0 }
  0x74   : > { %7289 = sst [smem:[#allocation107_spill]] %s5988_s18  ;;  %p1132_p4 = scmp.eq.s32.totalorder %s4270_s23, 1 }
  0x75   : > { %7290 = sst [smem:[#allocation108_spill]] %s6350_s26  ;;  %p6363_p5 = por %p1126_p2, %p1125_p0 }
  0x76   : > { %s6361_s2 = scalar_select %p1113_p1, %s5984_s16, %s1115_s28  }
  0x77   : > { %s7292_s7 = scalar_select %p6363_p5, 1, 0 }
  0x78   : > { %7291 = sst [smem:[#allocation109_spill]] %s6361_s2  ;;  %p6367_p6 = por %p1132_p4, %p1131_p3 }
  0x79   : > { %7293 = sst [smem:[#allocation110_spill]] %s7292_s7  ;;  %p4271_p7 = scmp.ge.s32.totalorder %s5988_s18, 1 }
  0x7a   : > { %s7294_s10 = scalar_select %p6367_p6, 1, 0 }
  0x7b   : > { %p1139_p8 = scmp.lt.s32.totalorder %s5988_s18, 3 }
  0x7c   : > { %7295 = sst [smem:[#allocation111_spill]] %s7294_s10 }
  0x7d   : > { %p6373_p9 = pnand %p4271_p7, %p1139_p8 }
  0x7e   : > { %p4682_p10 = scmp.eq.s32.totalorder (!%p6373_p9), %s6346_s22, 0  ;;  %s1163_s23 = sshll.u32 (!%p6373_p9), %s6118_s25, 4  ;;  %s1164_s23 = int_to_ptr.hbm [resolvable:$true] %s1163_s23 }
  0x7f   : > { %1143 = sbr.rel (%p6373_p9) target bundleno = 538 (0x21a), region = 12  ;;  %s6036_s28 = smov (!%p6373_p9), [#allocation5]  }
  0x80   : > { %s1165_s1 = sshll.u32 (!%p6373_p9), %s6036_s28, 4  ;;  %s1193_s2 = sshll.u32 (!%p6373_p9), %s7286_s14, 4  ;;  %s1166_s1 = int_to_ptr.vmem [resolvable:$true] %s1165_s1  ;;  %s6382_s2 = int_to_ptr.hbm [resolvable:$true] %s1193_s2 }
  0x81   : > { %s4994_s16 = sshra.s32 (!%p6373_p9), %s1164_s23, 4  ;;  %s5000_s10 = scalar_lea.hbm (!%p6373_p9), %s6118_s25, 1  ;;  %s4995_s16 = int_to_ptr.hbm [resolvable:$true] %s4994_s16 }
  0x82   : > { %s4996_s26 = scalar_lea.hbm (!%p6373_p9), %s4995_s16, 1  ;;  %p5001_p0 = scmp.lt.s32.totalorder (!%p6373_p9), %s4995_s16, %s6118_s25 }
  0x83   : > { %p4997_p11 = scmp.ne.s32.totalorder (!%p6373_p9), %s4995_s16, %s4996_s26  ;;  %p5002_p1 = scmp.lt.s32.totalorder (!%p6373_p9), %s5000_s10, %s4996_s26 }
  0x85   : > { %p4998_p12 = pnand %p4997_p11, %p4682_p10  ;;  %p5003_p2 = por %p5002_p1, %p5001_p0 }
  0x87   : > { %p4999_p13 = pneg %p4998_p12 }
  0x89   : > { %p5004_p3 = pnand %p5003_p2, %p4999_p13 }
  0x8b   : > { %5007 = shalt.err (!%p5004_p3)
}
  0x8c   : > { %4555 = dma.hbm_to_vmem [thread:$0]  (%p4682_p10), %s1164_s23, 16, %s1166_s1, [#allocation6]  }
  0x8d   : > { %s1217_s28 = sshll.u32 %s6148_s24, 4  ;;  %s6037_s0 = smov [#allocation8]   ;;  %s6391_s28 = int_to_ptr.hbm [resolvable:$true] %s1217_s28 }
  0x8e   : > { %s1195_s18 = sshll.u32 %s6037_s0, 4  ;;  %s5022_s7 = sshra.s32 %s6382_s2, 4  ;;  %s1196_s18 = int_to_ptr.vmem [resolvable:$true] %s1195_s18  ;;  %s5023_s7 = int_to_ptr.hbm [resolvable:$true] %s5022_s7 }
  0x8f   : > { %s5024_s16 = scalar_lea.hbm %s5023_s7, 1  ;;  %s5028_s26 = scalar_lea.hbm %s7286_s14, 1 }
  0x90   : > { %p5025_p4 = scmp.ne.s32.totalorder %s5023_s7, %s5024_s16  ;;  %p5029_p11 = scmp.lt.s32.totalorder %s5023_s7, %s7286_s14 }
  0x91   : > { %p5030_p12 = scmp.lt.s32.totalorder %s5028_s26, %s5024_s16 }
  0x92   : > { %p5026_p7 = pnand %p5025_p4, %p4682_p10 }
  0x93   : > { %p5031_p13 = por %p5030_p12, %p5029_p11 }
  0x94   : > { %p5027_p8 = pneg %p5026_p7 }
  0x96   : > { %p5032_p0 = pnand %p5031_p13, %p5027_p8 }
  0x98   : > { %5035 = shalt.err (!%p5032_p0)
}
  0x99   : > { %4559 = dma.hbm_to_vmem [thread:$0]  (%p4682_p10), %s6382_s2, 16, %s1196_s18, [#allocation9]  }
  0x9a   : > { %s6038_s0 = smov [#allocation11]   ;;  %s1247_s23 = sshll.u32 %s6168_s20, 4  ;;  %s6402_s23 = int_to_ptr.hbm [resolvable:$true] %s1247_s23 }
  0x9b   : > { %s1219_s10 = sshll.u32 %s6038_s0, 4  ;;  %s5050_s7 = sshra.s32 %s6391_s28, 4  ;;  %s1220_s10 = int_to_ptr.vmem [resolvable:$true] %s1219_s10  ;;  %s5051_s7 = int_to_ptr.hbm [resolvable:$true] %s5050_s7 }
  0x9c   : > { %s5052_s1 = scalar_lea.hbm %s5051_s7, 1  ;;  %s5056_s16 = scalar_lea.hbm %s6148_s24, 1 }
  0x9d   : > { %p5053_p1 = scmp.ne.s32.totalorder %s5051_s7, %s5052_s1  ;;  %p5057_p4 = scmp.lt.s32.totalorder %s5051_s7, %s6148_s24 }
  0x9e   : > { %p5058_p7 = scmp.lt.s32.totalorder %s5056_s16, %s5052_s1 }
  0x9f   : > { %p5054_p2 = pnand %p5053_p1, %p4682_p10 }
  0xa0   : > { %p5059_p8 = por %p5058_p7, %p5057_p4 }
  0xa1   : > { %p5055_p3 = pneg %p5054_p2 }
  0xa3   : > { %p5060_p11 = pnand %p5059_p8, %p5055_p3 }
  0xa5   : > { %5063 = shalt.err (!%p5060_p11)
}
  0xa6   : > { %4563 = dma.hbm_to_vmem [thread:$0]  (%p4682_p10), %s6391_s28, 16, %s1220_s10, [#allocation12]  }
  0xa7   : > { %s1274_s18 = sshll.u32 %s6183_s30, 4  ;;  %s6039_s2 = smov [#allocation14]   ;;  %s6413_s18 = int_to_ptr.hbm [resolvable:$true] %s1274_s18 }
  0xa8   : > { %s1249_s26 = sshll.u32 %s6039_s2, 4  ;;  %s5078_s0 = sshra.s32 %s6402_s23, 4  ;;  %s1250_s26 = int_to_ptr.vmem [resolvable:$true] %s1249_s26  ;;  %s5079_s0 = int_to_ptr.hbm [resolvable:$true] %s5078_s0 }
  0xa9   : > { %s5080_s7 = scalar_lea.hbm %s5079_s0, 1  ;;  %s5084_s1 = scalar_lea.hbm %s6168_s20, 1 }
  0xaa   : > { %p5081_p12 = scmp.ne.s32.totalorder %s5079_s0, %s5080_s7  ;;  %p5085_p1 = scmp.lt.s32.totalorder %s5079_s0, %s6168_s20 }
  0xab   : > { %p5086_p2 = scmp.lt.s32.totalorder %s5084_s1, %s5080_s7 }
  0xac   : > { %p5082_p13 = pnand %p5081_p12, %p4682_p10 }
  0xad   : > { %p5087_p3 = por %p5086_p2, %p5085_p1 }
  0xae   : > { %p5083_p0 = pneg %p5082_p13 }
  0xb0   : > { %p5088_p4 = pnand %p5087_p3, %p5083_p0 }
  0xb2   : > { %5091 = shalt.err (!%p5088_p4)
}
  0xb3   : > { %4567 = dma.hbm_to_vmem [thread:$0]  (%p4682_p10), %s6402_s23, 16, %s1250_s26, [#allocation15]  }
  0xb4   : > { %s6040_s28 = smov [#allocation17]   ;;  %s1297_s16 = sshll.u32 %s6193_s27, 4  ;;  %s6424_s16 = int_to_ptr.hbm [resolvable:$true] %s1297_s16 }
  0xb5   : > { %s1276_s10 = sshll.u32 %s6040_s28, 4  ;;  %s5106_s2 = sshra.s32 %s6413_s18, 4  ;;  %s1277_s10 = int_to_ptr.vmem [resolvable:$true] %s1276_s10  ;;  %s5107_s2 = int_to_ptr.hbm [resolvable:$true] %s5106_s2 }
  0xb6   : > { %s5108_s0 = scalar_lea.hbm %s5107_s2, 1  ;;  %s5112_s7 = scalar_lea.hbm %s6183_s30, 1 }
  0xb7   : > { %p5109_p7 = scmp.ne.s32.totalorder %s5107_s2, %s5108_s0  ;;  %p5113_p12 = scmp.lt.s32.totalorder %s5107_s2, %s6183_s30 }
  0xb8   : > { %p5114_p13 = scmp.lt.s32.totalorder %s5112_s7, %s5108_s0 }
  0xb9   : > { %p5110_p8 = pnand %p5109_p7, %p4682_p10 }
  0xba   : > { %p5115_p0 = por %p5114_p13, %p5113_p12 }
  0xbb   : > { %p5111_p11 = pneg %p5110_p8 }
  0xbd   : > { %p5116_p1 = pnand %p5115_p0, %p5111_p11 }
  0xbf   : > { %5119 = shalt.err (!%p5116_p1)
}
  0xc0   : > { %4571 = dma.hbm_to_vmem [thread:$0]  (%p4682_p10), %s6413_s18, 16, %s1277_s10, [#allocation18]  }
  0xc1   : > { %s6041_s23 = smov [#allocation20]   ;;  %s1327_s1 = sshll.u32 %s7280_s13, 4  ;;  %s1328_s1 = int_to_ptr.hbm [resolvable:$true] %s1327_s1 }
  0xc2   : > { %s1299_s26 = sshll.u32 %s6041_s23, 4  ;;  %s5134_s28 = sshra.s32 %s6424_s16, 4  ;;  %s1300_s26 = int_to_ptr.vmem [resolvable:$true] %s1299_s26  ;;  %s5135_s28 = int_to_ptr.hbm [resolvable:$true] %s5134_s28 }
  0xc3   : > { %s5136_s2 = scalar_lea.hbm %s5135_s28, 16  ;;  %s5140_s0 = scalar_lea.hbm %s6193_s27, 16 }
  0xc4   : > { %p5137_p2 = scmp.ne.s32.totalorder %s5135_s28, %s5136_s2  ;;  %p5141_p7 = scmp.lt.s32.totalorder %s5135_s28, %s6193_s27 }
  0xc5   : > { %p5142_p8 = scmp.lt.s32.totalorder %s5140_s0, %s5136_s2 }
  0xc6   : > { %p5138_p3 = pnand %p5137_p2, %p4682_p10 }
  0xc7   : > { %p5143_p11 = por %p5142_p8, %p5141_p7 }
  0xc8   : > { %p5139_p4 = pneg %p5138_p3 }
  0xca   : > { %p5144_p12 = pnand %p5143_p11, %p5139_p4 }
  0xcc   : > { %5147 = shalt.err (!%p5144_p12)
}
  0xcd   : > { %s7192_s7 = smov 64   ;;  %s7194_s18 = smov 4  }
  0xce   : > { %4575 = dma.hbm_to_vmem [thread:$0]  (%p4682_p10), %s6424_s16, 256, %s1300_s26, [#allocation21], %s7192_s7, %s7192_s7, %s7194_s18  }
  0xcf   : > { %s6044_s10 = smov [#allocation23]   ;;  %s1351_s28 = sshll.u32 %s6218_s17, 4  ;;  %s6447_s28 = int_to_ptr.hbm [resolvable:$true] %s1351_s28 }
  0xd0   : > { %s1329_s23 = sshll.u32 %s6044_s10, 4  ;;  %s5162_s2 = sshra.s32 %s1328_s1, 4  ;;  %s1330_s23 = int_to_ptr.vmem [resolvable:$true] %s1329_s23  ;;  %s5163_s2 = int_to_ptr.hbm [resolvable:$true] %s5162_s2 }
  0xd1   : > { %s5164_s0 = scalar_lea.hbm %s5163_s2, 1  ;;  %s5168_s14 = scalar_lea.hbm %s7280_s13, 1 }
  0xd2   : > { %p5165_p13 = scmp.ne.s32.totalorder %s5163_s2, %s5164_s0  ;;  %p5169_p2 = scmp.lt.s32.totalorder %s5163_s2, %s7280_s13 }
  0xd3   : > { %p5170_p3 = scmp.lt.s32.totalorder %s5168_s14, %s5164_s0 }
  0xd4   : > { %p5166_p0 = pnand %p5165_p13, %p4682_p10 }
  0xd5   : > { %p5171_p4 = por %p5170_p3, %p5169_p2 }
  0xd6   : > { %p5167_p1 = pneg %p5166_p0 }
  0xd8   : > { %p5172_p7 = pnand %p5171_p4, %p5167_p1 }
  0xda   : > { %5175 = shalt.err (!%p5172_p7)
}
  0xdb   : > { %4579 = dma.hbm_to_vmem [thread:$0]  (%p4682_p10), %s1328_s1, 16, %s1330_s23, [#allocation24]  }
  0xdc   : > { %s1381_s16 = sshll.u32 %s7282_s9, 4  ;;  %s6045_s26 = smov [#allocation26]   ;;  %s6456_s16 = int_to_ptr.hbm [resolvable:$true] %s1381_s16 }
  0xdd   : > { %s1353_s10 = sshll.u32 %s6045_s26, 4  ;;  %s5190_s7 = sshra.s32 %s6447_s28, 4  ;;  %s1354_s10 = int_to_ptr.vmem [resolvable:$true] %s1353_s10  ;;  %s5191_s7 = int_to_ptr.hbm [resolvable:$true] %s5190_s7 }
  0xde   : > { %s5192_s14 = scalar_lea.hbm %s5191_s7, 1  ;;  %s5196_s2 = scalar_lea.hbm %s6218_s17, 1 }
  0xdf   : > { %p5193_p8 = scmp.ne.s32.totalorder %s5191_s7, %s5192_s14  ;;  %p5197_p13 = scmp.lt.s32.totalorder %s5191_s7, %s6218_s17 }
  0xe0   : > { %p5198_p0 = scmp.lt.s32.totalorder %s5196_s2, %s5192_s14 }
  0xe1   : > { %p5194_p11 = pnand %p5193_p8, %p4682_p10 }
  0xe2   : > { %p5199_p1 = por %p5198_p0, %p5197_p13 }
  0xe3   : > { %p5195_p12 = pneg %p5194_p11 }
  0xe5   : > { %p5200_p2 = pnand %p5199_p1, %p5195_p12 }
  0xe7   : > { %5203 = shalt.err (!%p5200_p2)
}
  0xe8   : > { %4583 = dma.hbm_to_vmem [thread:$0]  (%p4682_p10), %s6447_s28, 16, %s1354_s10, [#allocation27]  }
  0xe9   : > { %s6046_s1 = smov [#allocation29]   ;;  %s1405_s0 = sshll.u32 %s7284_s5, 4  ;;  %s6467_s0 = int_to_ptr.hbm [resolvable:$true] %s1405_s0 }
  0xea   : > { %s1383_s23 = sshll.u32 %s6046_s1, 4  ;;  %s5218_s7 = sshra.s32 %s6456_s16, 4  ;;  %s1384_s23 = int_to_ptr.vmem [resolvable:$true] %s1383_s23  ;;  %s5219_s7 = int_to_ptr.hbm [resolvable:$true] %s5218_s7 }
  0xeb   : > { %s5220_s26 = scalar_lea.hbm %s5219_s7, 1  ;;  %s5224_s14 = scalar_lea.hbm %s7282_s9, 1 }
  0xec   : > { %p5221_p3 = scmp.ne.s32.totalorder %s5219_s7, %s5220_s26  ;;  %p5225_p8 = scmp.lt.s32.totalorder %s5219_s7, %s7282_s9 }
  0xed   : > { %p5226_p11 = scmp.lt.s32.totalorder %s5224_s14, %s5220_s26 }
  0xee   : > { %p5222_p4 = pnand %p5221_p3, %p4682_p10 }
  0xef   : > { %p5227_p12 = por %p5226_p11, %p5225_p8 }
  0xf0   : > { %p5223_p7 = pneg %p5222_p4 }
  0xf2   : > { %p5228_p13 = pnand %p5227_p12, %p5223_p7 }
  0xf4   : > { %5231 = shalt.err (!%p5228_p13)
}
  0xf5   : > { %4587 = dma.hbm_to_vmem [thread:$0]  (%p4682_p10), %s6456_s16, 16, %s1384_s23, [#allocation30]  }
  0xf6   : > { %s1431_s28 = sshll.u32 %s7281_s12, 4  ;;  %s6047_s10 = smov [#allocation32]   ;;  %s6478_s28 = int_to_ptr.hbm [resolvable:$true] %s1431_s28 }
  0xf7   : > { %s1407_s2 = sshll.u32 %s6047_s10, 4  ;;  %s5246_s1 = sshra.s32 %s6467_s0, 4  ;;  %s1408_s2 = int_to_ptr.vmem [resolvable:$true] %s1407_s2  ;;  %s5247_s1 = int_to_ptr.hbm [resolvable:$true] %s5246_s1 }
  0xf8   : > { %s5248_s7 = scalar_lea.hbm %s5247_s1, 1  ;;  %s5252_s26 = scalar_lea.hbm %s7284_s5, 1 }
  0xf9   : > { %p5249_p0 = scmp.ne.s32.totalorder %s5247_s1, %s5248_s7  ;;  %p5253_p3 = scmp.lt.s32.totalorder %s5247_s1, %s7284_s5 }
  0xfa   : > { %p5254_p4 = scmp.lt.s32.totalorder %s5252_s26, %s5248_s7 }
  0xfb   : > { %p5250_p1 = pnand %p5249_p0, %p4682_p10 }
  0xfc   : > { %p5255_p7 = por %p5254_p4, %p5253_p3 }
  0xfd   : > { %p5251_p2 = pneg %p5250_p1 }
  0xff   : > { %p5256_p8 = pnand %p5255_p7, %p5251_p2 }
 0x101   : > { %5259 = shalt.err (!%p5256_p8)
}
 0x102   : > { %4591 = dma.hbm_to_vmem [thread:$0]  (%p4682_p10), %s6467_s0, 16, %s1408_s2, [#allocation33]  }
 0x103   : > { %s6048_s16 = smov [#allocation35]   ;;  %s1457_s14 = sshll.u32 %s7285_s4, 4  ;;  %s6489_s14 = int_to_ptr.hbm [resolvable:$true] %s1457_s14 }
 0x104   : > { %s1433_s23 = sshll.u32 %s6048_s16, 4  ;;  %s5274_s10 = sshra.s32 %s6478_s28, 4  ;;  %s1434_s23 = int_to_ptr.vmem [resolvable:$true] %s1433_s23  ;;  %s5275_s10 = int_to_ptr.hbm [resolvable:$true] %s5274_s10 }
 0x105   : > { %s5276_s1 = scalar_lea.hbm %s5275_s10, 1  ;;  %s5280_s7 = scalar_lea.hbm %s7281_s12, 1 }
 0x106   : > { %p5277_p11 = scmp.ne.s32.totalorder %s5275_s10, %s5276_s1  ;;  %p5281_p0 = scmp.lt.s32.totalorder %s5275_s10, %s7281_s12 }
 0x107   : > { %p5282_p1 = scmp.lt.s32.totalorder %s5280_s7, %s5276_s1 }
 0x108   : > { %p5278_p12 = pnand %p5277_p11, %p4682_p10 }
 0x109   : > { %p5283_p2 = por %p5282_p1, %p5281_p0 }
 0x10a   : > { %p5279_p13 = pneg %p5278_p12 }
 0x10c   : > { %p5284_p3 = pnand %p5283_p2, %p5279_p13 }
 0x10e   : > { %5287 = shalt.err (!%p5284_p3)
}
 0x10f   : > { %4595 = dma.hbm_to_vmem [thread:$0]  (%p4682_p10), %s6478_s28, 16, %s1434_s23, [#allocation36]  }
 0x110   : > { %s1483_s0 = sshll.u32 %s7283_s6, 4  ;;  %s6049_s2 = smov [#allocation38]   ;;  %s6500_s0 = int_to_ptr.hbm [resolvable:$true] %s1483_s0 }
 0x111   : > { %s1459_s26 = sshll.u32 %s6049_s2, 4  ;;  %s5302_s16 = sshra.s32 %s6489_s14, 4  ;;  %s1460_s26 = int_to_ptr.vmem [resolvable:$true] %s1459_s26  ;;  %s5303_s16 = int_to_ptr.hbm [resolvable:$true] %s5302_s16 }
 0x112   : > { %s5304_s10 = scalar_lea.hbm %s5303_s16, 1  ;;  %s5308_s1 = scalar_lea.hbm %s7285_s4, 1 }
 0x113   : > { %p5305_p4 = scmp.ne.s32.totalorder %s5303_s16, %s5304_s10  ;;  %p5309_p11 = scmp.lt.s32.totalorder %s5303_s16, %s7285_s4 }
 0x114   : > { %p5310_p12 = scmp.lt.s32.totalorder %s5308_s1, %s5304_s10 }
 0x115   : > { %p5306_p7 = pnand %p5305_p4, %p4682_p10 }
 0x116   : > { %p5311_p13 = por %p5310_p12, %p5309_p11 }
 0x117   : > { %p5307_p8 = pneg %p5306_p7 }
 0x119   : > { %p5312_p0 = pnand %p5311_p13, %p5307_p8 }
 0x11b   : > { %5315 = shalt.err (!%p5312_p0)
}
 0x11c   : > { %4599 = dma.hbm_to_vmem [thread:$0]  (%p4682_p10), %s6489_s14, 16, %s1460_s26, [#allocation39]  }
 0x11d   : > { %s6050_s28 = smov [#allocation41]   ;;  %s1507_s7 = sshll.u32 %s6288_s19, 4  ;;  %s6511_s7 = int_to_ptr.hbm [resolvable:$true] %s1507_s7 }
 0x11e   : > { %s1485_s23 = sshll.u32 %s6050_s28, 4  ;;  %s5330_s2 = sshra.s32 %s6500_s0, 4  ;;  %s1486_s23 = int_to_ptr.vmem [resolvable:$true] %s1485_s23  ;;  %s5331_s2 = int_to_ptr.hbm [resolvable:$true] %s5330_s2 }
 0x11f   : > { %s5332_s16 = scalar_lea.hbm %s5331_s2, 1  ;;  %s5336_s10 = scalar_lea.hbm %s7283_s6, 1 }
 0x120   : > { %p5333_p1 = scmp.ne.s32.totalorder %s5331_s2, %s5332_s16  ;;  %p5337_p4 = scmp.lt.s32.totalorder %s5331_s2, %s7283_s6 }
 0x121   : > { %p5338_p7 = scmp.lt.s32.totalorder %s5336_s10, %s5332_s16 }
 0x122   : > { %p5334_p2 = pnand %p5333_p1, %p4682_p10 }
 0x123   : > { %p5339_p8 = por %p5338_p7, %p5337_p4 }
 0x124   : > { %p5335_p3 = pneg %p5334_p2 }
 0x126   : > { %p5340_p11 = pnand %p5339_p8, %p5335_p3 }
 0x128   : > { %5343 = shalt.err (!%p5340_p11)
}
 0x129   : > { %s7297_s14 = sld [smem:[#allocation102_spill]]  ;;  %s6051_s1 = smov [#allocation44]  }
 0x12a   : > { %4603 = dma.hbm_to_vmem [thread:$0]  (%p4682_p10), %s6500_s0, 16, %s1486_s23, [#allocation42]  }
 0x12b   : > { %s1509_s28 = sshll.u32 %s6051_s1, 4  ;;  %s5358_s2 = sshra.s32 %s6511_s7, 4  ;;  %s1510_s28 = int_to_ptr.vmem [resolvable:$true] %s1509_s28  ;;  %s5359_s2 = int_to_ptr.hbm [resolvable:$true] %s5358_s2 }
 0x12c   : > { %s5360_s16 = scalar_lea.hbm %s5359_s2, 1  ;;  %s5364_s10 = scalar_lea.hbm %s6288_s19, 1 }
 0x12d   : > { %p5361_p12 = scmp.ne.s32.totalorder %s5359_s2, %s5360_s16  ;;  %p5365_p1 = scmp.lt.s32.totalorder %s5359_s2, %s6288_s19 }
 0x12e   : > { %p5366_p2 = scmp.lt.s32.totalorder %s5364_s10, %s5360_s16 }
 0x12f   : > { %s1533_s26 = sshll.u32 %s7297_s14, 4  ;;  %p5362_p13 = pnand %p5361_p12, %p4682_p10  ;;  %s6522_s26 = int_to_ptr.hbm [resolvable:$true] %s1533_s26 }
 0x130   : > { %p5367_p3 = por %p5366_p2, %p5365_p1 }
 0x131   : > { %p5363_p0 = pneg %p5362_p13 }
 0x133   : > { %p5368_p4 = pnand %p5367_p3, %p5363_p0 }
 0x135   : > { %5371 = shalt.err (!%p5368_p4)
}
 0x136   : > { %s7298_s0 = sld [smem:[#allocation72_spill]]  ;;  %s6052_s1 = smov [#allocation47]  }
 0x137   : > { %4607 = dma.hbm_to_vmem [thread:$0]  (%p4682_p10), %s6511_s7, 16, %s1510_s28, [#allocation45]  }
 0x138   : > { %s1535_s18 = sshll.u32 %s6052_s1, 4  ;;  %s5386_s5 = sshra.s32 %s6522_s26, 4  ;;  %s1536_s18 = int_to_ptr.vmem [resolvable:$true] %s1535_s18  ;;  %s5387_s5 = int_to_ptr.hbm [resolvable:$true] %s5386_s5 }
 0x139   : > { %s5388_s2 = scalar_lea.hbm %s5387_s5, 1  ;;  %s5392_s16 = scalar_lea.hbm %s7297_s14, 1 }
 0x13a   : > { %p5389_p7 = scmp.ne.s32.totalorder %s5387_s5, %s5388_s2  ;;  %p5393_p12 = scmp.lt.s32.totalorder %s5387_s5, %s7297_s14 }
 0x13b   : > { %p5394_p13 = scmp.lt.s32.totalorder %s5392_s16, %s5388_s2 }
 0x13c   : > { %s7299_s23 = smov %s7298_s0  ;;  %s1151_s4 = sshll.u32 %s7298_s0, 4  ;;  %s1152_s4 = int_to_ptr.hbm [resolvable:$true] %s1151_s4 }
 0x13d   : > { %p5390_p8 = pnand %p5389_p7, %p4682_p10  ;;  %p5395_p0 = por %p5394_p13, %p5393_p12 }
 0x13f   : > { %p5391_p11 = pneg %p5390_p8 }
 0x141   : > { %p5396_p1 = pnand %p5395_p0, %p5391_p11 }
 0x143   : > { %5399 = shalt.err (!%p5396_p1)
}
 0x144   : > { %s7300_s7 = sld [smem:[#allocation74_spill]]  ;;  %s6053_s28 = smov [#allocation2]  }
 0x145   : > { %4611 = dma.hbm_to_vmem [thread:$0]  (%p4682_p10), %s6522_s26, 16, %s1536_s18, [#allocation48]  }
 0x146   : > { %s1153_s10 = sshll.u32 %s6053_s28, 4  ;;  %s5414_s5 = sshra.s32 %s1152_s4, 4  ;;  %s1154_s10 = int_to_ptr.vmem [resolvable:$true] %s1153_s10  ;;  %s5415_s5 = int_to_ptr.hbm [resolvable:$true] %s5414_s5 }
 0x147   : > { %s5416_s1 = scalar_lea.hbm %s5415_s5, 1  ;;  %s5420_s2 = scalar_lea.hbm %s7299_s23, 1 }
 0x148   : > { %p5417_p2 = scmp.ne.s32.totalorder %s5415_s5, %s5416_s1  ;;  %p5421_p7 = scmp.lt.s32.totalorder %s5415_s5, %s7299_s23 }
 0x149   : > { %p5422_p8 = scmp.lt.s32.totalorder %s5420_s2, %s5416_s1 }
 0x14a   : > { %s1178_s0 = sshll.u32 %s7300_s7, 4  ;;  %p5418_p3 = pnand %p5417_p2, %p4682_p10  ;;  %s6542_s0 = int_to_ptr.hbm [resolvable:$true] %s1178_s0 }
 0x14b   : > { %p5423_p11 = por %p5422_p8, %p5421_p7 }
 0x14c   : > { %p5419_p4 = pneg %p5418_p3 }
 0x14e   : > { %p5424_p12 = pnand %p5423_p11, %p5419_p4 }
 0x150   : > { %5427 = shalt.err (!%p5424_p12)
}
 0x151   : > { %s7301_s18 = sld [smem:[#allocation77_spill]]  ;;  %s6054_s28 = smov [#allocation7]  }
 0x152   : > { %4553 = dma.hbm_to_vmem [thread:$0]  (%p4682_p10), %s1152_s4, 16, %s1154_s10, [#allocation3]  }
 0x153   : > { %s1180_s6 = sshll.u32 %s6054_s28, 4  ;;  %s5442_s9 = sshra.s32 %s6542_s0, 4  ;;  %s1181_s6 = int_to_ptr.vmem [resolvable:$true] %s1180_s6  ;;  %s5443_s9 = int_to_ptr.hbm [resolvable:$true] %s5442_s9 }
 0x154   : > { %s5444_s5 = scalar_lea.hbm %s5443_s9, 1  ;;  %s5448_s1 = scalar_lea.hbm %s7300_s7, 1 }
 0x155   : > { %p5445_p13 = scmp.ne.s32.totalorder %s5443_s9, %s5444_s5  ;;  %p5449_p2 = scmp.lt.s32.totalorder %s5443_s9, %s7300_s7 }
 0x156   : > { %p5450_p3 = scmp.lt.s32.totalorder %s5448_s1, %s5444_s5 }
 0x157   : > { %s7302_s26 = smov %s7301_s18  ;;  %s1205_s16 = sshll.u32 %s7301_s18, 4  ;;  %s6551_s16 = int_to_ptr.hbm [resolvable:$true] %s1205_s16 }
 0x158   : > { %p5446_p0 = pnand %p5445_p13, %p4682_p10  ;;  %p5451_p4 = por %p5450_p3, %p5449_p2 }
 0x15a   : > { %p5447_p1 = pneg %p5446_p0 }
 0x15c   : > { %p5452_p7 = pnand %p5451_p4, %p5447_p1 }
 0x15e   : > { %5455 = shalt.err (!%p5452_p7)
}
 0x15f   : > { %s7303_s4 = sld [smem:[#allocation79_spill]]  ;;  %s6055_s10 = smov [#allocation10]  }
 0x160   : > { %4557 = dma.hbm_to_vmem [thread:$0]  (%p4682_p10), %s6542_s0, 16, %s1181_s6, [#allocation6]  }
 0x161   : > { %s1207_s2 = sshll.u32 %s6055_s10, 4  ;;  %s5470_s9 = sshra.s32 %s6551_s16, 4  ;;  %s1208_s2 = int_to_ptr.vmem [resolvable:$true] %s1207_s2  ;;  %s5471_s9 = int_to_ptr.hbm [resolvable:$true] %s5470_s9 }
 0x162   : > { %s5472_s28 = scalar_lea.hbm %s5471_s9, 1  ;;  %s5476_s5 = scalar_lea.hbm %s7302_s26, 1 }
 0x163   : > { %p5473_p8 = scmp.ne.s32.totalorder %s5471_s9, %s5472_s28  ;;  %p5477_p13 = scmp.lt.s32.totalorder %s5471_s9, %s7302_s26 }
 0x164   : > { %p5478_p0 = scmp.lt.s32.totalorder %s5476_s5, %s5472_s28 }
 0x165   : > { %s1232_s18 = sshll.u32 %s7303_s4, 4  ;;  %p5474_p11 = pnand %p5473_p8, %p4682_p10  ;;  %s6562_s18 = int_to_ptr.hbm [resolvable:$true] %s1232_s18 }
 0x166   : > { %p5479_p1 = por %p5478_p0, %p5477_p13 }
 0x167   : > { %p5475_p12 = pneg %p5474_p11 }
 0x169   : > { %p5480_p2 = pnand %p5479_p1, %p5475_p12 }
 0x16b   : > { %5483 = shalt.err (!%p5480_p2)
}
 0x16c   : > { %s7304_s6 = sld [smem:[#allocation82_spill]]  ;;  %s6056_s1 = smov [#allocation13]  }
 0x16d   : > { %4561 = dma.hbm_to_vmem [thread:$0]  (%p4682_p10), %s6551_s16, 16, %s1208_s2, [#allocation9]  }
 0x16e   : > { %s1234_s10 = sshll.u32 %s6056_s1, 4  ;;  %s5498_s9 = sshra.s32 %s6562_s18, 4  ;;  %s1235_s10 = int_to_ptr.vmem [resolvable:$true] %s1234_s10  ;;  %s5499_s9 = int_to_ptr.hbm [resolvable:$true] %s5498_s9 }
 0x16f   : > { %s5500_s28 = scalar_lea.hbm %s5499_s9, 1  ;;  %s5504_s5 = scalar_lea.hbm %s7303_s4, 1 }
 0x170   : > { %p5501_p3 = scmp.ne.s32.totalorder %s5499_s9, %s5500_s28  ;;  %p5505_p8 = scmp.lt.s32.totalorder %s5499_s9, %s7303_s4 }
 0x171   : > { %p5506_p11 = scmp.lt.s32.totalorder %s5504_s5, %s5500_s28 }
 0x172   : > { %s1262_s0 = sshll.u32 %s7304_s6, 4  ;;  %p5502_p4 = pnand %p5501_p3, %p4682_p10  ;;  %s6573_s0 = int_to_ptr.hbm [resolvable:$true] %s1262_s0 }
 0x173   : > { %p5507_p12 = por %p5506_p11, %p5505_p8 }
 0x174   : > { %p5503_p7 = pneg %p5502_p4 }
 0x176   : > { %p5508_p13 = pnand %p5507_p12, %p5503_p7 }
 0x178   : > { %5511 = shalt.err (!%p5508_p13)
}
 0x179   : > { %s7305_s16 = sld [smem:[#allocation83_spill]]  ;;  %s6057_s1 = smov [#allocation16]  }
 0x17a   : > { %4565 = dma.hbm_to_vmem [thread:$0]  (%p4682_p10), %s6562_s18, 16, %s1235_s10, [#allocation12]  }
 0x17b   : > { %s1264_s7 = sshll.u32 %s6057_s1, 4  ;;  %s5526_s9 = sshra.s32 %s6573_s0, 4  ;;  %s1265_s7 = int_to_ptr.vmem [resolvable:$true] %s1264_s7  ;;  %s5527_s9 = int_to_ptr.hbm [resolvable:$true] %s5526_s9 }
 0x17c   : > { %s5528_s28 = scalar_lea.hbm %s5527_s9, 1  ;;  %s5532_s5 = scalar_lea.hbm %s7304_s6, 1 }
 0x17d   : > { %p5529_p0 = scmp.ne.s32.totalorder %s5527_s9, %s5528_s28  ;;  %p5533_p3 = scmp.lt.s32.totalorder %s5527_s9, %s7304_s6 }
 0x17e   : > { %p5534_p4 = scmp.lt.s32.totalorder %s5532_s5, %s5528_s28 }
 0x17f   : > { %s7306_s2 = smov %s7305_s16  ;;  %s1286_s12 = sshll.u32 %s7305_s16, 4  ;;  %s6584_s12 = int_to_ptr.hbm [resolvable:$true] %s1286_s12 }
 0x180   : > { %p5530_p1 = pnand %p5529_p0, %p4682_p10  ;;  %p5535_p7 = por %p5534_p4, %p5533_p3 }
 0x182   : > { %p5531_p2 = pneg %p5530_p1 }
 0x184   : > { %p5536_p8 = pnand %p5535_p7, %p5531_p2 }
 0x186   : > { %5539 = shalt.err (!%p5536_p8)
}
 0x187   : > { %s7307_s18 = sld [smem:[#allocation84_spill]]  ;;  %s6058_s1 = smov [#allocation19]  }
 0x188   : > { %4569 = dma.hbm_to_vmem [thread:$0]  (%p4682_p10), %s6573_s0, 16, %s1265_s7, [#allocation15]  }
 0x189   : > { %s1288_s4 = sshll.u32 %s6058_s1, 4  ;;  %s5554_s9 = sshra.s32 %s6584_s12, 4  ;;  %s1289_s4 = int_to_ptr.vmem [resolvable:$true] %s1288_s4  ;;  %s5555_s9 = int_to_ptr.hbm [resolvable:$true] %s5554_s9 }
 0x18a   : > { %s5556_s28 = scalar_lea.hbm %s5555_s9, 1  ;;  %s5560_s5 = scalar_lea.hbm %s7306_s2, 1 }
 0x18b   : > { %p5557_p11 = scmp.ne.s32.totalorder %s5555_s9, %s5556_s28  ;;  %p5561_p0 = scmp.lt.s32.totalorder %s5555_s9, %s7306_s2 }
 0x18c   : > { %p5562_p1 = scmp.lt.s32.totalorder %s5560_s5, %s5556_s28 }
 0x18d   : > { %s7308_s10 = smov %s7307_s18  ;;  %s1312_s16 = sshll.u32 %s7307_s18, 4  ;;  %s6595_s16 = int_to_ptr.hbm [resolvable:$true] %s1312_s16 }
 0x18e   : > { %p5558_p12 = pnand %p5557_p11, %p4682_p10  ;;  %p5563_p2 = por %p5562_p1, %p5561_p0 }
 0x190   : > { %p5559_p13 = pneg %p5558_p12 }
 0x192   : > { %p5564_p3 = pnand %p5563_p2, %p5559_p13 }
 0x194   : > { %5567 = shalt.err (!%p5564_p3)
}
 0x195   : > { %s7309_s7 = sld [smem:[#allocation87_spill]]  ;;  %s6059_s0 = smov [#allocation22]  }
 0x196   : > { %4573 = dma.hbm_to_vmem [thread:$0]  (%p4682_p10), %s6584_s12, 16, %s1289_s4, [#allocation18]  }
 0x197   : > { %s1314_s18 = sshll.u32 %s6059_s0, 4  ;;  %s5582_s9 = sshra.s32 %s6595_s16, 4  ;;  %s1315_s18 = int_to_ptr.vmem [resolvable:$true] %s1314_s18  ;;  %s5583_s9 = int_to_ptr.hbm [resolvable:$true] %s5582_s9 }
 0x198   : > { %s5584_s28 = scalar_lea.hbm %s5583_s9, 1  ;;  %s5588_s5 = scalar_lea.hbm %s7308_s10, 1 }
 0x199   : > { %p5585_p4 = scmp.ne.s32.totalorder %s5583_s9, %s5584_s28  ;;  %p5589_p11 = scmp.lt.s32.totalorder %s5583_s9, %s7308_s10 }
 0x19a   : > { %p5590_p12 = scmp.lt.s32.totalorder %s5588_s5, %s5584_s28 }
 0x19b   : > { %s1339_s1 = sshll.u32 %s7309_s7, 4  ;;  %p5586_p7 = pnand %p5585_p4, %p4682_p10  ;;  %s6606_s1 = int_to_ptr.hbm [resolvable:$true] %s1339_s1 }
 0x19c   : > { %p5591_p13 = por %p5590_p12, %p5589_p11 }
 0x19d   : > { %p5587_p8 = pneg %p5586_p7 }
 0x19f   : > { %p5592_p0 = pnand %p5591_p13, %p5587_p8 }
 0x1a1   : > { %5595 = shalt.err (!%p5592_p0)
}
 0x1a2   : > { %s7310_s12 = sld [smem:[#allocation89_spill]]  ;;  %s6060_s0 = smov [#allocation25]  }
 0x1a3   : > { %4577 = dma.hbm_to_vmem [thread:$0]  (%p4682_p10), %s6595_s16, 16, %s1315_s18, [#allocation21]  }
 0x1a4   : > { %s1341_s2 = sshll.u32 %s6060_s0, 4  ;;  %s5610_s9 = sshra.s32 %s6606_s1, 4  ;;  %s1342_s2 = int_to_ptr.vmem [resolvable:$true] %s1341_s2  ;;  %s5611_s9 = int_to_ptr.hbm [resolvable:$true] %s5610_s9 }
 0x1a5   : > { %s5612_s28 = scalar_lea.hbm %s5611_s9, 1  ;;  %s5616_s5 = scalar_lea.hbm %s7309_s7, 1 }
 0x1a6   : > { %p5613_p1 = scmp.ne.s32.totalorder %s5611_s9, %s5612_s28  ;;  %p5617_p4 = scmp.lt.s32.totalorder %s5611_s9, %s7309_s7 }
 0x1a7   : > { %p5618_p7 = scmp.lt.s32.totalorder %s5616_s5, %s5612_s28 }
 0x1a8   : > { %s1366_s4 = sshll.u32 %s7310_s12, 4  ;;  %p5614_p2 = pnand %p5613_p1, %p4682_p10  ;;  %s6617_s4 = int_to_ptr.hbm [resolvable:$true] %s1366_s4 }
 0x1a9   : > { %p5619_p8 = por %p5618_p7, %p5617_p4 }
 0x1aa   : > { %p5615_p3 = pneg %p5614_p2 }
 0x1ac   : > { %p5620_p11 = pnand %p5619_p8, %p5615_p3 }
 0x1ae   : > { %5623 = shalt.err (!%p5620_p11)
}
 0x1af   : > { %s7311_s16 = sld [smem:[#allocation92_spill]]  ;;  %s6061_s18 = smov [#allocation28]  }
 0x1b0   : > { %4581 = dma.hbm_to_vmem [thread:$0]  (%p4682_p10), %s6606_s1, 16, %s1342_s2, [#allocation24]  }
 0x1b1   : > { %s1368_s0 = sshll.u32 %s6061_s18, 4  ;;  %s5638_s9 = sshra.s32 %s6617_s4, 4  ;;  %s1369_s0 = int_to_ptr.vmem [resolvable:$true] %s1368_s0  ;;  %s5639_s9 = int_to_ptr.hbm [resolvable:$true] %s5638_s9 }
 0x1b2   : > { %s5640_s28 = scalar_lea.hbm %s5639_s9, 1  ;;  %s5644_s5 = scalar_lea.hbm %s7310_s12, 1 }
 0x1b3   : > { %p5641_p12 = scmp.ne.s32.totalorder %s5639_s9, %s5640_s28  ;;  %p5645_p1 = scmp.lt.s32.totalorder %s5639_s9, %s7310_s12 }
 0x1b4   : > { %p5646_p2 = scmp.lt.s32.totalorder %s5644_s5, %s5640_s28 }
 0x1b5   : > { %s7312_s6 = smov %s7311_s16  ;;  %s1393_s10 = sshll.u32 %s7311_s16, 4  ;;  %s6628_s10 = int_to_ptr.hbm [resolvable:$true] %s1393_s10 }
 0x1b6   : > { %p5642_p13 = pnand %p5641_p12, %p4682_p10  ;;  %p5647_p3 = por %p5646_p2, %p5645_p1 }
 0x1b8   : > { %p5643_p0 = pneg %p5642_p13 }
 0x1ba   : > { %p5648_p4 = pnand %p5647_p3, %p5643_p0 }
 0x1bc   : > { %5651 = shalt.err (!%p5648_p4)
}
 0x1bd   : > { %s7313_s2 = sld [smem:[#allocation94_spill]]  ;;  %s6062_s16 = smov [#allocation31]  }
 0x1be   : > { %4585 = dma.hbm_to_vmem [thread:$0]  (%p4682_p10), %s6617_s4, 16, %s1369_s0, [#allocation27]  }
 0x1bf   : > { %s1395_s18 = sshll.u32 %s6062_s16, 4  ;;  %s5666_s9 = sshra.s32 %s6628_s10, 4  ;;  %s1396_s18 = int_to_ptr.vmem [resolvable:$true] %s1395_s18  ;;  %s5667_s9 = int_to_ptr.hbm [resolvable:$true] %s5666_s9 }
 0x1c0   : > { %s5668_s28 = scalar_lea.hbm %s5667_s9, 1  ;;  %s5672_s5 = scalar_lea.hbm %s7312_s6, 1 }
 0x1c1   : > { %p5669_p7 = scmp.ne.s32.totalorder %s5667_s9, %s5668_s28  ;;  %p5673_p12 = scmp.lt.s32.totalorder %s5667_s9, %s7312_s6 }
 0x1c2   : > { %p5674_p13 = scmp.lt.s32.totalorder %s5672_s5, %s5668_s28 }
 0x1c3   : > { %s1416_s1 = sshll.u32 %s7313_s2, 4  ;;  %p5670_p8 = pnand %p5669_p7, %p4682_p10  ;;  %s6639_s1 = int_to_ptr.hbm [resolvable:$true] %s1416_s1 }
 0x1c4   : > { %p5675_p0 = por %p5674_p13, %p5673_p12 }
 0x1c5   : > { %p5671_p11 = pneg %p5670_p8 }
 0x1c7   : > { %p5676_p1 = pnand %p5675_p0, %p5671_p11 }
 0x1c9   : > { %5679 = shalt.err (!%p5676_p1)
}
 0x1ca   : > { %s7314_s4 = sld [smem:[#allocation96_spill]]  ;;  %s6063_s0 = smov [#allocation34]  }
 0x1cb   : > { %4589 = dma.hbm_to_vmem [thread:$0]  (%p4682_p10), %s6628_s10, 16, %s1396_s18, [#allocation30]  }
 0x1cc   : > { %s1418_s16 = sshll.u32 %s6063_s0, 4  ;;  %s5694_s9 = sshra.s32 %s6639_s1, 4  ;;  %s1419_s16 = int_to_ptr.vmem [resolvable:$true] %s1418_s16  ;;  %s5695_s9 = int_to_ptr.hbm [resolvable:$true] %s5694_s9 }
 0x1cd   : > { %s5696_s28 = scalar_lea.hbm %s5695_s9, 16  ;;  %s5700_s5 = scalar_lea.hbm %s7313_s2, 16 }
 0x1ce   : > { %p5697_p2 = scmp.ne.s32.totalorder %s5695_s9, %s5696_s28  ;;  %p5701_p7 = scmp.lt.s32.totalorder %s5695_s9, %s7313_s2 }
 0x1cf   : > { %p5702_p8 = scmp.lt.s32.totalorder %s5700_s5, %s5696_s28 }
 0x1d0   : > { %s1442_s7 = sshll.u32 %s7314_s4, 4  ;;  %p5698_p3 = pnand %p5697_p2, %p4682_p10  ;;  %s6650_s7 = int_to_ptr.hbm [resolvable:$true] %s1442_s7 }
 0x1d1   : > { %p5703_p11 = por %p5702_p8, %p5701_p7 }
 0x1d2   : > { %p5699_p4 = pneg %p5698_p3 }
 0x1d4   : > { %p5704_p12 = pnand %p5703_p11, %p5699_p4 }
 0x1d6   : > { %5707 = shalt.err (!%p5704_p12)
}
 0x1d7   : > { %s7315_s10 = smov 4   ;;  %s7316_s18 = smov 64  }
 0x1d8   : > { %s7317_s0 = sld [smem:[#allocation98_spill]]  ;;  %s6064_s13 = smov [#allocation37]  }
 0x1d9   : > { %4593 = dma.hbm_to_vmem [thread:$0]  (%p4682_p10), %s6639_s1, 256, %s1419_s16, [#allocation33], %s7316_s18, %s7316_s18, %s7315_s10  }
 0x1da   : > { %s1444_s14 = sshll.u32 %s6064_s13, 4  ;;  %s5722_s9 = sshra.s32 %s6650_s7, 4  ;;  %s1445_s14 = int_to_ptr.vmem [resolvable:$true] %s1444_s14  ;;  %s5723_s9 = int_to_ptr.hbm [resolvable:$true] %s5722_s9 }
 0x1db   : > { %s5724_s28 = scalar_lea.hbm %s5723_s9, 16  ;;  %s5728_s5 = scalar_lea.hbm %s7314_s4, 16 }
 0x1dc   : > { %p5725_p13 = scmp.ne.s32.totalorder %s5723_s9, %s5724_s28  ;;  %p5729_p2 = scmp.lt.s32.totalorder %s5723_s9, %s7314_s4 }
 0x1dd   : > { %p5730_p3 = scmp.lt.s32.totalorder %s5728_s5, %s5724_s28 }
 0x1de   : > { %s7318_s6 = smov %s7317_s0  ;;  %s1468_s12 = sshll.u32 %s7317_s0, 4  ;;  %s6664_s12 = int_to_ptr.hbm [resolvable:$true] %s1468_s12 }
 0x1df   : > { %p5726_p0 = pnand %p5725_p13, %p4682_p10  ;;  %p5731_p4 = por %p5730_p3, %p5729_p2 }
 0x1e1   : > { %p5727_p1 = pneg %p5726_p0 }
 0x1e3   : > { %p5732_p7 = pnand %p5731_p4, %p5727_p1 }
 0x1e5   : > { %5735 = shalt.err (!%p5732_p7)
}
 0x1e6   : > { %s7319_s13 = sld [smem:[#allocation100_spill]]  ;;  %s6065_s1 = smov [#allocation40]  }
 0x1e7   : > { %4597 = dma.hbm_to_vmem [thread:$0]  (%p4682_p10), %s6650_s7, 256, %s1445_s14, [#allocation36], %s7316_s18, %s7316_s18, %s7315_s10  }
 0x1e8   : > { %s1470_s16 = sshll.u32 %s6065_s1, 4  ;;  %s5750_s9 = sshra.s32 %s6664_s12, 4  ;;  %s1471_s16 = int_to_ptr.vmem [resolvable:$true] %s1470_s16  ;;  %s5751_s9 = int_to_ptr.hbm [resolvable:$true] %s5750_s9 }
 0x1e9   : > { %s5752_s28 = scalar_lea.hbm %s5751_s9, 16  ;;  %s5756_s5 = scalar_lea.hbm %s7318_s6, 16 }
 0x1ea   : > { %p5753_p8 = scmp.ne.s32.totalorder %s5751_s9, %s5752_s28  ;;  %p5757_p13 = scmp.lt.s32.totalorder %s5751_s9, %s7318_s6 }
 0x1eb   : > { %p5758_p0 = scmp.lt.s32.totalorder %s5756_s5, %s5752_s28 }
 0x1ec   : > { %s1495_s0 = sshll.u32 %s7319_s13, 4  ;;  %p5754_p11 = pnand %p5753_p8, %p4682_p10  ;;  %s6678_s0 = int_to_ptr.hbm [resolvable:$true] %s1495_s0 }
 0x1ed   : > { %p5759_p1 = por %p5758_p0, %p5757_p13 }
 0x1ee   : > { %p5755_p12 = pneg %p5754_p11 }
 0x1f0   : > { %p5760_p2 = pnand %p5759_p1, %p5755_p12 }
 0x1f2   : > { %5763 = shalt.err (!%p5760_p2)
}
 0x1f3   : > { %s7320_s14 = sld [smem:[#allocation101_spill]]  ;;  %s6066_s1 = smov [#allocation43]  }
 0x1f4   : > { %4601 = dma.hbm_to_vmem [thread:$0]  (%p4682_p10), %s6664_s12, 256, %s1471_s16, [#allocation39], %s7316_s18, %s7316_s18, %s7315_s10  }
 0x1f5   : > { %s1497_s2 = sshll.u32 %s6066_s1, 4  ;;  %s5778_s9 = sshra.s32 %s6678_s0, 4  ;;  %s1498_s2 = int_to_ptr.vmem [resolvable:$true] %s1497_s2  ;;  %s5779_s9 = int_to_ptr.hbm [resolvable:$true] %s5778_s9 }
 0x1f6   : > { %s5780_s28 = scalar_lea.hbm %s5779_s9, 1  ;;  %s5784_s5 = scalar_lea.hbm %s7319_s13, 1 }
 0x1f7   : > { %p5781_p3 = scmp.ne.s32.totalorder %s5779_s9, %s5780_s28  ;;  %p5785_p8 = scmp.lt.s32.totalorder %s5779_s9, %s7319_s13 }
 0x1f8   : > { %p5786_p11 = scmp.lt.s32.totalorder %s5784_s5, %s5780_s28 }
 0x1f9   : > { %s1518_s7 = sshll.u32 %s7320_s14, 4  ;;  %p5782_p4 = pnand %p5781_p3, %p4682_p10  ;;  %s6692_s7 = int_to_ptr.hbm [resolvable:$true] %s1518_s7 }
 0x1fa   : > { %p5787_p12 = por %p5786_p11, %p5785_p8 }
 0x1fb   : > { %p5783_p7 = pneg %p5782_p4 }
 0x1fd   : > { %p5788_p13 = pnand %p5787_p12, %p5783_p7 }
 0x1ff   : > { %5791 = shalt.err (!%p5788_p13)
}
 0x200   : > { %4605 = dma.hbm_to_vmem [thread:$0]  (%p4682_p10), %s6678_s0, 16, %s1498_s2, [#allocation42]  }
 0x201   : > { %s6067_s12 = smov [#allocation46]   ;;  %s1548_s1 = sshll.u32 %s6308_s21, 4  ;;  %s1549_s1 = int_to_ptr.hbm [resolvable:$true] %s1548_s1 }
 0x202   : > { %s1520_s16 = sshll.u32 %s6067_s12, 4  ;;  %s5806_s4 = sshra.s32 %s6692_s7, 4  ;;  %s1521_s16 = int_to_ptr.vmem [resolvable:$true] %s1520_s16  ;;  %s5807_s4 = int_to_ptr.hbm [resolvable:$true] %s5806_s4 }
 0x203   : > { %s5808_s9 = scalar_lea.hbm %s5807_s4, 16  ;;  %s5812_s28 = scalar_lea.hbm %s7320_s14, 16 }
 0x204   : > { %p5809_p0 = scmp.ne.s32.totalorder %s5807_s4, %s5808_s9  ;;  %p5813_p3 = scmp.lt.s32.totalorder %s5807_s4, %s7320_s14 }
 0x205   : > { %p5814_p4 = scmp.lt.s32.totalorder %s5812_s28, %s5808_s9 }
 0x206   : > { %p5810_p1 = pnand %p5809_p0, %p4682_p10 }
 0x207   : > { %p5815_p7 = por %p5814_p4, %p5813_p3 }
 0x208   : > { %p5811_p2 = pneg %p5810_p1 }
 0x20a   : > { %p5816_p8 = pnand %p5815_p7, %p5811_p2 }
 0x20c   : > { %5819 = shalt.err (!%p5816_p8)
}
 0x20d   : > { %4609 = dma.hbm_to_vmem [thread:$0]  (%p4682_p10), %s6692_s7, 256, %s1521_s16, [#allocation45], %s7316_s18, %s7316_s18, %s7315_s10  }
 0x20e   : > { %s6068_s2 = smov [#allocation49]   ;;  %s5834_s5 = sshra.s32 %s1549_s1, 4  ;;  %s5835_s5 = int_to_ptr.hbm [resolvable:$true] %s5834_s5 }
 0x20f   : > { %s1550_s0 = sshll.u32 %s6068_s2, 4  ;;  %s5836_s4 = scalar_lea.hbm %s5835_s5, 1  ;;  %s1551_s0 = int_to_ptr.vmem [resolvable:$true] %s1550_s0 }
 0x210   : > { %p5837_p11 = scmp.ne.s32.totalorder %s5835_s5, %s5836_s4  ;;  %s5840_s12 = scalar_lea.hbm %s6308_s21, 1 }
 0x211   : > { %p5841_p0 = scmp.lt.s32.totalorder %s5835_s5, %s6308_s21  ;;  %p5842_p1 = scmp.lt.s32.totalorder %s5840_s12, %s5836_s4 }
 0x212   : > { %p5838_p12 = pnand %p5837_p11, %p4682_p10 }
 0x213   : > { %p5843_p2 = por %p5842_p1, %p5841_p0 }
 0x214   : > { %p5839_p13 = pneg %p5838_p12 }
 0x216   : > { %p5844_p3 = pnand %p5843_p2, %p5839_p13 }
 0x218   : > { %5847 = shalt.err (!%p5844_p3)
}
 0x219   : > { %4613 = dma.hbm_to_vmem [thread:$0]  (%p4682_p10), %s1549_s1, 16, %s1551_s0, [#allocation48]  }
 0x21a PF: > { %1597 = sbr.rel (%p6373_p9) target bundleno = 7342 (0x1cae), region = 204  ;;  %p4713_p4 = scmp.eq.s32.totalorder (!%p6373_p9), %s6346_s22, 0 }
 0x21f   : > { %5907 = dma.done.wait (%p4713_p4), [#allocation3], 16  }
 0x220   : > { %5909 = vsyncadd (%p4713_p4), [#allocation3], 4294967280 }
 0x221   : > { %5911 = dma.done.wait (%p4713_p4), [#allocation6], 32  }
 0x222   : > { %5913 = vsyncadd (%p4713_p4), [#allocation6], 4294967264 }
 0x223   : > { %5915 = dma.done.wait (%p4713_p4), [#allocation9], 32  }
 0x224   : > { %5917 = vsyncadd (%p4713_p4), [#allocation9], 4294967264 }
 0x225   : > { %5919 = dma.done.wait (%p4713_p4), [#allocation12], 32  }
 0x226   : > { %5921 = vsyncadd (%p4713_p4), [#allocation12], 4294967264 }
 0x227   : > { %5923 = dma.done.wait (%p4713_p4), [#allocation15], 32  }
 0x228   : > { %5925 = vsyncadd (%p4713_p4), [#allocation15], 4294967264 }
 0x229   : > { %5927 = dma.done.wait (%p4713_p4), [#allocation18], 32  }
 0x22a   : > { %5929 = vsyncadd (%p4713_p4), [#allocation18], 4294967264 }
 0x22b   : > { %5931 = dma.done.wait (%p4713_p4), [#allocation21], 272  }
 0x22c   : > { %5933 = vsyncadd (%p4713_p4), [#allocation21], 4294967024 }
 0x22d   : > { %5935 = dma.done.wait (%p4713_p4), [#allocation24], 32  }
 0x22e   : > { %5937 = vsyncadd (%p4713_p4), [#allocation24], 4294967264 }
 0x22f   : > { %5939 = dma.done.wait (%p4713_p4), [#allocation27], 32  }
 0x230   : > { %5941 = vsyncadd (%p4713_p4), [#allocation27], 4294967264 }
 0x231   : > { %5943 = dma.done.wait (%p4713_p4), [#allocation30], 32  }
 0x232   : > { %5945 = vsyncadd (%p4713_p4), [#allocation30], 4294967264 }
 0x233   : > { %5947 = dma.done.wait (%p4713_p4), [#allocation33], 272  }
 0x234   : > { %5949 = vsyncadd (%p4713_p4), [#allocation33], 4294967024 }
 0x235   : > { %5951 = dma.done.wait (%p4713_p4), [#allocation36], 272  }
 0x236   : > { %5953 = vsyncadd (%p4713_p4), [#allocation36], 4294967024 }
 0x237   : > { %5955 = dma.done.wait (%p4713_p4), [#allocation39], 272  }
 0x238   : > { %5957 = vsyncadd (%p4713_p4), [#allocation39], 4294967024 }
 0x239   : > { %5959 = dma.done.wait (%p4713_p4), [#allocation42], 32  }
 0x23a   : > { %5961 = vsyncadd (%p4713_p4), [#allocation42], 4294967264 }
 0x23b   : > { %5963 = dma.done.wait (%p4713_p4), [#allocation45], 272  }
 0x23c   : > { %5965 = vsyncadd (%p4713_p4), [#allocation45], 4294967024 }
 0x23d   : > { %5967 = dma.done.wait (%p4713_p4), [#allocation48], 32  }
 0x23e   : > { %5969 = vsyncadd (%p4713_p4), [#allocation48], 4294967264  ;;  %s7321_s11 = sld [smem:[#allocation68_spill]]  ;;  %p1869_p9 = scmp.lt.s32.totalorder %s6346_s22, 1  ;;  %vm1898_vm0 = vcmask 261120   ;;  %v6069_v3 = vmov 0.0  }
 0x23f   : > { %s7322_s10 = sld [smem:[#allocation71_spill]]  ;;  %v6070_v5 = vmov 32.0   ;;  %v4872_v41 = vld [vmem:[#allocation2] ss:$0 sm:$0xff]  ;;  %v4873_v44 = vld [vmem:[#allocation5] ss:$0 sm:$0xff] }
 0x240   : > { %s6789_s18 = scalar_select %p1869_p9, %s6346_s22, 1  ;;  %4900 = vrcp.f32 %v6070_v5  ;;  %v4874_v48 = vld [vmem:[#allocation7] ss:$0 sm:$0xff]  ;;  %vm1996_vm9 = vcmask 64512   ;;  %vm2035_vm11 = vcmask 1043456   ;;  %vm2239_vm12 = vcmask 130048  }
 0x241   : > { %s7323_s9 = sld [smem:[#allocation73_spill]]  ;;  %s7231_s28 = smov 104   ;;  %vm2241_vm13 = vcmask 195584  }
 0x242   : > { %s4337_s7 = sshll.u32 %s6789_s18, 3  ;;  %s7235_s2 = smov 120  }
 0x243   : > { %s7233_s0 = smov 96   ;;  %s7217_s5 = smov 72  }
 0x244   : > { %s1872_s16 = scalar_lea.vmem %s7321_s11, %s4337_s7  ;;  %s7221_s4 = smov 88  }
 0x245   : > { %s1884_s1 = scalar_lea.vmem %s7322_s10, %s6789_s18  ;;  %v6797_v0 = vld [vmem:[%s1872_s16] sm:$0xff]  ;;  %s7227_s12 = smov 112  }
 0x246   : > { %v1892_v1 = vld [vmem:[%s1884_s1] sm:$0x1]  ;;  %v1899_v2 = vsel %vm1898_vm0, %v6797_v0, 0.0  ;;  %v4901_v6 = vpop.eup %4900  ;;  %s7229_s11 = smov 80   ;;  %s7324_s10 = sld [smem:[#allocation70_spill]] }
 0x247   : > { %vm1893_vm1 = vcmp.eq.f32.partialorder %v1892_v1, 0.0  ;;  %1900 = vadd.xlane.f32.xlu0 %v1899_v2  ;;  %v1903_v7 = vmul.f32 32.0, %v4901_v6  ;;  %vm1907_vm2 = vweird.f32 %v4901_v6  ;;  %v4521_v17 = vld [vmem:[%s7323_s9 + $0x8] sm:$0xff]  ;;  %v4520_v18 = vld [vmem:[%s7323_s9] sm:$0xff]  ;;  %s7216_s1 = smov 56   ;;  %s7343_s6 = smov 112  }
 0x248   : > { %v6802_v4 = vsel %vm1893_vm1, -1e+09, %v6069_v3  ;;  %1983 = vmatpush.bf16.msra.mxu0 %v4521_v17  ;;  %s7345_s9 = smov 40   ;;  %s7350_s3 = sld [smem:[#allocation104_spill]] }
 0x249   : > { %v1904_v8 = vsub.f32 1.0, %v1903_v7 }
 0x24b   : > { %v1905_v9 = vmul.f32 %v4901_v6, %v1904_v8 }
 0x24c   : > { %1984 = vmatpush.bf16.msra.mxu0 %v4520_v18  ;;  %s1881_s16 = scalar_lea.vmem %s7324_s10, %s4337_s7  ;;  %s7214_s7 = smov 64  }
 0x24d   : > { %v1906_v10 = vadd.f32 %v4901_v6, %v1905_v9  ;;  %v1889_v5 = vld [vmem:[%s1881_s16] sm:$0xff]  ;;  %s7215_s10 = smov 40   ;;  %s7213_s16 = smov 48  }
 0x24e   : > { %vm1890_vm10 = vcmp.eq.f32.partialorder %v1889_v5, 0.0 }
 0x24f   : > { %v6804_v11 = vsel %vm1907_vm2, %v4901_v6, %v1906_v10  ;;  %v6840_v6 = vsel %vm1890_vm10, -1e+09, %v6069_v3 }
 0x2ba   : > { %v1901_v12 = vpop.xlane.xlu0 %1900 }
 0x2bb   : > { %v1909_v13 = vmul.f32 %v6804_v11, %v1901_v12 }
 0x2bd   : > { %v1910_v14 = vsub.f32 %v6797_v0, %v1909_v13 }
 0x2bf   : > { %v1911_v15 = vmul.f32 %v1910_v14, %v1910_v14 }
 0x2c1   : > { %v1912_v16 = vsel %vm1898_vm0, %v1911_v15, 0.0 }
 0x2c2   : > { %1913 = vadd.xlane.f32.xlu0 %v1912_v16 }
 0x335   : > { %v1914_v19 = vpop.xlane.xlu0 %1913 }
 0x336   : > { %v1915_v20 = vmul.f32 0.032258064, %v1914_v19 }
 0x338   : > { %4902 = vrsqrt.f32 %v1915_v20  ;;  %vm1923_vm3 = vcmp.eq.f32.partialorder %v1915_v20, inf  ;;  %v1926_v28 = vand.u32 2147483648, %v1915_v20  ;;  %vm1925_vm4 = vcmp.eq.f32.partialorder %v1915_v20, 0.0 }
 0x33e   : > { %v4903_v21 = vpop.eup %4902 }
 0x33f   : > { %v1917_v22 = vmul.f32 %v4903_v21, %v1915_v20 }
 0x341   : > { %v1918_v23 = vmul.f32 %v4903_v21, %v1917_v22 }
 0x343   : > { %v1919_v24 = vmul.f32 0.5, %v1918_v23 }
 0x345   : > { %v1920_v25 = vsub.f32 1.5, %v1919_v24 }
 0x347   : > { %v1921_v26 = vmul.f32 %v4903_v21, %v1920_v25 }
 0x349   : > { %v1922_v27 = vmul.f32 %v1921_v26, %v1915_v20 }
 0x34b   : > { %v1924_v29 = vsel %vm1923_vm3, %v1915_v20, %v1922_v27 }
 0x34c   : > { %v1927_v30 = vsel %vm1925_vm4, %v1926_v28, %v1924_v29 }
 0x34d   : > { %v1928_v31 = vadd.f32 1e-06, %v1927_v30 }
 0x34f   : > { %4904 = vrcp.f32 %v1928_v31  ;;  %v1940_v35 = vand.u32 2147483648, %v1928_v31  ;;  %v1938_v37 = vand.u32 2147483647, %v1928_v31  ;;  %vm1934_vm6 = vweird.f32 %v1928_v31 }
 0x351   : > { %v1941_v39 = vor.u32 1.1754944e-38, %v1940_v35  ;;  %vm1939_vm8 = vcmp.eq.f32.partialorder %v1938_v37, 8.507059e+37 }
 0x355   : > { %v4905_v32 = vpop.eup %4904 }
 0x356   : > { %v1930_v33 = vmul.f32 %v4905_v32, %v1928_v31  ;;  %vm1935_vm5 = vweird.f32 %v4905_v32 }
 0x357   : > { %vm1936_vm7 = vmor %vm1934_vm6, %vm1935_vm5  ;;  %vm2436_vm5 = vcmask 80896   ;;  %vm2454_vm6 = vcmask 1044480  }
 0x358   : > { %v1931_v34 = vsub.f32 1.0, %v1930_v33 }
 0x35a   : > { %v1932_v36 = vmul.f32 %v4905_v32, %v1931_v34 }
 0x35c   : > { %v1933_v38 = vadd.f32 %v4905_v32, %v1932_v36 }
 0x35e   : > { %v1937_v40 = vsel %vm1936_vm7, %v4905_v32, %v1933_v38 }
 0x35f   : > { %v1942_v42 = vsel %vm1939_vm8, %v1941_v39, %v1937_v40 }
 0x360   : > { %v1944_v43 = vmul.f32 %v1942_v42, %v1910_v14 }
 0x362   : > { %v1948_v45 = vmul.f32 %v4872_v41, %v1944_v43 }
 0x364   : > { %v1952_v46 = vadd.f32 %v4873_v44, %v1948_v45 }
 0x366   : > { %v1953_v47 = vpack.c.bf16 %v1952_v46, %v1952_v46 }
 0x368   : > { %4349 = vmatmul.msk.bf16.vlgmr.msra.gmra.mxu0 %vm1898_vm0, %v1953_v47 }
 0x3e5   : > { %v1986_v49 = vpop.f32.mrf.mxu0 }
 0x3e6   : > { %v1987_v50 = vadd.f32 %v4874_v48, %v1986_v49 }
 0x3e8   : > { %v1990_v51 = vpack.c.bf16 %v1987_v50, %v1987_v50 }
 0x3ea   : > { %v1992_v52 = vunpack.c.l.b16 %v1990_v51 }
 0x3ec   : > { %v6812_v53 = vpack.c.b16 %v1992_v52, %v1992_v52 }
 0x3ed   : > { %v1988_v54 = vpop.f32.mrf.mxu0 }
 0x3ee   : > { %2168 = vrot.lane.b32.xlu0 %v6812_v53, %s7231_s28  ;;  %2052 = vrot.lane.b32.xlu2 %v6812_v53, %s7235_s2 }
 0x3ef   : > { %1994 = vrot.lane.b32.xlu1 %v6812_v53, %s7233_s0 }
 0x3f6   : > { %2170 = vrot.lane.b32.xlu2 %v6812_v53, %s7217_s5  ;;  %s7225_s5 = smov 16  }
 0x3f7   : > { %2054 = vrot.lane.b32.xlu1 %v6812_v53, %s7221_s4  ;;  %s7328_s4 = sld [smem:[#allocation80_spill]] }
 0x3fe   : > { %2110 = vrot.lane.b32.xlu2 %v6812_v53, %s7227_s12 }
 0x3ff   : > { %2112 = vrot.lane.b32.xlu1 %v6812_v53, %s7229_s11 }
 0x448   : > { %v2053_v55 = vpop.permute.xlu2 %2052 }
 0x450   : > { %v2171_v58 = vpop.permute.xlu2 %2170 }
 0x451   : > { %v2176_v61 = vsel %vm1996_vm9, %v2171_v58, 0 }
 0x458   : > { %v2111_v1 = vpop.permute.xlu2 %2110 }
 0x460   : > { %v2169_v2 = vpop.permute.xlu0 %2168 }
 0x461   : > { %v1995_v56 = vpop.permute.xlu1 %1994 }
 0x462   : > { %v2001_v57 = vsel %vm1996_vm9, %v1995_v56, 0 }
 0x463   : > { %2010 = vmatpush.bf16.xpose.msra.mxu1 %v2001_v57 }
 0x469   : > { %v2055_v59 = vpop.permute.xlu1 %2054 }
 0x46a   : > { %4350 = vmatmul.msk.bf16.vlgmr.msra.gmra.mxu1 %vm1996_vm9, %v1990_v51  ;;  %v2060_v60 = vsel %vm1996_vm9, %v2055_v59, 0 }
 0x46b   : > { %2069 = vmatpush.bf16.xpose.msra.mxu3 %v2060_v60 }
 0x471   : > { %v2113_v62 = vpop.permute.xlu1 %2112 }
 0x472   : > { %4352 = vmatmul.msk.bf16.vlgmr.msra.gmra.mxu3 %vm1996_vm9, %v2053_v55  ;;  %v2118_v63 = vsel %vm1996_vm9, %v2113_v62, 0 }
 0x473   : > { %2185 = vmatpush.bf16.xpose.msrb.mxu3 %v2176_v61  ;;  %2127 = vmatpush.bf16.xpose.msrb.mxu0 %v2118_v63 }
 0x47a   : > { %4354 = vmatmul.msk.bf16.vlgmr.msrb.gmra.mxu0 %vm1996_vm9, %v2111_v1 }
 0x482   : > { %4356 = vmatmul.msk.bf16.vlgmr.msrb.gmra.mxu3 %vm1996_vm9, %v2169_v2 }
 0x4e7   : > { %v2012_v7 = vpop.f32.mrf.mxu1 }
 0x4e8   : > { %v2016_v8 = vmul.f32 0.35355338, %v2012_v7 }
 0x4ea   : > { %v2017_v9 = vadd.f32 %v2016_v8, %v6840_v6 }
 0x4ec   : > { %v2018_v10 = vsel %vm1996_vm9, %v2017_v9, -inf }
 0x4ed   : > { %2019 = vmax.xlane.f32.xlu1 %v2018_v10 }
 0x4ef   : > { %v2014_v12 = vpop.f32.mrf.mxu1 }
 0x4f5   : > { %v2071_v13 = vpop.f32.mrf.mxu3 }
 0x4f6   : > { %v2075_v14 = vmul.f32 0.35355338, %v2071_v13 }
 0x4f7   : > { %v2129_v15 = vpop.f32.mrf.mxu0 }
 0x4f8   : > { %v2076_v16 = vadd.f32 %v2075_v14, %v6840_v6  ;;  %v2133_v17 = vmul.f32 0.35355338, %v2129_v15 }
 0x4fa   : > { %v2077_v18 = vsel %vm1996_vm9, %v2076_v16, -inf  ;;  %v2134_v3 = vadd.f32 %v2133_v17, %v6840_v6 }
 0x4fb   : > { %2078 = vmax.xlane.f32.xlu2 %v2077_v18 }
 0x4fc   : > { %v2135_v21 = vsel %vm1996_vm9, %v2134_v3, -inf }
 0x4fd   : > { %v2073_v19 = vpop.f32.mrf.mxu3 }
 0x4ff   : > { %v2131_v20 = vpop.f32.mrf.mxu0 }
 0x503   : > { %2136 = vmax.xlane.f32.xlu2 %v2135_v21 }
 0x505   : > { %v2187_v22 = vpop.f32.mrf.mxu3 }
 0x506   : > { %v2191_v23 = vmul.f32 0.35355338, %v2187_v22 }
 0x508   : > { %v2192_v24 = vadd.f32 %v2191_v23, %v6840_v6 }
 0x50a   : > { %v2193_v25 = vsel %vm1996_vm9, %v2192_v24, -inf }
 0x50b   : > { %2194 = vmax.xlane.f32.xlu0 %v2193_v25 }
 0x50d   : > { %v2189_v26 = vpop.f32.mrf.mxu3 }
 0x51b   : > { %2030 = vrot.lane.b32.xlu2 %v6812_v53, %s7214_s7 }
 0x51f   : > { %2089 = vrot.lane.b32.xlu0 %v6812_v53, %s7216_s1  ;;  %s7223_s1 = smov 24  }
 0x523   : > { %2205 = vrot.lane.b32.xlu2 %v6812_v53, %s7215_s10  ;;  %s7219_s10 = smov 8  }
 0x527   : > { %2147 = vrot.lane.b32.xlu0 %v6812_v53, %s7213_s16  ;;  %s7325_s16 = sld [smem:[#allocation75_spill]] }
 0x52d   : > { %s7326_s7 = smov %s7325_s16 }
 0x52e   : > { %v4522_v20 = vld [vmem:[%s7326_s7] sm:$0xff]  ;;  %s7344_s7 = smov 56  }
 0x560   : > { %v2020_v27 = vpop.xlane.xlu1 %2019 }
 0x561   : > { %v2021_v28 = vsub.f32 %v2017_v9, %v2020_v27 }
 0x563   : > { %v2022_v29 = vmul.f32 1.442695, %v2021_v28  ;;  %v4875_v28 = vld [vmem:[#allocation8] ss:$0 sm:$0xff] }
 0x565   : > { %4906 = vpow2.f32 %v2022_v29 }
 0x56b   : > { %v4907_v30 = vpop.eup %4906 }
 0x56c   : > { %v2024_v31 = vsel %vm1996_vm9, %v4907_v30, 0.0 }
 0x56d   : > { %2025 = vadd.xlane.f32.xlu1 %v2024_v31 }
 0x56e   : > { %v2079_v32 = vpop.xlane.xlu2 %2078 }
 0x56f   : > { %v2080_v33 = vsub.f32 %v2076_v16, %v2079_v32 }
 0x571   : > { %v2081_v34 = vmul.f32 1.442695, %v2080_v33 }
 0x573   : > { %4908 = vpow2.f32 %v2081_v34  ;;  %v4527_v34 = vld [vmem:[%s7328_s4 + $0x8] sm:$0xff] }
 0x574   : > { %2397 = vmatpush.bf16.msra.mxu3 %v4527_v34 }
 0x576   : > { %v2137_v35 = vpop.xlane.xlu2 %2136 }
 0x577   : > { %v2138_v42 = vsub.f32 %v2134_v3, %v2137_v35  ;;  %v4523_v3 = vld [vmem:[%s7325_s16 + $0x8] sm:$0xff]  ;;  %s4519_s16 = sshll.u32 %s6789_s18, 4  ;;  %v4526_v35 = vld [vmem:[%s7328_s4] sm:$0xff]  ;;  %s7330_s18 = smov 88  }
 0x578   : > { %2273 = vmatpush.bf16.msra.mxu0 %v4523_v3  ;;  %2398 = vmatpush.bf16.msra.mxu3 %v4526_v35  ;;  %s7342_s4 = smov 80  }
 0x579   : > { %v4909_v36 = vpop.eup %4908  ;;  %v2139_v44 = vmul.f32 1.442695, %v2138_v42 }
 0x57a   : > { %v2083_v37 = vsel %vm1996_vm9, %v4909_v36, 0.0 }
 0x57b   : > { %2084 = vadd.xlane.f32.xlu1 %v2083_v37 }
 0x57c   : > { %2274 = vmatpush.bf16.msra.mxu0 %v4522_v20 }
 0x57e   : > { %v2195_v38 = vpop.xlane.xlu0 %2194  ;;  %v2031_v39 = vpop.permute.xlu2 %2030 }
 0x57f   : > { %v2196_v40 = vsub.f32 %v2192_v24, %v2195_v38  ;;  %v2037_v41 = vsel %vm2035_vm11, %v2031_v39, 0 }
 0x580   : > { %2046 = vmatpush.bf16.msra.mxu2 %v2037_v41 }
 0x581   : > { %v2197_v43 = vmul.f32 1.442695, %v2196_v40 }
 0x583   : > { %4910 = vpow2.f32 %v2197_v43 }
 0x584   : > { %4912 = vpow2.f32 %v2139_v44 }
 0x586   : > { %v2206_v56 = vpop.permute.xlu2 %2205 }
 0x587   : > { %v2211_v58 = vsel %vm2035_vm11, %v2206_v56, 0 }
 0x589   : > { %v4911_v45 = vpop.eup %4910 }
 0x58a   : > { %v2199_v46 = vsel %vm1996_vm9, %v4911_v45, 0.0  ;;  %v4913_v47 = vpop.eup %4912 }
 0x58b   : > { %2200 = vadd.xlane.f32.xlu1 %v2199_v46  ;;  %v2141_v50 = vsel %vm1996_vm9, %v4913_v47, 0.0 }
 0x591   : > { %v2090_v48 = vpop.permute.xlu0 %2089 }
 0x592   : > { %v2095_v49 = vsel %vm2035_vm11, %v2090_v48, 0 }
 0x593   : > { %2104 = vmatpush.bf16.msrb.mxu2 %v2095_v49  ;;  %2142 = vadd.xlane.f32.xlu1 %v2141_v50 }
 0x599   : > { %v2148_v51 = vpop.permute.xlu0 %2147 }
 0x59a   : > { %v2153_v52 = vsel %vm2035_vm11, %v2148_v51, 0 }
 0x59b   : > { %2162 = vmatpush.bf16.msrb.mxu1 %v2153_v52 }
 0x5e0   : > { %v2026_v53 = vpop.xlane.xlu1 %2025 }
 0x5e1   : > { %4914 = vrcp.f32 %v2026_v53  ;;  %v4878_v53 = vld [vmem:[#allocation14] ss:$0 sm:$0xff] }
 0x5e7   : > { %v4915_v54 = vpop.eup %4914 }
 0x5e8   : > { %v2028_v55 = vmul.f32 %v4915_v54, %v4907_v30 }
 0x5ea   : > { %v2029_v57 = vpack.c.bf16 %v2028_v55, %v2028_v55 }
 0x5ec   : > { %4351 = vmatmul.msk.bf16.vlgmr.msra.gmra.mxu2 %vm1996_vm9, %v2029_v57 }
 0x5ed   : > { %2220 = vmatpush.bf16.msra.mxu2 %v2211_v58 }
 0x5ee   : > { %v2085_v59 = vpop.xlane.xlu1 %2084 }
 0x5ef   : > { %4916 = vrcp.f32 %v2085_v59 }
 0x5f5   : > { %v4917_v60 = vpop.eup %4916 }
 0x5f6   : > { %v2087_v61 = vmul.f32 %v4917_v60, %v4909_v36 }
 0x5f8   : > { %v2088_v62 = vpack.c.bf16 %v2087_v61, %v2087_v61 }
 0x5fc   : > { %4353 = vmatmul.msk.bf16.vlgmr.msrb.gmra.mxu2 %vm1996_vm9, %v2088_v62 }
 0x5fe   : > { %v2201_v63 = vpop.xlane.xlu1 %2200 }
 0x5ff   : > { %4918 = vrcp.f32 %v2201_v63 }
 0x605   : > { %v4919_v1 = vpop.eup %4918 }
 0x606   : > { %v2203_v2 = vmul.f32 %v4919_v1, %v4911_v45  ;;  %v2143_v5 = vpop.xlane.xlu1 %2142 }
 0x607   : > { %4920 = vrcp.f32 %v2143_v5 }
 0x608   : > { %v2204_v7 = vpack.c.bf16 %v2203_v2, %v2203_v2 }
 0x60c   : > { %4357 = vmatmul.msk.bf16.vlgmr.msra.gmra.mxu2 %vm1996_vm9, %v2204_v7 }
 0x60d   : > { %v4921_v8 = vpop.eup %4920 }
 0x60e   : > { %v2145_v9 = vmul.f32 %v4921_v8, %v4913_v47 }
 0x610   : > { %v2146_v10 = vpack.c.bf16 %v2145_v9, %v2145_v9 }
 0x612   : > { %4355 = vmatmul.msk.bf16.vlgmr.msrb.gmra.mxu1 %vm1996_vm9, %v2146_v10 }
 0x66f   : > { %v2048_v12 = vpop.f32.mrf.mxu2 }
 0x677   : > { %v2050_v13 = vpop.f32.mrf.mxu2 }
 0x67f   : > { %v2106_v14 = vpop.f32.mrf.mxu2 }
 0x680   : > { %2227 = vrot.lane.b32.xlu1 %v2106_v14, %s7219_s10  ;;  %s7327_s10 = sld [smem:[#allocation69_spill]] }
 0x687   : > { %v2108_v15 = vpop.f32.mrf.mxu2 }
 0x68f   : > { %v2164_v16 = vpop.f32.mrf.mxu1  ;;  %v2222_v17 = vpop.f32.mrf.mxu2 }
 0x690   : > { %2235 = vrot.lane.b32.xlu0 %v2222_v17, %s7223_s1  ;;  %2231 = vrot.lane.b32.xlu2 %v2164_v16, %s7225_s5  ;;  %s7329_s1 = sld [smem:[#allocation78_spill]]  ;;  %s1877_s5 = scalar_lea.vmem %s7327_s10, %s4519_s16 }
 0x691   : > { %v1887_v36 = vld [vmem:[%s1877_s5] sm:$0xff]  ;;  %v1888_v37 = vld [vmem:[%s1877_s5 + $0x8] sm:$0x3]  ;;  %s7331_s5 = smov 72   ;;  %s7332_s10 = sld [smem:[#allocation81_spill]] }
 0x692   : > { %v6888_v38 = vpack.c.bf16 %v1888_v37, %v1887_v36  ;;  %s7333_s16 = smov 8  }
 0x694   : > { %4384 = vmatmul.msk.bf16.vlgmr.msra.gmra.mxu3 %vm1898_vm0, %v6888_v38 }
 0x696   : > { %v4525_v43 = vld [vmem:[%s7329_s1 + $0x8] sm:$0xff]  ;;  %v4524_v44 = vld [vmem:[%s7329_s1] sm:$0xff]  ;;  %s7340_s1 = smov 96  }
 0x697   : > { %v2166_v18 = vpop.f32.mrf.mxu1  ;;  %v2224_v19 = vpop.f32.mrf.mxu2  ;;  %2360 = vmatpush.bf16.msra.mxu1 %v4525_v43 }
 0x698   : > { %v4876_v19 = vld [vmem:[#allocation10] ss:$0 sm:$0xff] }
 0x69b   : > { %2361 = vmatpush.bf16.msra.mxu1 %v4524_v44 }
 0x6ea   : > { %v2232_v23 = vpop.permute.xlu2 %2231 }
 0x6f2   : > { %v2228_v21 = vpop.permute.xlu1 %2227 }
 0x6f3   : > { %v2238_v22 = vsel %vm1996_vm9, %v2048_v12, %v2228_v21  ;;  %v4877_v21 = vld [vmem:[#allocation11] ss:$0 sm:$0xff] }
 0x6f4   : > { %v2240_v25 = vsel %vm2239_vm12, %v2238_v22, %v2232_v23 }
 0x702   : > { %v2236_v24 = vpop.permute.xlu0 %2235 }
 0x703   : > { %v2242_v26 = vsel %vm2241_vm13, %v2240_v25, %v2236_v24 }
 0x704   : > { %v2243_v27 = vpack.c.bf16 %v2242_v26, %v2242_v26 }
 0x706   : > { %4366 = vmatmul.msk.bf16.vlgmr.msra.gmra.mxu0 %vm1898_vm0, %v2243_v27  ;;  %v4879_v27 = vld [vmem:[#allocation13] ss:$0 sm:$0xff] }
 0x717   : > { %v2400_v54 = vpop.f32.mrf.mxu3 }
 0x718   : > { %v2401_v58 = vadd.f32 %v4878_v53, %v2400_v54 }
 0x71a   : > { %v2405_v61 = vpack.c.bf16 %v2401_v58, %v2401_v58 }
 0x71c   : > { %v2409_v1 = vunpack.c.l.b16 %v2405_v61 }
 0x71f   : > { %v2402_v62 = vpop.f32.mrf.mxu3 }
 0x720   : > { %v2403_v63 = vadd.f32 %v4878_v53, %v2402_v62 }
 0x722   : > { %v2406_v2 = vpack.c.bf16 %v2403_v63, %v2403_v63 }
 0x724   : > { %v2410_v7 = vunpack.c.l.b16 %v2406_v2 }
 0x726   : > { %v6897_v9 = vpack.c.b16 %v2410_v7, %v2409_v1 }
 0x728   : > { %2476 = vrot.lane.b32.xlu1 %v6897_v9, %s7235_s2  ;;  %v2416_v13 = vsel %vm1996_vm9, %v6897_v9, 0 }
 0x729   : > { %2425 = vmatpush.bf16.xpose.msrb.mxu2 %v2416_v13 }
 0x730   : > { %2534 = vrot.lane.b32.xlu1 %v6897_v9, %s7227_s12 }
 0x783   : > { %v2276_v29 = vpop.f32.mrf.mxu0 }
 0x784   : > { %v2277_v30 = vadd.f32 %v4875_v28, %v2276_v29 }
 0x786   : > { %v6880_v31 = vadd.f32 %v2277_v30, %v6797_v0 }
 0x788   : > { %v2283_v32 = vsel %vm1898_vm0, %v6880_v31, 0.0 }
 0x789   : > { %2284 = vadd.xlane.f32.xlu2 %v2283_v32 }
 0x78b   : > { %v2278_v33 = vpop.f32.mrf.mxu0 }
 0x79a   : > { %v2477_v25 = vpop.permute.xlu1 %2476 }
 0x79b   : > { %v2482_v26 = vsel %vm1996_vm9, %v2477_v25, 0 }
 0x79c   : > { %2491 = vmatpush.bf16.xpose.msrb.mxu1 %v2482_v26 }
 0x7a2   : > { %v2535_v30 = vpop.permute.xlu1 %2534 }
 0x7a3   : > { %v2540_v32 = vsel %vm1996_vm9, %v2535_v30, 0 }
 0x7a4   : > { %2549 = vmatpush.bf16.xpose.msra.mxu2 %v2540_v32 }
 0x7fc   : > { %v2285_v0 = vpop.xlane.xlu2 %2284 }
 0x7fd   : > { %v2286_v39 = vmul.f32 %v2285_v0, %v6804_v11 }
 0x7ff   : > { %v2287_v40 = vsub.f32 %v6880_v31, %v2286_v39 }
 0x801   : > { %v2288_v41 = vmul.f32 %v2287_v40, %v2287_v40 }
 0x803   : > { %v2289_v42 = vsel %vm1898_vm0, %v2288_v41, 0.0  ;;  %v6918_v41 = vperm.slane %v6802_v4, 0 }
 0x804   : > { %2290 = vadd.xlane.f32.xlu0 %v2289_v42 }
 0x877   : > { %v2291_v45 = vpop.xlane.xlu0 %2290 }
 0x878   : > { %v2292_v46 = vmul.f32 0.032258064, %v2291_v45 }
 0x87a   : > { %4922 = vrsqrt.f32 %v2292_v46  ;;  %vm2300_vm14 = vcmp.eq.f32.partialorder %v2292_v46, inf  ;;  %v2303_v56 = vand.u32 2147483648, %v2292_v46  ;;  %vm2302_vm15 = vcmp.eq.f32.partialorder %v2292_v46, 0.0 }
 0x880   : > { %v4923_v47 = vpop.eup %4922 }
 0x881   : > { %v2294_v48 = vmul.f32 %v4923_v47, %v2292_v46 }
 0x883   : > { %v2295_v49 = vmul.f32 %v4923_v47, %v2294_v48 }
 0x885   : > { %v2296_v50 = vmul.f32 0.5, %v2295_v49 }
 0x887   : > { %v2297_v51 = vsub.f32 1.5, %v2296_v50 }
 0x889   : > { %v2298_v52 = vmul.f32 %v4923_v47, %v2297_v51 }
 0x88b   : > { %v2299_v55 = vmul.f32 %v2298_v52, %v2292_v46 }
 0x88d   : > { %v2301_v57 = vsel %vm2300_vm14, %v2292_v46, %v2299_v55 }
 0x88e   : > { %v2304_v59 = vsel %vm2302_vm15, %v2303_v56, %v2301_v57 }
 0x88f   : > { %v2305_v60 = vadd.f32 1e-06, %v2304_v59 }
 0x891   : > { %4924 = vrcp.f32 %v2305_v60  ;;  %v2317_v12 = vand.u32 2147483648, %v2305_v60  ;;  %v2315_v15 = vand.u32 2147483647, %v2305_v60  ;;  %vm2311_vm2 = vweird.f32 %v2305_v60 }
 0x893   : > { %v2318_v17 = vor.u32 1.1754944e-38, %v2317_v12  ;;  %vm2316_vm4 = vcmp.eq.f32.partialorder %v2315_v15, 8.507059e+37 }
 0x897   : > { %v4925_v5 = vpop.eup %4924 }
 0x898   : > { %v2307_v8 = vmul.f32 %v4925_v5, %v2305_v60  ;;  %vm2312_vm1 = vweird.f32 %v4925_v5 }
 0x899   : > { %vm2313_vm3 = vmor %vm2311_vm2, %vm2312_vm1  ;;  %vm2825_vm2 = vcmask 523264  }
 0x89a   : > { %v2308_v10 = vsub.f32 1.0, %v2307_v8 }
 0x89c   : > { %v2309_v14 = vmul.f32 %v4925_v5, %v2308_v10 }
 0x89e   : > { %v2310_v16 = vadd.f32 %v4925_v5, %v2309_v14 }
 0x8a0   : > { %v2314_v18 = vsel %vm2313_vm3, %v4925_v5, %v2310_v16 }
 0x8a1   : > { %v2319_v3 = vsel %vm2316_vm4, %v2318_v17, %v2314_v18 }
 0x8a2   : > { %v2321_v20 = vmul.f32 %v2319_v3, %v2287_v40 }
 0x8a4   : > { %v2325_v22 = vmul.f32 %v4876_v19, %v2321_v20 }
 0x8a6   : > { %v2329_v23 = vadd.f32 %v4877_v21, %v2325_v22 }
 0x8a8   : > { %v2330_v24 = vpack.c.bf16 %v2329_v23, %v2329_v23 }
 0x8aa   : > { %4375 = vmatmul.msk.bf16.vlgmr.msra.gmra.mxu1 %vm1898_vm0, %v2330_v24 }
 0x927   : > { %v2363_v28 = vpop.f32.mrf.mxu1 }
 0x928   : > { %v2364_v29 = vadd.f32 %v4879_v27, %v2363_v28 }
 0x92a   : > { %v2367_v33 = vpack.c.bf16 %v2364_v29, %v2364_v29 }
 0x92c   : > { %v2472_v34 = vunpack.c.l.b16 %v2367_v33  ;;  %4385 = vmatmul.msk.bf16.vlgmr.msrb.gmra.mxu2 %vm1996_vm9, %v2367_v33 }
 0x92e   : > { %v2473_v35 = vpack.c.b16 %v2472_v34, %v2472_v34 }
 0x92f   : > { %v2365_v36 = vpop.f32.mrf.mxu1 }
 0x930   : > { %2532 = vrot.lane.b32.xlu2 %v2473_v35, %s7227_s12  ;;  %2474 = vrot.lane.b32.xlu1 %v2473_v35, %s7235_s2  ;;  %s7334_s12 = smov 16  }
 0x938   : > { %2592 = vrot.lane.b32.xlu1 %v6897_v9, %s7231_s28 }
 0x940   : > { %2590 = vrot.lane.b32.xlu1 %v2473_v35, %s7231_s28  ;;  %s7336_s28 = sld [smem:[#allocation85_spill]] }
 0x98a   : > { %v2533_v37 = vpop.permute.xlu2 %2532 }
 0x98b   : > { %4389 = vmatmul.msk.bf16.vlgmr.msra.gmra.mxu2 %vm1996_vm9, %v2533_v37 }
 0x9a2   : > { %v2475_v0 = vpop.permute.xlu1 %2474 }
 0x9a3   : > { %4387 = vmatmul.msk.bf16.vlgmr.msrb.gmra.mxu1 %vm1996_vm9, %v2475_v0 }
 0x9aa   : > { %v2593_v39 = vpop.permute.xlu1 %2592 }
 0x9ab   : > { %v2598_v40 = vsel %vm1996_vm9, %v2593_v39, 0 }
 0x9ac   : > { %2607 = vmatpush.bf16.xpose.msra.mxu1 %v2598_v40 }
 0x9af   : > { %v2427_v42 = vpop.f32.mrf.mxu2 }
 0x9b0   : > { %v2431_v43 = vmul.f32 0.35355338, %v2427_v42 }
 0x9b2   : > { %v2591_v44 = vpop.permute.xlu1 %2590  ;;  %v2435_v45 = vadd.f32 %v6918_v41, %v2431_v43 }
 0x9b3   : > { %4391 = vmatmul.msk.bf16.vlgmr.msra.gmra.mxu1 %vm1996_vm9, %v2591_v44 }
 0x9b4   : > { %v2437_v46 = vsel %vm2436_vm5, %v2435_v45, -inf }
 0x9b5   : > { %2438 = vmax.xlane.f32.xlu1 %v2437_v46 }
 0x9b7   : > { %v2429_v47 = vpop.f32.mrf.mxu2 }
 0x9ce   : > { %2449 = vrot.lane.b32.xlu1 %v6897_v9, %s7233_s0  ;;  %s7337_s0 = sld [smem:[#allocation88_spill]] }
 0x9d4   : > { %s7338_s2 = smov %s7337_s0 }
 0x9d6   : > { %2569 = vrot.lane.b32.xlu1 %v6897_v9, %s7229_s11  ;;  %s7335_s11 = smov 24  }
 0xa0e   : > { %v2551_v4 = vpop.f32.mrf.mxu2 }
 0xa0f   : > { %v2555_v52 = vmul.f32 0.35355338, %v2551_v4 }
 0xa11   : > { %v2556_v57 = vadd.f32 %v2555_v52, %v6918_v41 }
 0xa13   : > { %v2557_v59 = vsel %vm2436_vm5, %v2556_v57, -inf }
 0xa16   : > { %v2553_v48 = vpop.f32.mrf.mxu2 }
 0xa20   : > { %v2493_v49 = vpop.f32.mrf.mxu1 }
 0xa21   : > { %v2497_v50 = vmul.f32 0.35355338, %v2493_v49 }
 0xa23   : > { %v2498_v51 = vadd.f32 %v2497_v50, %v6918_v41 }
 0xa25   : > { %v2499_v53 = vsel %vm2436_vm5, %v2498_v51, -inf }
 0xa26   : > { %2500 = vmax.xlane.f32.xlu0 %v2499_v53 }
 0xa28   : > { %v2495_v54 = vpop.f32.mrf.mxu1  ;;  %v2439_v55 = vpop.xlane.xlu1 %2438 }
 0xa29   : > { %v2440_v56 = vsub.f32 %v2435_v45, %v2439_v55  ;;  %v4529_v55 = vld [vmem:[%s7332_s10 + $0x8] sm:$0xff] }
 0xa2a   : > { %2693 = vmatpush.bf16.msrb.mxu2 %v4529_v55 }
 0xa2b   : > { %v2441_v58 = vmul.f32 1.442695, %v2440_v56  ;;  %v4528_v56 = vld [vmem:[%s7332_s10] sm:$0xff] }
 0xa2d   : > { %4926 = vpow2.f32 %v2441_v58 }
 0xa2e   : > { %2558 = vmax.xlane.f32.xlu0 %v2557_v59  ;;  %2694 = vmatpush.bf16.msrb.mxu2 %v4528_v56  ;;  %v4884_v56 = vld [vmem:[#allocation23] ss:$0 sm:$0xff] }
 0xa30   : > { %v2609_v60 = vpop.f32.mrf.mxu1 }
 0xa31   : > { %v2613_v63 = vmul.f32 0.35355338, %v2609_v60 }
 0xa33   : > { %v4927_v61 = vpop.eup %4926  ;;  %v2614_v2 = vadd.f32 %v2613_v63, %v6918_v41 }
 0xa34   : > { %v2443_v62 = vsel %vm2436_vm5, %v4927_v61, 0.0 }
 0xa35   : > { %v2615_v5 = vsel %vm2436_vm5, %v2614_v2, -inf }
 0xa36   : > { %2444 = vadd.xlane.f32.xlu0 %v2443_v62 }
 0xa38   : > { %v2611_v1 = vpop.f32.mrf.mxu1 }
 0xa39   : > { %v4880_v1 = vld [vmem:[#allocation16] ss:$0 sm:$0xff] }
 0xa3e   : > { %2616 = vmax.xlane.f32.xlu0 %v2615_v5 }
 0xa40   : > { %v2450_v7 = vpop.permute.xlu1 %2449 }
 0xa41   : > { %v2456_v8 = vsel %vm2454_vm6, %v2450_v7, 0 }
 0xa42   : > { %2465 = vmatpush.bf16.msrb.mxu0 %v2456_v8 }
 0xa48   : > { %v2570_v10 = vpop.permute.xlu1 %2569 }
 0xa49   : > { %v2575_v12 = vsel %vm2454_vm6, %v2570_v10, 0 }
 0xa4a   : > { %2584 = vmatpush.bf16.msra.mxu0 %v2575_v12 }
 0xa52   : > { %2511 = vrot.lane.b32.xlu0 %v6897_v9, %s7330_s18 }
 0xa99   : > { %v2501_v13 = vpop.xlane.xlu0 %2500 }
 0xa9a   : > { %v2502_v14 = vsub.f32 %v2498_v51, %v2501_v13 }
 0xa9c   : > { %v2503_v15 = vmul.f32 1.442695, %v2502_v14 }
 0xa9e   : > { %4928 = vpow2.f32 %v2503_v15 }
 0xaa1   : > { %v2559_v16 = vpop.xlane.xlu0 %2558 }
 0xaa2   : > { %v2560_v17 = vsub.f32 %v2556_v57, %v2559_v16 }
 0xaa4   : > { %v4929_v18 = vpop.eup %4928  ;;  %v2561_v19 = vmul.f32 1.442695, %v2560_v17  ;;  %v4531_v17 = vld [vmem:[#allocation20 + $0x8] sm:$0xff] }
 0xaa5   : > { %v2505_v3 = vsel %vm2436_vm5, %v4929_v18, 0.0 }
 0xaa6   : > { %4930 = vpow2.f32 %v2561_v19  ;;  %2506 = vadd.xlane.f32.xlu2 %v2505_v3 }
 0xaa9   : > { %v2445_v20 = vpop.xlane.xlu0 %2444 }
 0xaaa   : > { %4932 = vrcp.f32 %v2445_v20 }
 0xaac   : > { %v4931_v21 = vpop.eup %4930 }
 0xaad   : > { %v2563_v22 = vsel %vm2436_vm5, %v4931_v21, 0.0 }
 0xaae   : > { %2564 = vadd.xlane.f32.xlu2 %v2563_v22 }
 0xab0   : > { %v4933_v23 = vpop.eup %4932 }
 0xab1   : > { %v2447_v24 = vmul.f32 %v4933_v23, %v4927_v61  ;;  %v2617_v25 = vpop.xlane.xlu0 %2616 }
 0xab2   : > { %v2618_v26 = vsub.f32 %v2614_v2, %v2617_v25  ;;  %v4535_v25 = vld [vmem:[%s7336_s28 + $0x18] sm:$0xff] }
 0xab3   : > { %v2448_v27 = vpack.c.bf16 %v2447_v24, %v2447_v24  ;;  %2833 = vmatpush.bf16.msrb.mxu1 %v4535_v25 }
 0xab4   : > { %v2619_v28 = vmul.f32 1.442695, %v2618_v26 }
 0xab5   : > { %4386 = vmatmul.msk.bf16.vlgmr.msrb.gmra.mxu0 %vm2436_vm5, %v2448_v27 }
 0xab6   : > { %4934 = vpow2.f32 %v2619_v28  ;;  %2780 = vmatpush.bf16.msrb.mxu0 %v4531_v17  ;;  %v4534_v28 = vld [vmem:[%s7336_s28 + $0x10] sm:$0xff] }
 0xab7   : > { %2834 = vmatpush.bf16.msrb.mxu1 %v4534_v28 }
 0xabc   : > { %v4935_v29 = vpop.eup %4934 }
 0xabd   : > { %v2621_v30 = vsel %vm2436_vm5, %v4935_v29, 0.0 }
 0xabe   : > { %2622 = vadd.xlane.f32.xlu0 %v2621_v30 }
 0xac4   : > { %v2512_v32 = vpop.permute.xlu0 %2511 }
 0xac5   : > { %v2517_v33 = vsel %vm2454_vm6, %v2512_v32, 0 }
 0xac6   : > { %2627 = vrot.lane.b32.xlu2 %v6897_v9, %s7331_s5  ;;  %2526 = vmatpush.bf16.msrb.mxu3 %v2517_v33 }
 0xb19   : > { %v2507_v34 = vpop.xlane.xlu2 %2506 }
 0xb1a   : > { %4936 = vrcp.f32 %v2507_v34 }
 0xb20   : > { %v4937_v35 = vpop.eup %4936 }
 0xb21   : > { %v2509_v36 = vmul.f32 %v4937_v35, %v4929_v18  ;;  %v2565_v37 = vpop.xlane.xlu2 %2564  ;;  %v4530_v18 = vld [vmem:[#allocation20] sm:$0xff] }
 0xb22   : > { %4938 = vrcp.f32 %v2565_v37  ;;  %2781 = vmatpush.bf16.msrb.mxu0 %v4530_v18 }
 0xb23   : > { %v2510_v0 = vpack.c.bf16 %v2509_v36, %v2509_v36 }
 0xb25   : > { %4388 = vmatmul.msk.bf16.vlgmr.msrb.gmra.mxu3 %vm2436_vm5, %v2510_v0 }
 0xb28   : > { %v4939_v39 = vpop.eup %4938 }
 0xb29   : > { %v2567_v40 = vmul.f32 %v4939_v39, %v4931_v21  ;;  %v2628_v42 = vpop.permute.xlu2 %2627 }
 0xb2a   : > { %v2633_v43 = vsel %vm2454_vm6, %v2628_v42, 0 }
 0xb2b   : > { %v2568_v44 = vpack.c.bf16 %v2567_v40, %v2567_v40  ;;  %2642 = vmatpush.bf16.msra.mxu3 %v2633_v43  ;;  %v4881_v43 = vld [vmem:[#allocation17] ss:$0 sm:$0xff] }
 0xb2d   : > { %4390 = vmatmul.msk.bf16.vlgmr.msra.gmra.mxu0 %vm2436_vm5, %v2568_v44 }
 0xb31   : > { %v2623_v9 = vpop.xlane.xlu0 %2622 }
 0xb32   : > { %4940 = vrcp.f32 %v2623_v9  ;;  %v2467_v45 = vpop.f32.mrf.mxu0 }
 0xb38   : > { %v4941_v46 = vpop.eup %4940 }
 0xb39   : > { %v2625_v47 = vmul.f32 %v4941_v46, %v4935_v29 }
 0xb3a   : > { %v2469_v4 = vpop.f32.mrf.mxu0 }
 0xb3b   : > { %v2626_v48 = vpack.c.bf16 %v2625_v47, %v2625_v47 }
 0xb3d   : > { %4392 = vmatmul.msk.bf16.vlgmr.msra.gmra.mxu3 %vm2436_vm5, %v2626_v48  ;;  %v4533_v48 = vld [vmem:[%s7336_s28 + $0x8] sm:$0xff] }
 0xb3e   : > { %2835 = vmatpush.bf16.msrb.mxu1 %v4533_v48 }
 0xba8   : > { %v2528_v49 = vpop.f32.mrf.mxu3 }
 0xba9   : > { %2649 = vrot.lane.b32.xlu1 %v2528_v49, %s7333_s16  ;;  %v4532_v49 = vld [vmem:[%s7336_s28] sm:$0xff] }
 0xbaa   : > { %v2586_v50 = vpop.f32.mrf.mxu0  ;;  %2836 = vmatpush.bf16.msrb.mxu1 %v4532_v49 }
 0xbb0   : > { %v2530_v51 = vpop.f32.mrf.mxu3 }
 0xbb1   : > { %2653 = vrot.lane.b32.xlu1 %v2586_v50, %s7334_s12  ;;  %v4883_v50 = vld [vmem:[#allocation22] ss:$0 sm:$0xff] }
 0xbb2   : > { %v2588_v52 = vpop.f32.mrf.mxu0 }
 0xbc0   : > { %v2644_v53 = vpop.f32.mrf.mxu3 }
 0xbc1   : > { %2657 = vrot.lane.b32.xlu0 %v2644_v53, %s7335_s11 }
 0xbc8   : > { %v2646_v54 = vpop.f32.mrf.mxu3 }
 0xc1b   : > { %v2650_v57 = vpop.permute.xlu1 %2649 }
 0xc1c   : > { %v2660_v59 = vsel %vm1996_vm9, %v2467_v45, %v2650_v57  ;;  %v4882_v45 = vld [vmem:[#allocation19] ss:$0 sm:$0xff] }
 0xc23   : > { %v2654_v58 = vpop.permute.xlu1 %2653 }
 0xc24   : > { %v2661_v60 = vsel %vm2239_vm12, %v2660_v59, %v2654_v58 }
 0xc33   : > { %v2658_v61 = vpop.permute.xlu0 %2657 }
 0xc34   : > { %v2662_v62 = vsel %vm2241_vm13, %v2661_v60, %v2658_v61 }
 0xc35   : > { %v2663_v63 = vpack.c.bf16 %v2662_v62, %v2662_v62 }
 0xc37   : > { %4401 = vmatmul.msk.bf16.vlgmr.msrb.gmra.mxu2 %vm1898_vm0, %v2663_v63 }
 0xcba   : > { %v2696_v2 = vpop.f32.mrf.mxu2 }
 0xcbb   : > { %v2697_v5 = vadd.f32 %v4880_v1, %v2696_v2 }
 0xcbd   : > { %v6959_v7 = vadd.f32 %v2697_v5, %v6880_v31 }
 0xcbf   : > { %v2703_v8 = vsel %vm1898_vm0, %v6959_v7, 0.0 }
 0xcc0   : > { %2704 = vadd.xlane.f32.xlu2 %v2703_v8  ;;  %v4537_v8 = vld [vmem:[%s7337_s0 + $0x8] sm:$0xff]  ;;  %s7339_s0 = smov 120  }
 0xcc1   : > { %2922 = vmatpush.bf16.msrb.mxu3 %v4537_v8 }
 0xcc2   : > { %v2698_v10 = vpop.f32.mrf.mxu2 }
 0xcc3   : > { %v4536_v10 = vld [vmem:[%s7338_s2] sm:$0xff]  ;;  %s7341_s2 = smov 104  }
 0xcc5   : > { %2923 = vmatpush.bf16.msrb.mxu3 %v4536_v10 }
 0xd33   : > { %v2705_v12 = vpop.xlane.xlu2 %2704 }
 0xd34   : > { %v2706_v13 = vmul.f32 %v2705_v12, %v6804_v11 }
 0xd36   : > { %v2707_v14 = vsub.f32 %v6959_v7, %v2706_v13 }
 0xd38   : > { %v2708_v15 = vmul.f32 %v2707_v14, %v2707_v14 }
 0xd3a   : > { %v2709_v16 = vsel %vm1898_vm0, %v2708_v15, 0.0 }
 0xd3b   : > { %2710 = vadd.xlane.f32.xlu1 %v2709_v16 }
 0xdae   : > { %v2711_v31 = vpop.xlane.xlu1 %2710 }
 0xdaf   : > { %v2712_v19 = vmul.f32 0.032258064, %v2711_v31 }
 0xdb1   : > { %4942 = vrsqrt.f32 %v2712_v19  ;;  %vm2720_vm7 = vcmp.eq.f32.partialorder %v2712_v19, inf  ;;  %v2723_v27 = vand.u32 2147483648, %v2712_v19  ;;  %vm2722_vm8 = vcmp.eq.f32.partialorder %v2712_v19, 0.0 }
 0xdb7   : > { %v4943_v3 = vpop.eup %4942 }
 0xdb8   : > { %v2714_v20 = vmul.f32 %v4943_v3, %v2712_v19 }
 0xdba   : > { %v2715_v21 = vmul.f32 %v4943_v3, %v2714_v20 }
 0xdbc   : > { %v2716_v22 = vmul.f32 0.5, %v2715_v21 }
 0xdbe   : > { %v2717_v23 = vsub.f32 1.5, %v2716_v22 }
 0xdc0   : > { %v2718_v24 = vmul.f32 %v4943_v3, %v2717_v23 }
 0xdc2   : > { %v2719_v26 = vmul.f32 %v2718_v24, %v2712_v19 }
 0xdc4   : > { %v2721_v29 = vsel %vm2720_vm7, %v2712_v19, %v2719_v26 }
 0xdc5   : > { %v2724_v30 = vsel %vm2722_vm8, %v2723_v27, %v2721_v29 }
 0xdc6   : > { %v2725_v32 = vadd.f32 1e-06, %v2724_v30 }
 0xdc8   : > { %4944 = vrcp.f32 %v2725_v32  ;;  %v2737_v36 = vand.u32 2147483648, %v2725_v32  ;;  %v2735_v0 = vand.u32 2147483647, %v2725_v32  ;;  %vm2731_vm14 = vweird.f32 %v2725_v32 }
 0xdca   : > { %v2738_v40 = vor.u32 1.1754944e-38, %v2737_v36  ;;  %vm2736_vm1 = vcmp.eq.f32.partialorder %v2735_v0, 8.507059e+37 }
 0xdce   : > { %v4945_v33 = vpop.eup %4944 }
 0xdcf   : > { %v2727_v34 = vmul.f32 %v4945_v33, %v2725_v32  ;;  %vm2732_vm10 = vweird.f32 %v4945_v33  ;;  %v4885_v32 = vld [vmem:[#allocation25] ss:$0 sm:$0xff] }
 0xdd0   : > { %vm2733_vm15 = vmor %vm2731_vm14, %vm2732_vm10 }
 0xdd1   : > { %v2728_v35 = vsub.f32 1.0, %v2727_v34 }
 0xdd3   : > { %v2729_v37 = vmul.f32 %v4945_v33, %v2728_v35  ;;  %v4886_v35 = vld [vmem:[#allocation26] ss:$0 sm:$0xff] }
 0xdd5   : > { %v2730_v39 = vadd.f32 %v4945_v33, %v2729_v37 }
 0xdd7   : > { %v2734_v42 = vsel %vm2733_vm15, %v4945_v33, %v2730_v39  ;;  %v4887_v39 = vld [vmem:[#allocation28] ss:$0 sm:$0xff] }
 0xdd8   : > { %v2739_v44 = vsel %vm2736_vm1, %v2738_v40, %v2734_v42 }
 0xdd9   : > { %v2741_v9 = vmul.f32 %v2739_v44, %v2707_v14 }
 0xddb   : > { %v2745_v46 = vmul.f32 %v4881_v43, %v2741_v9 }
 0xddd   : > { %v2749_v47 = vadd.f32 %v4882_v45, %v2745_v46 }
 0xddf   : > { %v2750_v4 = vpack.c.bf16 %v2749_v47, %v2749_v47 }
 0xde1   : > { %4410 = vmatmul.msk.bf16.vlgmr.msrb.gmra.mxu0 %vm1898_vm0, %v2750_v4 }
 0xe5e   : > { %v2783_v51 = vpop.f32.mrf.mxu0 }
 0xe5f   : > { %v2784_v52 = vadd.f32 %v4883_v50, %v2783_v51 }
 0xe61   : > { %v2787_v53 = vmax.f32 %v2784_v52, 0.0 }
 0xe63   : > { %v2788_v54 = vpack.c.bf16 %v2787_v53, %v2787_v53 }
 0xe65   : > { %4427 = vmatmul.msk.bf16.vlgmr.msrb.gmra.mxu1 %vm2825_vm2, %v2788_v54 }
 0xe66   : > { %v2785_v55 = vpop.f32.mrf.mxu0 }
 0xee2   : > { %v2838_v57 = vpop.f32.mrf.mxu1 }
 0xee3   : > { %v2839_v58 = vadd.f32 %v4884_v56, %v2838_v57 }
 0xee5   : > { %v6973_v59 = vadd.f32 %v2839_v58, %v6959_v7 }
 0xee7   : > { %v2845_v60 = vsel %vm1898_vm0, %v6973_v59, 0.0 }
 0xee8   : > { %2846 = vadd.xlane.f32.xlu0 %v2845_v60 }
 0xeea   : > { %v2840_v61 = vpop.f32.mrf.mxu1 }
 0xf5b   : > { %v2847_v62 = vpop.xlane.xlu0 %2846 }
 0xf5c   : > { %v2848_v63 = vmul.f32 %v2847_v62, %v6804_v11 }
 0xf5e   : > { %v2849_v1 = vsub.f32 %v6973_v59, %v2848_v63 }
 0xf60   : > { %v2850_v2 = vmul.f32 %v2849_v1, %v2849_v1 }
 0xf62   : > { %v2851_v5 = vsel %vm1898_vm0, %v2850_v2, 0.0 }
 0xf63   : > { %2852 = vadd.xlane.f32.xlu2 %v2851_v5 }
 0xfd6   : > { %v2853_v12 = vpop.xlane.xlu2 %2852 }
 0xfd7   : > { %v2854_v7 = vmul.f32 0.032258064, %v2853_v12 }
 0xfd9   : > { %4946 = vrsqrt.f32 %v2854_v7  ;;  %vm2862_vm3 = vcmp.eq.f32.partialorder %v2854_v7, inf  ;;  %v2865_v19 = vand.u32 2147483648, %v2854_v7  ;;  %vm2864_vm4 = vcmp.eq.f32.partialorder %v2854_v7, 0.0 }
 0xfdf   : > { %v4947_v13 = vpop.eup %4946 }
 0xfe0   : > { %v2856_v14 = vmul.f32 %v4947_v13, %v2854_v7 }
 0xfe2   : > { %v2857_v15 = vmul.f32 %v4947_v13, %v2856_v14 }
 0xfe4   : > { %v2858_v16 = vmul.f32 0.5, %v2857_v15 }
 0xfe6   : > { %v2859_v17 = vsub.f32 1.5, %v2858_v16 }
 0xfe8   : > { %v2860_v18 = vmul.f32 %v4947_v13, %v2859_v17 }
 0xfea   : > { %v2861_v31 = vmul.f32 %v2860_v18, %v2854_v7 }
 0xfec   : > { %v2863_v3 = vsel %vm2862_vm3, %v2854_v7, %v2861_v31 }
 0xfed   : > { %v2866_v20 = vsel %vm2864_vm4, %v2865_v19, %v2863_v3 }
 0xfee   : > { %v2867_v21 = vadd.f32 1e-06, %v2866_v20 }
 0xff0   : > { %4948 = vrcp.f32 %v2867_v21  ;;  %v2879_v25 = vand.u32 2147483648, %v2867_v21  ;;  %v2877_v27 = vand.u32 2147483647, %v2867_v21  ;;  %vm2873_vm8 = vweird.f32 %v2867_v21 }
 0xff2   : > { %v2880_v29 = vor.u32 1.1754944e-38, %v2879_v25  ;;  %vm2878_vm14 = vcmp.eq.f32.partialorder %v2877_v27, 8.507059e+37 }
 0xff6   : > { %v4949_v22 = vpop.eup %4948 }
 0xff7   : > { %v2869_v23 = vmul.f32 %v4949_v22, %v2867_v21  ;;  %vm2874_vm7 = vweird.f32 %v4949_v22 }
 0xff8   : > { %vm2875_vm10 = vmor %vm2873_vm8, %vm2874_vm7 }
 0xff9   : > { %v2870_v24 = vsub.f32 1.0, %v2869_v23 }
 0xffb   : > { %v2871_v26 = vmul.f32 %v4949_v22, %v2870_v24 }
 0xffd   : > { %v2872_v28 = vadd.f32 %v4949_v22, %v2871_v26 }
 0xfff   : > { %v2876_v30 = vsel %vm2875_vm10, %v4949_v22, %v2872_v28 }
0x1000   : > { %v2881_v33 = vsel %vm2878_vm14, %v2880_v29, %v2876_v30 }
0x1001   : > { %v2883_v34 = vmul.f32 %v2881_v33, %v2849_v1 }
0x1003   : > { %v2887_v36 = vmul.f32 %v4885_v32, %v2883_v34 }
0x1005   : > { %v2891_v37 = vadd.f32 %v4886_v35, %v2887_v36 }
0x1007   : > { %v2892_v0 = vpack.c.bf16 %v2891_v37, %v2891_v37 }
0x1009   : > { %4436 = vmatmul.msk.bf16.vlgmr.msrb.gmra.mxu3 %vm1898_vm0, %v2892_v0 }
0x108c   : > { %v2925_v40 = vpop.f32.mrf.mxu3 }
0x108d   : > { %v2926_v42 = vadd.f32 %v4887_v39, %v2925_v40 }
0x108f   : > { %v2929_v43 = vpack.c.bf16 %v2926_v42, %v2926_v42 }
0x1091   : > { %v2931_v44 = vunpack.c.l.b16 %v2929_v43 }
0x1093   : > { %v6983_v9 = vpack.c.b16 %v2931_v44, %v2931_v44 }
0x1094   : > { %v2927_v45 = vpop.f32.mrf.mxu3 }
0x1095   : > { %2989 = vrot.lane.b32.xlu0 %v6983_v9, %s7339_s0  ;;  %2991 = vrot.lane.b32.xlu2 %v6983_v9, %s7330_s18 }
0x1096   : > { %2933 = vrot.lane.b32.xlu1 %v6983_v9, %s7340_s1 }
0x109d   : > { %3105 = vrot.lane.b32.xlu0 %v6983_v9, %s7341_s2  ;;  %3107 = vrot.lane.b32.xlu2 %v6983_v9, %s7331_s5 }
0x109e   : > { %3049 = vrot.lane.b32.xlu1 %v6983_v9, %s7342_s4 }
0x10a6   : > { %3047 = vrot.lane.b32.xlu1 %v6983_v9, %s7343_s6 }
0x10ef   : > { %v2992_v46 = vpop.permute.xlu2 %2991 }
0x10f0   : > { %v2997_v47 = vsel %vm1996_vm9, %v2992_v46, 0 }
0x10f1   : > { %3006 = vmatpush.bf16.xpose.msra.mxu1 %v2997_v47 }
0x10f7   : > { %v3108_v4 = vpop.permute.xlu2 %3107 }
0x10f8   : > { %v3113_v48 = vsel %vm1996_vm9, %v3108_v4, 0 }
0x10f9   : > { %3122 = vmatpush.bf16.xpose.msrb.mxu1 %v3113_v48 }
0x1107   : > { %v2990_v49 = vpop.permute.xlu0 %2989 }
0x1108   : > { %v2934_v50 = vpop.permute.xlu1 %2933  ;;  %4439 = vmatmul.msk.bf16.vlgmr.msra.gmra.mxu1 %vm1996_vm9, %v2990_v49 }
0x1109   : > { %v2939_v51 = vsel %vm1996_vm9, %v2934_v50, 0 }
0x110a   : > { %2948 = vmatpush.bf16.xpose.msra.mxu2 %v2939_v51 }
0x110f   : > { %v3106_v54 = vpop.permute.xlu0 %3105 }
0x1110   : > { %v3050_v52 = vpop.permute.xlu1 %3049 }
0x1111   : > { %v3055_v53 = vsel %vm1996_vm9, %v3050_v52, 0  ;;  %4437 = vmatmul.msk.bf16.vlgmr.msra.gmra.mxu2 %vm1996_vm9, %v2929_v43 }
0x1112   : > { %3064 = vmatpush.bf16.xpose.msrb.mxu2 %v3055_v53 }
0x1118   : > { %4443 = vmatmul.msk.bf16.vlgmr.msrb.gmra.mxu1 %vm1996_vm9, %v3106_v54  ;;  %v3048_v55 = vpop.permute.xlu1 %3047 }
0x1121   : > { %4441 = vmatmul.msk.bf16.vlgmr.msrb.gmra.mxu2 %vm1996_vm9, %v3048_v55 }
0x1185   : > { %v3008_v56 = vpop.f32.mrf.mxu1 }
0x1186   : > { %v3012_v57 = vmul.f32 0.35355338, %v3008_v56 }
0x1188   : > { %v3013_v58 = vadd.f32 %v3012_v57, %v6840_v6 }
0x118a   : > { %v3014_v60 = vsel %vm1996_vm9, %v3013_v58, -inf }
0x118b   : > { %3015 = vmax.xlane.f32.xlu2 %v3014_v60 }
0x118d   : > { %v3010_v61 = vpop.f32.mrf.mxu1 }
0x1194   : > { %v2950_v62 = vpop.f32.mrf.mxu2 }
0x1195   : > { %v2954_v63 = vmul.f32 0.35355338, %v2950_v62  ;;  %v3124_v1 = vpop.f32.mrf.mxu1 }
0x1196   : > { %v3128_v2 = vmul.f32 0.35355338, %v3124_v1 }
0x1197   : > { %v2955_v5 = vadd.f32 %v2954_v63, %v6840_v6 }
0x1198   : > { %v3129_v8 = vadd.f32 %v3128_v2, %v6840_v6 }
0x1199   : > { %v2956_v10 = vsel %vm1996_vm9, %v2955_v5, -inf }
0x119a   : > { %2957 = vmax.xlane.f32.xlu1 %v2956_v10  ;;  %v3130_v12 = vsel %vm1996_vm9, %v3129_v8, -inf }
0x119b   : > { %3131 = vmax.xlane.f32.xlu0 %v3130_v12 }
0x119c   : > { %v2952_v7 = vpop.f32.mrf.mxu2 }
0x119d   : > { %v3126_v13 = vpop.f32.mrf.mxu1 }
0x11a4   : > { %v3066_v14 = vpop.f32.mrf.mxu2 }
0x11a5   : > { %v3070_v15 = vmul.f32 0.35355338, %v3066_v14 }
0x11a7   : > { %v3071_v16 = vadd.f32 %v3070_v15, %v6840_v6 }
0x11a9   : > { %v3072_v17 = vsel %vm1996_vm9, %v3071_v16, -inf }
0x11aa   : > { %3073 = vmax.xlane.f32.xlu2 %v3072_v17 }
0x11ac   : > { %v3068_v18 = vpop.f32.mrf.mxu2 }
0x11af   : > { %3026 = vrot.lane.b32.xlu0 %v6983_v9, %s7344_s7  ;;  %s7347_s7 = smov 48  }
0x11b7   : > { %3142 = vrot.lane.b32.xlu0 %v6983_v9, %s7345_s9  ;;  %s7346_s9 = smov 64  }
0x11fe   : > { %v3016_v31 = vpop.xlane.xlu2 %3015 }
0x11ff   : > { %v3017_v19 = vsub.f32 %v3013_v58, %v3016_v31 }
0x1201   : > { %v3018_v3 = vmul.f32 1.442695, %v3017_v19  ;;  %v4888_v19 = vld [vmem:[#allocation29] ss:$0 sm:$0xff] }
0x1203   : > { %4950 = vpow2.f32 %v3018_v3 }
0x1209   : > { %v4951_v20 = vpop.eup %4950 }
0x120a   : > { %v3020_v21 = vsel %vm1996_vm9, %v4951_v20, 0.0 }
0x120b   : > { %3021 = vadd.xlane.f32.xlu1 %v3020_v21 }
0x120d   : > { %v2958_v22 = vpop.xlane.xlu1 %2957 }
0x120e   : > { %v2959_v6 = vsub.f32 %v2955_v5, %v2958_v22  ;;  %v3132_v23 = vpop.xlane.xlu0 %3131 }
0x120f   : > { %v3133_v25 = vsub.f32 %v3129_v8, %v3132_v23 }
0x1210   : > { %v2960_v24 = vmul.f32 1.442695, %v2959_v6 }
0x1211   : > { %v3134_v26 = vmul.f32 1.442695, %v3133_v25 }
0x1212   : > { %4952 = vpow2.f32 %v2960_v24 }
0x1213   : > { %4954 = vpow2.f32 %v3134_v26 }
0x1218   : > { %v4953_v27 = vpop.eup %4952 }
0x1219   : > { %v2962_v28 = vsel %vm1996_vm9, %v4953_v27, 0.0  ;;  %v4955_v30 = vpop.eup %4954 }
0x121a   : > { %2963 = vadd.xlane.f32.xlu2 %v2962_v28  ;;  %v3136_v35 = vsel %vm1996_vm9, %v4955_v30, 0.0  ;;  %v4543_v28 = vld [vmem:[#allocation37 + $0x8] sm:$0xff] }
0x121b   : > { %3329 = vmatpush.bf16.msra.mxu1 %v4543_v28 }
0x121d   : > { %v3074_v29 = vpop.xlane.xlu2 %3073 }
0x121e   : > { %v3075_v32 = vsub.f32 %v3071_v16, %v3074_v29  ;;  %v4542_v29 = vld [vmem:[#allocation37] sm:$0xff] }
0x121f   : > { %3330 = vmatpush.bf16.msra.mxu1 %v4542_v29 }
0x1220   : > { %v3076_v33 = vmul.f32 1.442695, %v3075_v32 }
0x1221   : > { %v3027_v34 = vpop.permute.xlu0 %3026 }
0x1222   : > { %4956 = vpow2.f32 %v3076_v33  ;;  %v3032_v36 = vsel %vm2035_vm11, %v3027_v34, 0  ;;  %3137 = vadd.xlane.f32.xlu2 %v3136_v35  ;;  %4471 = vmatmul.msk.bf16.vlgmr.msra.gmra.mxu1 %vm1898_vm0, %v6888_v38 }
0x1223   : > { %3041 = vmatpush.bf16.msra.mxu3 %v3032_v36 }
0x1224   : > { %2968 = vrot.lane.b32.xlu1 %v6983_v9, %s7346_s9  ;;  %s7348_s9 = sld [smem:[#allocation90_spill]] }
0x1228   : > { %v4957_v37 = vpop.eup %4956 }
0x1229   : > { %v3143_v0 = vpop.permute.xlu0 %3142  ;;  %v3078_v39 = vsel %vm1996_vm9, %v4957_v37, 0.0 }
0x122a   : > { %v3148_v40 = vsel %vm2035_vm11, %v3143_v0, 0  ;;  %3079 = vadd.xlane.f32.xlu2 %v3078_v39  ;;  %v4539_v12 = vld [vmem:[%s7348_s9 + $0x8] sm:$0xff]  ;;  %v4538_v7 = vld [vmem:[%s7348_s9] sm:$0xff] }
0x122b   : > { %3157 = vmatpush.bf16.msrb.mxu3 %v3148_v40  ;;  %3208 = vmatpush.bf16.msra.mxu2 %v4539_v12 }
0x122f   : > { %3209 = vmatpush.bf16.msra.mxu2 %v4538_v7 }
0x1242   : > { %3084 = vrot.lane.b32.xlu2 %v6983_v9, %s7347_s7 }
0x127e   : > { %v3022_v42 = vpop.xlane.xlu1 %3021 }
0x127f   : > { %4958 = vrcp.f32 %v3022_v42 }
0x1285   : > { %v4959_v43 = vpop.eup %4958 }
0x1286   : > { %v3024_v44 = vmul.f32 %v4959_v43, %v4951_v20 }
0x1288   : > { %v3025_v45 = vpack.c.bf16 %v3024_v44, %v3024_v44 }
0x128a   : > { %4440 = vmatmul.msk.bf16.vlgmr.msra.gmra.mxu3 %vm1996_vm9, %v3025_v45 }
0x128d   : > { %v2964_v46 = vpop.xlane.xlu2 %2963 }
0x128e   : > { %4960 = vrcp.f32 %v2964_v46 }
0x1294   : > { %v4961_v47 = vpop.eup %4960 }
0x1295   : > { %v2966_v4 = vmul.f32 %v4961_v47, %v4953_v27  ;;  %v3138_v48 = vpop.xlane.xlu2 %3137 }
0x1296   : > { %4962 = vrcp.f32 %v3138_v48  ;;  %v2969_v49 = vpop.permute.xlu1 %2968 }
0x1297   : > { %v2974_v50 = vsel %vm2035_vm11, %v2969_v49, 0  ;;  %v2967_v51 = vpack.c.bf16 %v2966_v4, %v2966_v4 }
0x1298   : > { %2983 = vmatpush.bf16.msra.mxu0 %v2974_v50 }
0x129b   : > { %4438 = vmatmul.msk.bf16.vlgmr.msra.gmra.mxu0 %vm1996_vm9, %v2967_v51 }
0x129c   : > { %v4963_v9 = vpop.eup %4962 }
0x129d   : > { %v3140_v52 = vmul.f32 %v4963_v9, %v4955_v30  ;;  %v3080_v53 = vpop.xlane.xlu2 %3079  ;;  %v4540_v30 = vld [vmem:[#allocation34] sm:$0xff] }
0x129e   : > { %4964 = vrcp.f32 %v3080_v53 }
0x129f   : > { %v3141_v54 = vpack.c.bf16 %v3140_v52, %v3140_v52  ;;  %v4889_v52 = vld [vmem:[#allocation31] ss:$0 sm:$0xff] }
0x12a1   : > { %4444 = vmatmul.msk.bf16.vlgmr.msrb.gmra.mxu3 %vm1996_vm9, %v3141_v54 }
0x12a4   : > { %v4965_v55 = vpop.eup %4964 }
0x12a5   : > { %v3082_v56 = vmul.f32 %v4965_v55, %v4957_v37  ;;  %v3085_v57 = vpop.permute.xlu2 %3084  ;;  %v4890_v55 = vld [vmem:[#allocation32] ss:$0 sm:$0xff] }
0x12a6   : > { %v3090_v58 = vsel %vm2035_vm11, %v3085_v57, 0 }
0x12a7   : > { %3099 = vmatpush.bf16.msrb.mxu0 %v3090_v58  ;;  %v3083_v60 = vpack.c.bf16 %v3082_v56, %v3082_v56 }
0x12ab   : > { %4442 = vmatmul.msk.bf16.vlgmr.msrb.gmra.mxu0 %vm1996_vm9, %v3083_v60  ;;  %v4891_v60 = vld [vmem:[#allocation38] ss:$0 sm:$0xff] }
0x130d   : > { %v3043_v61 = vpop.f32.mrf.mxu3 }
0x130e   : > { %3164 = vrot.lane.b32.xlu0 %v3043_v61, %s7333_s16  ;;  %v3332_v61 = vpop.f32.mrf.mxu1 }
0x1315   : > { %v3045_v62 = vpop.f32.mrf.mxu3 }
0x1316   : > { %v3333_v62 = vadd.f32 %v4891_v60, %v3332_v61 }
0x1318   : > { %v2985_v63 = vpop.f32.mrf.mxu0 }
0x1320   : > { %v2987_v1 = vpop.f32.mrf.mxu0 }
0x1321   : > { %v3334_v1 = vpop.f32.mrf.mxu1 }
0x1324   : > { %v3159_v2 = vpop.f32.mrf.mxu3 }
0x1325   : > { %3172 = vrot.lane.b32.xlu0 %v3159_v2, %s7335_s11  ;;  %v3335_v2 = vadd.f32 %v4891_v60, %v3334_v1 }
0x1328   : > { %v3101_v5 = vpop.f32.mrf.mxu0 }
0x1329   : > { %3168 = vrot.lane.b32.xlu1 %v3101_v5, %s7334_s12 }
0x132c   : > { %v3161_v8 = vpop.f32.mrf.mxu3 }
0x132d   : > { %v3338_v8 = vpack.c.bf16 %v3335_v2, %v3335_v2 }
0x1330   : > { %v3103_v10 = vpop.f32.mrf.mxu0 }
0x1331   : > { %v3342_v10 = vunpack.c.l.b16 %v3338_v8 }
0x1380   : > { %v3165_v13 = vpop.permute.xlu0 %3164 }
0x1381   : > { %v3175_v14 = vsel %vm1996_vm9, %v2985_v63, %v3165_v13  ;;  %v3337_v63 = vpack.c.bf16 %v3333_v62, %v3333_v62  ;;  %v4892_v13 = vld [vmem:[#allocation35] ss:$0 sm:$0xff] }
0x1383   : > { %v3341_v5 = vunpack.c.l.b16 %v3337_v63 }
0x1385   : > { %v7055_v12 = vpack.c.b16 %v3342_v10, %v3341_v5 }
0x1387   : > { %3403 = vrot.lane.b32.xlu2 %v7055_v12, %s7339_s0  ;;  %v3348_v7 = vsel %vm1996_vm9, %v7055_v12, 0 }
0x1388   : > { %3357 = vmatpush.bf16.xpose.msra.mxu3 %v3348_v7 }
0x138f   : > { %3461 = vrot.lane.b32.xlu2 %v7055_v12, %s7343_s6 }
0x1397   : > { %v3173_v16 = vpop.permute.xlu0 %3172 }
0x139b   : > { %v3169_v15 = vpop.permute.xlu1 %3168 }
0x139c   : > { %v3176_v17 = vsel %vm2239_vm12, %v3175_v14, %v3169_v15 }
0x139d   : > { %v3177_v18 = vsel %vm2241_vm13, %v3176_v17, %v3173_v16 }
0x139e   : > { %v3178_v31 = vpack.c.bf16 %v3177_v18, %v3177_v18 }
0x13a0   : > { %4453 = vmatmul.msk.bf16.vlgmr.msra.gmra.mxu2 %vm1898_vm0, %v3178_v31 }
0x1423   : > { %v3211_v3 = vpop.f32.mrf.mxu2 }
0x1424   : > { %v3212_v20 = vadd.f32 %v4888_v19, %v3211_v3  ;;  %v3404_v19 = vpop.permute.xlu2 %3403 }
0x1425   : > { %v3409_v3 = vsel %vm1996_vm9, %v3404_v19, 0 }
0x1426   : > { %v7045_v21 = vadd.f32 %v3212_v20, %v6973_v59  ;;  %v4541_v59 = vld [vmem:[#allocation34 + $0x8] sm:$0xff] }
0x1427   : > { %3295 = vmatpush.bf16.msra.mxu0 %v4541_v59 }
0x1428   : > { %v3218_v22 = vsel %vm1898_vm0, %v7045_v21, 0.0 }
0x1429   : > { %3219 = vadd.xlane.f32.xlu1 %v3218_v22 }
0x142b   : > { %v3213_v6 = vpop.f32.mrf.mxu2  ;;  %3296 = vmatpush.bf16.msra.mxu0 %v4540_v30 }
0x142c   : > { %v3462_v20 = vpop.permute.xlu2 %3461 }
0x142d   : > { %v3467_v22 = vsel %vm1996_vm9, %v3462_v20, 0 }
0x142e   : > { %3476 = vmatpush.bf16.xpose.msrb.mxu3 %v3467_v22 }
0x142f   : > { %3418 = vmatpush.bf16.xpose.msrb.mxu0 %v3409_v3 }
0x149c   : > { %v3220_v23 = vpop.xlane.xlu1 %3219 }
0x149d   : > { %v3221_v24 = vmul.f32 %v3220_v23, %v6804_v11 }
0x149f   : > { %v3222_v25 = vsub.f32 %v7045_v21, %v3221_v24 }
0x14a1   : > { %v3223_v26 = vmul.f32 %v3222_v25, %v3222_v25 }
0x14a3   : > { %v3224_v27 = vsel %vm1898_vm0, %v3223_v26, 0.0 }
0x14a4   : > { %3225 = vadd.xlane.f32.xlu0 %v3224_v27 }
0x1517   : > { %v3226_v32 = vpop.xlane.xlu0 %3225 }
0x1518   : > { %v3227_v33 = vmul.f32 0.032258064, %v3226_v32 }
0x151a   : > { %4966 = vrsqrt.f32 %v3227_v33  ;;  %vm3235_vm11 = vcmp.eq.f32.partialorder %v3227_v33, inf  ;;  %v3238_v42 = vand.u32 2147483648, %v3227_v33  ;;  %vm3237_vm15 = vcmp.eq.f32.partialorder %v3227_v33, 0.0 }
0x1520   : > { %v4967_v34 = vpop.eup %4966 }
0x1521   : > { %v3229_v35 = vmul.f32 %v4967_v34, %v3227_v33 }
0x1523   : > { %v3230_v36 = vmul.f32 %v4967_v34, %v3229_v35 }
0x1525   : > { %v3231_v37 = vmul.f32 0.5, %v3230_v36 }
0x1527   : > { %v3232_v0 = vsub.f32 1.5, %v3231_v37 }
0x1529   : > { %v3233_v39 = vmul.f32 %v4967_v34, %v3232_v0 }
0x152b   : > { %v3234_v40 = vmul.f32 %v3233_v39, %v3227_v33 }
0x152d   : > { %v3236_v43 = vsel %vm3235_vm11, %v3227_v33, %v3234_v40 }
0x152e   : > { %v3239_v44 = vsel %vm3237_vm15, %v3238_v42, %v3236_v43 }
0x152f   : > { %v3240_v38 = vadd.f32 1e-06, %v3239_v44 }
0x1531   : > { %4968 = vrcp.f32 %v3240_v38  ;;  %v3252_v4 = vand.u32 2147483648, %v3240_v38  ;;  %v3250_v49 = vand.u32 2147483647, %v3240_v38  ;;  %vm3246_vm3 = vweird.f32 %v3240_v38 }
0x1533   : > { %v3253_v51 = vor.u32 1.1754944e-38, %v3252_v4  ;;  %vm3251_vm7 = vcmp.eq.f32.partialorder %v3250_v49, 8.507059e+37 }
0x1537   : > { %v4969_v45 = vpop.eup %4968 }
0x1538   : > { %v3242_v46 = vmul.f32 %v4969_v45, %v3240_v38  ;;  %vm3247_vm1 = vweird.f32 %v4969_v45 }
0x1539   : > { %vm3248_vm4 = vmor %vm3246_vm3, %vm3247_vm1 }
0x153a   : > { %v3243_v47 = vsub.f32 1.0, %v3242_v46 }
0x153c   : > { %v3244_v48 = vmul.f32 %v4969_v45, %v3243_v47 }
0x153e   : > { %v3245_v50 = vadd.f32 %v4969_v45, %v3244_v48 }
0x1540   : > { %v3249_v9 = vsel %vm3248_vm4, %v4969_v45, %v3245_v50 }
0x1541   : > { %v3254_v53 = vsel %vm3251_vm7, %v3253_v51, %v3249_v9 }
0x1542   : > { %v3256_v54 = vmul.f32 %v3254_v53, %v3222_v25 }
0x1544   : > { %v3260_v56 = vmul.f32 %v4889_v52, %v3256_v54 }
0x1546   : > { %v3264_v57 = vadd.f32 %v4890_v55, %v3260_v56 }
0x1548   : > { %v3265_v58 = vpack.c.bf16 %v3264_v57, %v3264_v57 }
0x154a   : > { %4462 = vmatmul.msk.bf16.vlgmr.msra.gmra.mxu0 %vm1898_vm0, %v3265_v58 }
0x15c7   : > { %v3298_v14 = vpop.f32.mrf.mxu0 }
0x15c8   : > { %v3299_v15 = vadd.f32 %v4892_v13, %v3298_v14 }
0x15ca   : > { %v3302_v16 = vpack.c.bf16 %v3299_v15, %v3299_v15 }
0x15cc   : > { %v3399_v17 = vunpack.c.l.b16 %v3302_v16  ;;  %4472 = vmatmul.msk.bf16.vlgmr.msra.gmra.mxu3 %vm1996_vm9, %v3302_v16 }
0x15ce   : > { %v3400_v18 = vpack.c.b16 %v3399_v17, %v3399_v17 }
0x15cf   : > { %v3300_v31 = vpop.f32.mrf.mxu0 }
0x15d0   : > { %3517 = vrot.lane.b32.xlu1 %v3400_v18, %s7341_s2  ;;  %3401 = vrot.lane.b32.xlu2 %v3400_v18, %s7339_s0 }
0x15d8   : > { %3459 = vrot.lane.b32.xlu2 %v3400_v18, %s7343_s6  ;;  %s7349_s6 = sld [smem:[#allocation103_spill]] }
0x15e0   : > { %3519 = vrot.lane.b32.xlu2 %v7055_v12, %s7341_s2  ;;  %s1866_s2 = sand.u32 1, %s5980_s15  }
0x162a   : > { %v3402_v6 = vpop.permute.xlu2 %3401 }
0x162b   : > { %4474 = vmatmul.msk.bf16.vlgmr.msrb.gmra.mxu0 %vm1996_vm9, %v3402_v6 }
0x1632   : > { %v3460_v23 = vpop.permute.xlu2 %3459 }
0x1633   : > { %4476 = vmatmul.msk.bf16.vlgmr.msrb.gmra.mxu3 %vm1996_vm9, %v3460_v23 }
0x163a   : > { %v3520_v24 = vpop.permute.xlu2 %3519 }
0x163b   : > { %v3525_v25 = vsel %vm1996_vm9, %v3520_v24, 0 }
0x163c   : > { %3534 = vmatpush.bf16.xpose.msra.mxu0 %v3525_v25 }
0x1642   : > { %v3518_v26 = vpop.permute.xlu1 %3517 }
0x1643   : > { %4478 = vmatmul.msk.bf16.vlgmr.msra.gmra.mxu0 %vm1996_vm9, %v3518_v26 }
0x164f   : > { %v3359_v27 = vpop.f32.mrf.mxu3 }
0x1650   : > { %v3363_v28 = vmul.f32 0.35355338, %v3359_v27 }
0x1652   : > { %v3364_v29 = vadd.f32 %v3363_v28, %v6918_v41 }
0x1654   : > { %v3365_v59 = vsel %vm2436_vm5, %v3364_v29, -inf }
0x1655   : > { %3366 = vmax.xlane.f32.xlu0 %v3365_v59 }
0x1657   : > { %v3361_v30 = vpop.f32.mrf.mxu3 }
0x16a8   : > { %v3420_v32 = vpop.f32.mrf.mxu0 }
0x16a9   : > { %v3424_v33 = vmul.f32 0.35355338, %v3420_v32 }
0x16ab   : > { %v3425_v34 = vadd.f32 %v3424_v33, %v6918_v41 }
0x16ad   : > { %v3426_v35 = vsel %vm2436_vm5, %v3425_v34, -inf }
0x16ae   : > { %3427 = vmax.xlane.f32.xlu2 %v3426_v35 }
0x16b0   : > { %v3422_v36 = vpop.f32.mrf.mxu0 }
0x16b6   : > { %v3478_v37 = vpop.f32.mrf.mxu3 }
0x16b7   : > { %v3482_v0 = vmul.f32 0.35355338, %v3478_v37  ;;  %v4545_v37 = vld [vmem:[#allocation40 + $0x8] sm:$0xff] }
0x16b8   : > { %3620 = vmatpush.bf16.msra.mxu3 %v4545_v37 }
0x16b9   : > { %v3483_v39 = vadd.f32 %v3482_v0, %v6918_v41  ;;  %v4544_v0 = vld [vmem:[#allocation40] sm:$0xff] }
0x16bb   : > { %v3484_v40 = vsel %vm2436_vm5, %v3483_v39, -inf }
0x16bc   : > { %3485 = vmax.xlane.f32.xlu0 %v3484_v40  ;;  %3621 = vmatpush.bf16.msra.mxu3 %v4544_v0 }
0x16be   : > { %v3480_v42 = vpop.f32.mrf.mxu3 }
0x16c0   : > { %v3536_v43 = vpop.f32.mrf.mxu0 }
0x16c1   : > { %v3540_v44 = vmul.f32 0.35355338, %v3536_v43 }
0x16c3   : > { %v3541_v38 = vadd.f32 %v3540_v44, %v6918_v41 }
0x16c5   : > { %v3542_v45 = vsel %vm2436_vm5, %v3541_v38, -inf }
0x16c6   : > { %3438 = vrot.lane.b32.xlu2 %v7055_v12, %s7330_s18  ;;  %3543 = vmax.xlane.f32.xlu0 %v3542_v45 }
0x16c8   : > { %v3538_v46 = vpop.f32.mrf.mxu0  ;;  %v3367_v47 = vpop.xlane.xlu0 %3366 }
0x16c9   : > { %v3368_v4 = vsub.f32 %v3364_v29, %v3367_v47  ;;  %v4893_v46 = vld [vmem:[#allocation41] ss:$0 sm:$0xff] }
0x16cb   : > { %v3369_v48 = vmul.f32 1.442695, %v3368_v4 }
0x16cd   : > { %4970 = vpow2.f32 %v3369_v48 }
0x16ce   : > { %3496 = vrot.lane.b32.xlu2 %v7055_v12, %s7342_s4  ;;  %s4336_s4 = sshll.u32 %s1866_s2, 3 }
0x16cf   : > { %s1868_s18 = scalar_lea.vmem [#allocation50], %s4336_s4 }
0x16d3   : > { %v4971_v49 = vpop.eup %4970 }
0x16d4   : > { %v3371_v50 = vsel %vm2436_vm5, %v4971_v49, 0.0 }
0x16d5   : > { %3372 = vadd.xlane.f32.xlu1 %v3371_v50 }
0x1721   : > { %v3428_v51 = vpop.xlane.xlu2 %3427 }
0x1722   : > { %v3429_v41 = vsub.f32 %v3425_v34, %v3428_v51 }
0x1724   : > { %v3430_v9 = vmul.f32 1.442695, %v3429_v41 }
0x1726   : > { %4972 = vpow2.f32 %v3430_v9 }
0x1729   : > { %v3439_v52 = vpop.permute.xlu2 %3438 }
0x172a   : > { %v3444_v53 = vsel %vm2454_vm6, %v3439_v52, 0 }
0x172b   : > { %3453 = vmatpush.bf16.msrb.mxu1 %v3444_v53 }
0x172c   : > { %v4973_v54 = vpop.eup %4972 }
0x172d   : > { %v3432_v55 = vsel %vm2436_vm5, %v4973_v54, 0.0 }
0x172e   : > { %3433 = vadd.xlane.f32.xlu0 %v3432_v55  ;;  %v4546_v55 = vld [vmem:[#allocation46] sm:$0xff] }
0x172f   : > { %v3486_v56 = vpop.xlane.xlu0 %3485 }
0x1730   : > { %v3487_v63 = vsub.f32 %v3483_v39, %v3486_v56 }
0x1731   : > { %v3497_v16 = vpop.permute.xlu2 %3496 }
0x1732   : > { %v3488_v1 = vmul.f32 1.442695, %v3487_v63  ;;  %v3502_v31 = vsel %vm2454_vm6, %v3497_v16, 0 }
0x1739   : > { %v3544_v57 = vpop.xlane.xlu0 %3543 }
0x173a   : > { %v3545_v58 = vsub.f32 %v3541_v38, %v3544_v57 }
0x173c   : > { %v3546_v60 = vmul.f32 1.442695, %v3545_v58 }
0x173e   : > { %4974 = vpow2.f32 %v3546_v60 }
0x173f   : > { %4976 = vpow2.f32 %v3488_v1  ;;  %v4551_v1 = vld [vmem:[%s7349_s6 + $0x18] sm:$0xff] }
0x1740   : > { %3759 = vmatpush.bf16.msrb.mxu0 %v4551_v1  ;;  %v4898_v1 = vld [vmem:[%s6313_s29] ss:$0 sm:$0xff] }
0x1742   : > { %3377 = vrot.lane.b32.xlu0 %v7055_v12, %s7340_s1 }
0x1744   : > { %v4975_v61 = vpop.eup %4974 }
0x1745   : > { %v3548_v62 = vsel %vm2436_vm5, %v4975_v61, 0.0  ;;  %v4977_v2 = vpop.eup %4976 }
0x1746   : > { %3549 = vadd.xlane.f32.xlu1 %v3548_v62  ;;  %v3490_v5 = vsel %vm2436_vm5, %v4977_v2, 0.0 }
0x1748   : > { %v3373_v10 = vpop.xlane.xlu1 %3372 }
0x175f   : > { %3554 = vrot.lane.b32.xlu1 %v7055_v12, %s7331_s5  ;;  %s3832_s5 = sshll.u32 %s1868_s18, 4  ;;  %s3833_s5 = int_to_ptr.vmem [resolvable:$true] %s3832_s5 }
0x176c   : > { %3491 = vadd.xlane.f32.xlu0 %v3490_v5 }
0x17a1   : > { %v3434_v8 = vpop.xlane.xlu0 %3433 }
0x17a2   : > { %4978 = vrcp.f32 %v3434_v8  ;;  %v4550_v8 = vld [vmem:[%s7349_s6 + $0x10] sm:$0xff] }
0x17a3   : > { %4980 = vrcp.f32 %v3373_v10  ;;  %3760 = vmatpush.bf16.msrb.mxu0 %v4550_v8  ;;  %v4899_v8 = vld [vmem:[%s7350_s3] ss:$0 sm:$0xff] }
0x17a8   : > { %v4979_v7 = vpop.eup %4978 }
0x17a9   : > { %v3436_v13 = vmul.f32 %v4979_v7, %v4973_v54  ;;  %v4981_v15 = vpop.eup %4980  ;;  %v4547_v54 = vld [vmem:[#allocation46 + $0x8] sm:$0xff] }
0x17aa   : > { %v3375_v17 = vmul.f32 %v4981_v15, %v4971_v49 }
0x17ab   : > { %v3437_v14 = vpack.c.bf16 %v3436_v13, %v3436_v13 }
0x17ac   : > { %v3376_v19 = vpack.c.bf16 %v3375_v17, %v3375_v17 }
0x17ad   : > { %4475 = vmatmul.msk.bf16.vlgmr.msrb.gmra.mxu1 %vm2436_vm5, %v3437_v14 }
0x17b4   : > { %v3378_v18 = vpop.permute.xlu0 %3377 }
0x17b5   : > { %v3383_v12 = vsel %vm2454_vm6, %v3378_v18, 0 }
0x17b6   : > { %3392 = vmatpush.bf16.msrb.mxu2 %v3383_v12 }
0x17b9   : > { %4473 = vmatmul.msk.bf16.vlgmr.msrb.gmra.mxu2 %vm2436_vm5, %v3376_v19  ;;  %v3550_v3 = vpop.xlane.xlu1 %3549 }
0x17ba   : > { %3511 = vmatpush.bf16.msra.mxu2 %v3502_v31  ;;  %4982 = vrcp.f32 %v3550_v3 }
0x17be   : > { %3707 = vmatpush.bf16.msrb.mxu2 %v4547_v54 }
0x17c0   : > { %v4983_v20 = vpop.eup %4982 }
0x17c1   : > { %v3552_v22 = vmul.f32 %v4983_v20, %v4975_v61  ;;  %v4894_v20 = vld [vmem:[#allocation43] ss:$0 sm:$0xff] }
0x17c2   : > { %3708 = vmatpush.bf16.msrb.mxu2 %v4546_v55 }
0x17c3   : > { %v3553_v24 = vpack.c.bf16 %v3552_v22, %v3552_v22 }
0x17d1   : > { %v3555_v6 = vpop.permute.xlu1 %3554 }
0x17d2   : > { %v3560_v23 = vsel %vm2454_vm6, %v3555_v6, 0 }
0x17d3   : > { %3569 = vmatpush.bf16.msra.mxu1 %v3560_v23  ;;  %v4895_v23 = vld [vmem:[#allocation44] ss:$0 sm:$0xff] }
0x17d6   : > { %4479 = vmatmul.msk.bf16.vlgmr.msra.gmra.mxu1 %vm2436_vm5, %v3553_v24 }
0x17df   : > { %v3492_v25 = vpop.xlane.xlu0 %3491 }
0x17e0   : > { %4984 = vrcp.f32 %v3492_v25 }
0x17e6   : > { %v4985_v26 = vpop.eup %4984 }
0x17e7   : > { %v3494_v27 = vmul.f32 %v4985_v26, %v4977_v2 }
0x17e9   : > { %v3495_v28 = vpack.c.bf16 %v3494_v27, %v3494_v27  ;;  %v4549_v27 = vld [vmem:[%s7349_s6 + $0x8] sm:$0xff] }
0x17ea   : > { %3761 = vmatpush.bf16.msrb.mxu0 %v4549_v27 }
0x17eb   : > { %4477 = vmatmul.msk.bf16.vlgmr.msra.gmra.mxu2 %vm2436_vm5, %v3495_v28  ;;  %v4548_v28 = vld [vmem:[%s7349_s6] sm:$0xff] }
0x17ee   : > { %3762 = vmatpush.bf16.msrb.mxu0 %v4548_v28 }
0x182a   : > { %v3455_v29 = vpop.f32.mrf.mxu1 }
0x182b   : > { %3576 = vrot.lane.b32.xlu2 %v3455_v29, %s7333_s16  ;;  %v4896_v29 = vld [vmem:[#allocation47] ss:$0 sm:$0xff] }
0x1832   : > { %v3457_v59 = vpop.f32.mrf.mxu1 }
0x183c   : > { %v3394_v30 = vpop.f32.mrf.mxu2 }
0x1844   : > { %v3396_v32 = vpop.f32.mrf.mxu2 }
0x1853   : > { %v3571_v33 = vpop.f32.mrf.mxu1 }
0x185b   : > { %v3573_v34 = vpop.f32.mrf.mxu1 }
0x186e   : > { %v3513_v35 = vpop.f32.mrf.mxu2 }
0x186f   : > { %3580 = vrot.lane.b32.xlu2 %v3513_v35, %s7334_s12  ;;  %v4897_v35 = vld [vmem:[#allocation49] ss:$0 sm:$0xff]  ;;  %s4516_s12 = sshll.u32 %s6346_s22, 3  ;;  %s3820_s22 = scalar_lea.sflag [#allocation4], %s1866_s2 }
0x1876   : > { %v3515_v36 = vpop.f32.mrf.mxu2 }
0x1877   : > { %3584 = vrot.lane.b32.xlu2 %v3571_v33, %s7335_s11  ;;  %s3830_s11 = scalar_lea.hbm %s6323_s8, %s4516_s12  ;;  %s5882_s12 = scalar_lea.hbm %s6323_s8, 16 }
0x1878   : > { %s3834_s16 = sshll.u32 %s3830_s11, 4  ;;  %s3835_s16 = int_to_ptr.hbm [resolvable:$true] %s3834_s16 }
0x1879   : > { %s5876_s0 = sshra.s32 %s3835_s16, 4  ;;  %s5877_s0 = int_to_ptr.hbm [resolvable:$true] %s5876_s0 }
0x187a   : > { %s5878_s7 = scalar_lea.hbm %s5877_s0, 8  ;;  %p5883_p11 = scmp.lt.s32.totalorder %s5877_s0, %s6323_s8 }
0x187b   : > { %p5879_p10 = scmp.ne.s32.totalorder %s5877_s0, %s5878_s7  ;;  %p5884_p12 = scmp.lt.s32.totalorder %s5882_s12, %s5878_s7 }
0x187d   : > { %p5880_p7 = pnand %p5879_p10, %p6363_p5  ;;  %p5885_p13 = por %p5884_p12, %p5883_p11 }
0x187f   : > { %p5881_p8 = pneg %p5880_p7 }
0x1881   : > { %p5886_p0 = pnand %p5885_p13, %p5881_p8 }
0x1885   : > { %v3577_v39 = vpop.permute.xlu2 %3576 }
0x1886   : > { %v3587_v42 = vsel %vm1996_vm9, %v3394_v30, %v3577_v39 }
0x18c9   : > { %v3581_v40 = vpop.permute.xlu2 %3580 }
0x18ca   : > { %v3588_v43 = vsel %vm2239_vm12, %v3587_v42, %v3581_v40 }
0x18d1   : > { %v3585_v44 = vpop.permute.xlu2 %3584 }
0x18d2   : > { %v3589_v38 = vsel %vm2241_vm13, %v3588_v43, %v3585_v44 }
0x18d3   : > { %v3590_v45 = vpack.c.bf16 %v3589_v38, %v3589_v38 }
0x18d5   : > { %4488 = vmatmul.msk.bf16.vlgmr.msra.gmra.mxu3 %vm1898_vm0, %v3590_v45 }
0x1958   : > { %v3623_v47 = vpop.f32.mrf.mxu3 }
0x1959   : > { %v3624_v4 = vadd.f32 %v4893_v46, %v3623_v47 }
0x195b   : > { %v7111_v48 = vadd.f32 %v3624_v4, %v7045_v21 }
0x195d   : > { %v3630_v49 = vsel %vm1898_vm0, %v7111_v48, 0.0 }
0x195e   : > { %3631 = vadd.xlane.f32.xlu0 %v3630_v49 }
0x1960   : > { %v3625_v50 = vpop.f32.mrf.mxu3 }
0x19d1   : > { %v3632_v51 = vpop.xlane.xlu0 %3631 }
0x19d2   : > { %v3633_v41 = vmul.f32 %v3632_v51, %v6804_v11 }
0x19d4   : > { %v3634_v9 = vsub.f32 %v7111_v48, %v3633_v41 }
0x19d6   : > { %v3635_v52 = vmul.f32 %v3634_v9, %v3634_v9 }
0x19d8   : > { %v3636_v53 = vsel %vm1898_vm0, %v3635_v52, 0.0 }
0x19d9   : > { %3637 = vadd.xlane.f32.xlu1 %v3636_v53 }
0x1a4c   : > { %v3638_v21 = vpop.xlane.xlu1 %3637 }
0x1a4d   : > { %v3639_v56 = vmul.f32 0.032258064, %v3638_v21 }
0x1a4f   : > { %4986 = vrsqrt.f32 %v3639_v56  ;;  %vm3647_vm9 = vcmp.eq.f32.partialorder %v3639_v56, inf  ;;  %v3650_v5 = vand.u32 2147483648, %v3639_v56  ;;  %vm3649_vm12 = vcmp.eq.f32.partialorder %v3639_v56, 0.0 }
0x1a55   : > { %v4987_v57 = vpop.eup %4986 }
0x1a56   : > { %v3641_v58 = vmul.f32 %v4987_v57, %v3639_v56 }
0x1a58   : > { %v3642_v60 = vmul.f32 %v4987_v57, %v3641_v58 }
0x1a5a   : > { %v3643_v61 = vmul.f32 0.5, %v3642_v60 }
0x1a5c   : > { %v3644_v62 = vsub.f32 1.5, %v3643_v61 }
0x1a5e   : > { %v3645_v63 = vmul.f32 %v4987_v57, %v3644_v62 }
0x1a60   : > { %v3646_v2 = vmul.f32 %v3645_v63, %v3639_v56 }
0x1a62   : > { %v3648_v10 = vsel %vm3647_vm9, %v3639_v56, %v3646_v2 }
0x1a63   : > { %v3651_v7 = vsel %vm3649_vm12, %v3650_v5, %v3648_v10 }
0x1a64   : > { %v3652_v13 = vadd.f32 1e-06, %v3651_v7 }
0x1a66   : > { %4988 = vrcp.f32 %v3652_v13  ;;  %v3664_v17 = vand.u32 2147483648, %v3652_v13  ;;  %v3662_v12 = vand.u32 2147483647, %v3652_v13  ;;  %vm3658_vm5 = vweird.f32 %v3652_v13 }
0x1a68   : > { %v3665_v19 = vor.u32 1.1754944e-38, %v3664_v17  ;;  %vm3663_vm8 = vcmp.eq.f32.partialorder %v3662_v12, 8.507059e+37 }
0x1a6c   : > { %v4989_v14 = vpop.eup %4988 }
0x1a6d   : > { %v3654_v15 = vmul.f32 %v4989_v14, %v3652_v13  ;;  %vm3659_vm13 = vweird.f32 %v4989_v14 }
0x1a6e   : > { %vm3660_vm6 = vmor %vm3658_vm5, %vm3659_vm13 }
0x1a6f   : > { %v3655_v16 = vsub.f32 1.0, %v3654_v15 }
0x1a71   : > { %v3656_v18 = vmul.f32 %v4989_v14, %v3655_v16 }
0x1a73   : > { %v3657_v31 = vadd.f32 %v4989_v14, %v3656_v18 }
0x1a75   : > { %v3661_v3 = vsel %vm3660_vm6, %v4989_v14, %v3657_v31 }
0x1a76   : > { %v3666_v22 = vsel %vm3663_vm8, %v3665_v19, %v3661_v3 }
0x1a77   : > { %v3668_v6 = vmul.f32 %v3666_v22, %v3634_v9 }
0x1a79   : > { %v3672_v24 = vmul.f32 %v4894_v20, %v3668_v6 }
0x1a7b   : > { %v3676_v25 = vadd.f32 %v4895_v23, %v3672_v24 }
0x1a7d   : > { %v3677_v26 = vpack.c.bf16 %v3676_v25, %v3676_v25 }
0x1a7f   : > { %4497 = vmatmul.msk.bf16.vlgmr.msrb.gmra.mxu2 %vm1898_vm0, %v3677_v26 }
0x1b02   : > { %v3710_v59 = vpop.f32.mrf.mxu2 }
0x1b03   : > { %v3711_v30 = vadd.f32 %v4896_v29, %v3710_v59 }
0x1b05   : > { %v3714_v32 = vmax.f32 %v3711_v30, 0.0 }
0x1b07   : > { %v3715_v33 = vpack.c.bf16 %v3714_v32, %v3714_v32 }
0x1b09   : > { %4514 = vmatmul.msk.bf16.vlgmr.msrb.gmra.mxu0 %vm2825_vm2, %v3715_v33 }
0x1b0a   : > { %v3712_v34 = vpop.f32.mrf.mxu2 }
0x1b86   : > { %v3764_v36 = vpop.f32.mrf.mxu0 }
0x1b87   : > { %v3765_v37 = vadd.f32 %v4897_v35, %v3764_v36 }
0x1b89   : > { %v3768_v0 = vadd.f32 %v3765_v37, %v7111_v48 }
0x1b8b   : > { %v3771_v39 = vsel %vm1898_vm0, %v3768_v0, 0.0 }
0x1b8c   : > { %3772 = vadd.xlane.f32.xlu2 %v3771_v39 }
0x1b8e   : > { %v3766_v40 = vpop.f32.mrf.mxu0 }
0x1bff   : > { %v3773_v42 = vpop.xlane.xlu2 %3772 }
0x1c00   : > { %v3774_v43 = vmul.f32 %v3773_v42, %v6804_v11 }
0x1c02   : > { %v3775_v44 = vsub.f32 %v3768_v0, %v3774_v43 }
0x1c04   : > { %v3776_v38 = vmul.f32 %v3775_v44, %v3775_v44 }
0x1c06   : > { %v3777_v45 = vsel %vm1898_vm0, %v3776_v38, 0.0 }
0x1c07   : > { %3778 = vadd.xlane.f32.xlu0 %v3777_v45 }
0x1c7a   : > { %v3779_v46 = vpop.xlane.xlu0 %3778 }
0x1c7b   : > { %v3780_v47 = vmul.f32 0.032258064, %v3779_v46 }
0x1c7d   : > { %4990 = vrsqrt.f32 %v3780_v47  ;;  %vm3788_vm2 = vcmp.eq.f32.partialorder %v3780_v47, inf  ;;  %v3791_v52 = vand.u32 2147483648, %v3780_v47  ;;  %vm3790_vm10 = vcmp.eq.f32.partialorder %v3780_v47, 0.0 }
0x1c83   : > { %v4991_v4 = vpop.eup %4990 }
0x1c84   : > { %v3782_v49 = vmul.f32 %v4991_v4, %v3780_v47 }
0x1c86   : > { %v3783_v50 = vmul.f32 %v4991_v4, %v3782_v49 }
0x1c88   : > { %v3784_v48 = vmul.f32 0.5, %v3783_v50 }
0x1c8a   : > { %v3785_v51 = vsub.f32 1.5, %v3784_v48 }
0x1c8c   : > { %v3786_v41 = vmul.f32 %v4991_v4, %v3785_v51 }
0x1c8e   : > { %v3787_v9 = vmul.f32 %v3786_v41, %v3780_v47 }
0x1c90   : > { %v3789_v11 = vsel %vm3788_vm2, %v3780_v47, %v3787_v9 }
0x1c91   : > { %v3792_v53 = vsel %vm3790_vm10, %v3791_v52, %v3789_v11 }
0x1c92   : > { %v3793_v54 = vadd.f32 1e-06, %v3792_v53 }
0x1c94   : > { %4992 = vrcp.f32 %v3793_v54  ;;  %v3805_v57 = vand.u32 2147483648, %v3793_v54  ;;  %v3803_v60 = vand.u32 2147483647, %v3793_v54  ;;  %vm3799_vm11 = vweird.f32 %v3793_v54 }
0x1c96   : > { %v3806_v62 = vor.u32 1.1754944e-38, %v3805_v57  ;;  %vm3804_vm1 = vcmp.eq.f32.partialorder %v3803_v60, 8.507059e+37 }
0x1c9a   : > { %v4993_v55 = vpop.eup %4992 }
0x1c9b   : > { %v3795_v21 = vmul.f32 %v4993_v55, %v3793_v54  ;;  %vm3800_vm14 = vweird.f32 %v4993_v55 }
0x1c9c   : > { %vm3801_vm15 = vmor %vm3799_vm11, %vm3800_vm14 }
0x1c9d   : > { %v3796_v56 = vsub.f32 1.0, %v3795_v21 }
0x1c9f   : > { %v3797_v58 = vmul.f32 %v4993_v55, %v3796_v56 }
0x1ca1   : > { %v3798_v61 = vadd.f32 %v4993_v55, %v3797_v58 }
0x1ca3   : > { %v3802_v63 = vsel %vm3801_vm15, %v4993_v55, %v3798_v61 }
0x1ca4   : > { %v3807_v2 = vsel %vm3804_vm1, %v3806_v62, %v3802_v63 }
0x1ca5   : > { %v3809_v5 = vmul.f32 %v3807_v2, %v3775_v44 }
0x1ca7   : > { %v3813_v10 = vmul.f32 %v4898_v1, %v3809_v5 }
0x1ca9   : > { %v3817_v7 = vadd.f32 %v4899_v8, %v3813_v10 }
0x1cab   : > { %3818 = vst.msk [vmem:[%s1868_s18] sm:$0xff] %vm1898_vm0, %v3817_v7 }
0x1cac   : > { %5889 = shalt.err (!%p5886_p0)
}
0x1cad   : > { %4676 = dma.vmem_to_hbm [thread:$0]  (%p6363_p5), %s3833_s5, 128, %s3835_s16, %s3820_s22  }
0x1cae PF: > { %s7352_s4 = sld [smem:[#allocation107_spill]] }
0x1caf   : > { %s7353_s11 = sld [smem:[#allocation105_spill]] }
0x1cb4   : > { %p4744_p1 = scmp.ge.s32.totalorder %s7352_s4, 2 }
0x1cb5   : > { %s3846_s18 = sand.u32 1, %s7353_s11  }
0x1cb6   : > { %p4679_p2 = pnand %p4744_p1, %p6367_p6  ;;  %s3847_s3 = scalar_lea.sflag [#allocation4], %s3846_s18 }
0x1cb8   : > { %p4680_p3 = pneg %p4679_p2 }
0x1cba   : > { %5971 = dma.done.wait (%p4680_p3), %s3847_s3, 128  }
0x1cbb   : > { %5973 = vsyncadd (%p4680_p3), %s3847_s3, 4294967168  ;;  %s7355_s18 = sld [smem:[#allocation108_spill]]  ;;  %s7358_s0 = smov %s5980_s15 }
0x1cbc   : > { %s7356_s7 = sld [smem:[#allocation106_spill]] }
0x1cbd   : > { %s7357_s16 = sld [smem:[#allocation109_spill]] }
0x1cc1   : > { %p119_p4 = scmp.ge.s32.totalorder %s7355_s18, 4  }
0x1cc2   : > { %s7359_s15 = smov %s7356_s7 }
0x1cc3   :  { %121 = sbr.rel (!%p119_p4) target bundleno = 107 (0x6b), region = 419 }
0x1cc8   :  { %3853 = vsyncpa [#allocation3], 1 }
0x1cc9   :  { %3855 = vsyncpa [#allocation3 + $0x1], 1 }
0x1cca   :  { %3856 = vsyncpa [#allocation6], 1 }
0x1ccb   :  { %3857 = vsyncpa [#allocation9], 1 }
0x1ccc   :  { %3858 = vsyncpa [#allocation12], 1 }
0x1ccd   :  { %3859 = vsyncpa [#allocation15], 1 }
0x1cce   :  { %3860 = vsyncpa [#allocation18], 1 }
0x1ccf   :  { %3861 = vsyncpa [#allocation21], 1 }
0x1cd0   :  { %3862 = vsyncpa [#allocation24], 1 }
0x1cd1   :  { %3863 = vsyncpa [#allocation27], 1 }
0x1cd2   :  { %3864 = vsyncpa [#allocation30], 1 }
0x1cd3   :  { %3865 = vsyncpa [#allocation33], 1 }
0x1cd4   :  { %3866 = vsyncpa [#allocation36], 1 }
0x1cd5   :  { %3867 = vsyncpa [#allocation39], 1 }
0x1cd6   :  { %3868 = vsyncpa [#allocation42], 1 }
0x1cd7   :  { %3869 = vsyncpa [#allocation45], 1 }
0x1cd8   :  { %3870 = vsyncpa [#allocation48], 1 }
0x1cd9   :  { %3871 = vsyncpa [#allocation4], 1 }
0x1cda   :  { %3873 = vsyncpa [#allocation4 + $0x1], 1 }

</bundles_post_ra>
